<compile_context>
chip_gen: v5e
topology: v5e:2x2
jax: 0.10.0
libtpu: 0.0.40
codegen_flags: <defaults>
</compile_context>

<pallas_src>
import jax
import jax.numpy as jnp
from jax.experimental import pallas as pl
from jax.experimental.pallas import tpu as pltpu


# Problems below this many FLOPs (2*M*N*K) are not worth a pallas_call.
_SMALL_PROBLEM_FLOPS = 1 << 20          # ~1e6
# Budget for the (double-buffered) tile footprint inside the kernel; leaves
# comfortable headroom under v7x's 64 MiB/TC and is far below v5e/v6e's 128 MiB.
_TILE_VMEM_BUDGET = 32 * 1024 * 1024
_VMEM_LIMIT_BYTES = 48 * 1024 * 1024


def _round_up(x: int, m: int) -> int:
    return (x + m - 1) // m * m


def _pick_tile(dim: int, align: int, max_tile: int) -> int:
    """Largest multiple of `align` (<= max_tile, <= aligned dim) minimizing padding."""
    dim_al = _round_up(dim, align)
    hi = min(max(max_tile // align * align, align), dim_al)
    best_t, best_pad = align, _round_up(dim, align) - dim
    for t in range(align, hi + 1, align):
        pad = _round_up(dim, t) - dim
        if pad < best_pad or (pad == best_pad and t > best_t):
            best_t, best_pad = t, pad
    return best_t


def _matmul_kernel(a_ref, b_ref, o_ref):
    """One (tm, tn) output tile; K is the last (reduction, 'arbitrary') grid axis.

    The output BlockSpec's index_map ignores the k grid index, so o_ref stays
    VMEM-resident across k — accumulate into it directly (no scratch)."""

    @pl.when(pl.program_id(2) == 0)
    def _():
        o_ref[...] = jnp.zeros_like(o_ref)

    o_ref[...] += jnp.dot(
        a_ref[...], b_ref[...], preferred_element_type=jnp.float32
    )


def _pallas_matmul(a: jax.Array, b: jax.Array, *, use_bf16: bool = True) -> jax.Array:
    """Tiled (M,K) @ (K,N) -> (M,N) matmul on the MXU, f32 output."""
    m, k = a.shape
    k2, n = b.shape
    assert k == k2, "inner dimensions must match"

    in_dtype = jnp.bfloat16 if use_bf16 else jnp.float32
    in_bytes = 2 if use_bf16 else 4
    # bf16 packs two rows per sublane: keep the second-to-last block dim of the
    # bf16 A tile a multiple of 16 (8 suffices for f32).
    m_align = 16 if use_bf16 else 8

    tm = _pick_tile(m, m_align, 1024)
    tn = _pick_tile(n, 128, 1024)

    # v7x has 2 TensorCores: make sure the product of the two 'parallel' grid
    # axes is >= 2 whenever the problem allows, so both cores get work.
    if (-(-m // tm)) * (-(-n // tn)) < 2:
        if tn >= 256:
            tn = _round_up(tn // 2, 128)
        elif tm >= 2 * m_align:
            tm = _round_up(tm // 2, m_align)

    # Grow tk toward full K under the VMEM tile budget (double-buffered A, B
    # and f32 output tiles).  Larger tk amortizes the per-step output RMW and
    # grid-step overhead.
    out_tile_bytes = 2 * tm * tn * 4
    per_k_bytes = 2 * (tm + tn) * in_bytes
    tk_cap = max(128, (_TILE_VMEM_BUDGET - out_tile_bytes) // per_k_bytes)
    tk = _pick_tile(k, 128, min(tk_cap, 4096))

    mp = _round_up(m, tm)
    kp = _round_up(k, tk)
    np_ = _round_up(n, tn)

    # Skip cast/pad ops entirely when they would be no-ops.
    a_p = a if a.dtype == in_dtype else a.astype(in_dtype)
    b_p = b if b.dtype == in_dtype else b.astype(in_dtype)
    if (mp, kp) != (m, k):
        a_p = jnp.pad(a_p, ((0, mp - m), (0, kp - k)))
    if (kp, np_) != (k, n):
        b_p = jnp.pad(b_p, ((0, kp - k), (0, np_ - n)))

    grid = (mp // tm, np_ // tn, kp // tk)

    out = pl.pallas_call(
        _matmul_kernel,
        out_shape=jax.ShapeDtypeStruct((mp, np_), jnp.float32),
        grid=grid,
        in_specs=[
            pl.BlockSpec((tm, tk), lambda i, j, kk: (i, kk)),
            pl.BlockSpec((tk, tn), lambda i, j, kk: (kk, j)),
        ],
        out_specs=pl.BlockSpec((tm, tn), lambda i, j, kk: (i, j)),
        compiler_params=pltpu.CompilerParams(
            dimension_semantics=("parallel", "parallel", "arbitrary"),
            vmem_limit_bytes=_VMEM_LIMIT_BYTES,
        ),
        cost_estimate=pl.CostEstimate(
            flops=2 * mp * np_ * kp,
            transcendentals=0,
            bytes_accessed=mp * kp * in_bytes + kp * np_ * in_bytes + mp * np_ * 4,
        ),
    )(a_p, b_p)

    if (mp, np_) != (m, n):
        out = out[:m, :n]
    return out


def sample_net_forward(a: jax.Array, b: jax.Array, *,
                       use_bf16: bool = True) -> jax.Array:
    """Equivalent of SampleNet.forward(b) == a @ b.

    use_bf16=True (default): bf16 MXU inputs, f32 accumulation — fastest on
    v5e/v6e/v7x.  use_bf16=False: exact f32 numerics matching the torch module.
    """
    m, k = a.shape
    k2, n = b.shape
    assert k == k2, "inner dimensions must match"
    if 2 * m * n * k < _SMALL_PROBLEM_FLOPS:
        # Kernel-call overhead dwarfs compute at this size on every TPU
        # generation; let XLA handle/fuse it (also keeps the spec's n=3 case
        # bit-exact f32).
        return jnp.dot(a, b, preferred_element_type=jnp.float32)
    return _pallas_matmul(a, b, use_bf16=use_bf16)


class SampleNet:
    """JAX mirror of the PyTorch SampleNet module (forward pass only)."""

    def __init__(self, n: int, key: jax.Array):
        # Deterministic stand-in for torch.randn(n, n).
        self.a = jax.random.normal(key, (n, n), dtype=jnp.float32)

    def __call__(self, b: jax.Array) -> jax.Array:
        return sample_net_forward(self.a, b)


# TODO(synk): SampleGrad.backward (which just returns `a`) is a custom autograd
# rule, not part of the forward pass; only the forward semantics are mirrored.


if __name__ == "__main__":
    key = jax.random.PRNGKey(0)
    k_param, k_input, ka, kb, kc, kd = jax.random.split(key, 6)

    # 1) The module exactly as specced: n = 3. Tiny -> fast exact-f32 XLA path.
    n = 3
    net = SampleNet(n, k_param)
    b_small = jax.random.normal(k_input, (n, n), dtype=jnp.float32)
    out_small = jax.block_until_ready(net(b_small))
    ref_small = net.a @ b_small
    assert out_small.shape == (n, n)
    assert jnp.allclose(out_small, ref_small, atol=1e-5, rtol=1e-5)

    # 2) Default bf16-MXU Pallas path at non-tile-aligned shapes: exercises the
    #    padding path, divisor-aware tk (= full K = 1152, zero padding) and the
    #    v7x >=2-parallel-blocks split.
    M, K, N = 250, 1152, 500
    a_big = jax.random.normal(ka, (M, K), dtype=jnp.float32)
    b_big = jax.random.normal(kb, (K, N), dtype=jnp.float32)
    out_big = jax.block_until_ready(sample_net_forward(a_big, b_big))
    ref_big = jnp.dot(a_big, b_big, precision=jax.lax.Precision.HIGHEST)
    assert out_big.shape == (M, N)
    rel_err = jnp.max(jnp.abs(out_big - ref_big)) / jnp.max(jnp.abs(ref_big))
    assert rel_err < 2e-2, f"bf16 path relative error too large: {rel_err}"

    # 3) Exact-f32 Pallas path at tile-aligned shapes: exercises the
    #    no-pad / no-cast fast path and tight numerics.
    M2, K2, N2 = 512, 768, 512
    a_f32 = jax.random.normal(kc, (M2, K2), dtype=jnp.float32)
    b_f32 = jax.random.normal(kd, (K2, N2), dtype=jnp.float32)
    out_f32 = jax.block_until_ready(
        sample_net_forward(a_f32, b_f32, use_bf16=False))
    ref_f32 = jnp.dot(a_f32, b_f32, precision=jax.lax.Precision.HIGHEST)
    assert out_f32.shape == (M2, N2)
    assert jnp.allclose(out_f32, ref_f32, atol=1e-2, rtol=1e-3)

    print("KERNEL_OK")
</pallas_src>

<mosaic_0001>
module attributes {stable_mosaic.version = 11 : i64} {
  func.func @_matmul_kernel(%arg0: i32, %arg1: i32, %arg2: i32, %arg3: memref<256x1152xbf16, #tpu.memory_space<vmem>>, %arg4: memref<1152x256xbf16, #tpu.memory_space<vmem>>, %arg5: memref<256x256xf32, #tpu.memory_space<vmem>>) attributes {dimension_semantics = [#tpu.dimension_semantics<parallel>, #tpu.dimension_semantics<parallel>, #tpu.dimension_semantics<arbitrary>], iteration_bounds = array<i64: 1, 2, 1>, scalar_prefetch = 0 : i64, scratch_operands = 0 : i64, tpu.core_type = #tpu.core_type<tc>, window_params = [{transform_indices = @transform_0, window_bounds = array<i64: 256, 1152>}, {transform_indices = @transform_1, window_bounds = array<i64: 1152, 256>}, {transform_indices = @transform_2, window_bounds = array<i64: 256, 256>}]} {
    %c0_i32 = arith.constant 0 : i32
    %0 = arith.cmpi eq, %arg2, %c0_i32 : i32
    %1 = arith.extui %0 : i1 to i32
    %c0_i32_0 = arith.constant 0 : i32
    %2 = arith.cmpi ne, %1, %c0_i32_0 : i32
    scf.if %2 {
      %cst_8 = arith.constant 0.000000e+00 : f32
      %9 = vector.broadcast %cst_8 : f32 to vector<256x256xf32>
      %c0_9 = arith.constant 0 : index
      %c0_10 = arith.constant 0 : index
      %10 = vector.load %arg5[%c0_9, %c0_10] : memref<256x256xf32, #tpu.memory_space<vmem>>, vector<256x256xf32>
      tpu.vector_store %arg5[%c0_9, %c0_10], %9 {strides = array<i32>} : memref<256x256xf32, #tpu.memory_space<vmem>>, vector<256x256xf32>,
    } else {
    }
    %c0 = arith.constant 0 : index
    %c0_1 = arith.constant 0 : index
    %3 = vector.load %arg5[%c0, %c0_1] : memref<256x256xf32, #tpu.memory_space<vmem>>, vector<256x256xf32>
    %c0_2 = arith.constant 0 : index
    %c0_3 = arith.constant 0 : index
    %4 = vector.load %arg3[%c0_2, %c0_3] : memref<256x1152xbf16, #tpu.memory_space<vmem>>, vector<256x1152xbf16>
    %c0_4 = arith.constant 0 : index
    %c0_5 = arith.constant 0 : index
    %5 = vector.load %arg4[%c0_4, %c0_5] : memref<1152x256xbf16, #tpu.memory_space<vmem>>, vector<1152x256xbf16>
    %cst = arith.constant dense<0.000000e+00> : vector<256x256xf32>
    %6 = tpu.matmul %4, %5, %cst {dimension_numbers = #tpu.dot_dimension_numbers<[1], [0], [0], [1], [0, 0, 1, 1], [], []>} : vector<256x1152xbf16>, vector<1152x256xbf16>, vector<256x256xf32> -> vector<256x256xf32>
    %7 = arith.addf %3, %6 : vector<256x256xf32>
    %c0_6 = arith.constant 0 : index
    %c0_7 = arith.constant 0 : index
    %8 = vector.load %arg5[%c0_6, %c0_7] : memref<256x256xf32, #tpu.memory_space<vmem>>, vector<256x256xf32>
    tpu.vector_store %arg5[%c0_6, %c0_7], %7 {strides = array<i32>} : memref<256x256xf32, #tpu.memory_space<vmem>>, vector<256x256xf32>,
    return
  }
  func.func @transform_0(%arg0: i32, %arg1: i32, %arg2: i32) -> (i32, i32) {
    %c0_i32 = arith.constant 0 : i32
    return %arg0, %arg2 : i32, i32
  }
  func.func @transform_1(%arg0: i32, %arg1: i32, %arg2: i32) -> (i32, i32) {
    %c0_i32 = arith.constant 0 : i32
    return %arg2, %arg1 : i32, i32
  }
  func.func @transform_2(%arg0: i32, %arg1: i32, %arg2: i32) -> (i32, i32) {
    %c0_i32 = arith.constant 0 : i32
    return %arg0, %arg1 : i32, i32
  }
}

</mosaic_0001>

<bundles_post_ra>
// kernel: tpu_custom_call.1
= control target key start
LH: loop header
LB: loop body
LE: loop exit
PB: predicated region body
PF: predicated region fallthrough
CT: control target
= control target key end

     0   :  { %7 = vsyncpa [#allocation3], 0  ;;  %s7170_s0 = inlined_call_operand.hbm [shape: bf16[256,1152], index: 0, kind: input, shape index: {}]   ;;  %s7171_s1 = inlined_call_operand.hbm [shape: bf16[1152,512], index: 1, kind: input, shape index: {}]   ;;  %s7172_s2 = inlined_call_operand.hbm [shape: f32[256,512], index: 2, kind: output, shape index: {}]  }
   0x1   :  { %8 = vsyncpa [#allocation6], 0 }
   0x2   :  { %10 = vsyncpa [#allocation6 + $0x1], 0 }
   0x3   :  { %11 = vsyncpa [#allocation4], 0 }
   0x4   :  { %13 = vsyncpa [#allocation4 + $0x1], 0  ;;  %s5703_s9 = smov 0   ;;  %s5705_s10 = smov 0  }
   0x5   :  { %s5707_s11 = smov 0   ;;  %s5709_s12 = smov 0  }
   0x6   :  { %s5711_s13 = smov 0   ;;  %s5713_s14 = smov 0  }
   0x7 LB: > { %s3974_s15 = sadd.s32 4294967295, %s5677_s14   ;;  %s3975_s16 = sadd.s32 4294967294, %s5677_s14   ;;  %s5677_s14 = sphi %s5713_s14, %s19_s14   ;;  %s5673_s13 = sphi %s5711_s13, %s7556_s13   ;;  %s5669_s12 = sphi %s5709_s12, %s7555_s12   ;;  %s5665_s11 = sphi %s5707_s11, %s7554_s11   ;;  %s5661_s10 = sphi %s5705_s10, %s7553_s10   ;;  %s5657_s9 = sphi %s5703_s9, %s7552_s9  }
   0x8   : > { %p88_p0 = scmp.ne.s32.totalorder %s5661_s10, %s5657_s9  ;;  %p5737_p1 = scmp.eq.s32.totalorder %s3974_s15, 0 }
   0x9   : > { %p5741_p2 = scmp.eq.s32.totalorder %s3974_s15, 1  ;;  %p120_p3 = scmp.eq.s32.totalorder %s3975_s16, 1 }
   0xa   : > { %p5747_p4 = por %p5737_p1, %p88_p0  ;;  %p3976_p5 = scmp.ge.s32.totalorder %s5677_s14, 1 }
   0xb   : > { %p5752_p6 = por %p120_p3, %p88_p0  ;;  %p127_p7 = scmp.lt.s32.totalorder %s5677_s14, 3 }
   0xc   : > { %s144_s23 = sshll.u32 %s7170_s0, 4  ;;  %s5679_s25 = smov [#allocation2]   ;;  %s145_s23 = int_to_ptr.hbm [resolvable:$true] %s144_s23 }
   0xd   : > { %p5760_p8 = pnand %p3976_p5, %p127_p7  ;;  %s146_s26 = sshll.u32 %s5679_s25, 4  ;;  %s147_s26 = int_to_ptr.vmem [resolvable:$true] %s146_s26 }
   0xe   : > { %p3978_p11 = scmp.ge.s32.totalorder %s5677_s14, 2  ;;  %s5680_s27 = smov 576  }
   0xf   : > { %p5457_p9 = pneg %p5760_p8  ;;  %s5681_s28 = smov 36  }
  0x10   : > { %s34_s29 = sadd.s32 1, %s5673_s13  ;;  %s75_s30 = sadd.s32 1, %s5665_s11 }
  0x11   : > { %p5458_p10 = pnand %p5457_p9, %p5737_p1  ;;  %p36_p12 = scmp.ge.s32.totalorder %s34_s29, 2 }
  0x12   : > { %p82_p13 = scmp.ne.s32.totalorder %s5665_s11, %s5661_s10  ;;  %p83_p0 = scmp.eq.s32.totalorder %s5677_s14, 0 }
  0x13   : > { %5460 = dma.hbm_to_vmem [thread:$0]  (!%p5458_p10), %s145_s23, 18432, %s147_s26, [#allocation3], %s5680_s27, %s5680_s27, %s5681_s28  }
  0x14   : > { %s7558_s29 = smov (%p36_p12, %s34_s29), 0  ;;  %p5776_p3 = por %p83_p0, %p82_p13 }
  0x15   : > { %p5782_p5 = por %p5741_p2, %p82_p13  ;;  %s71_s5 = ssub.s32 %s5673_s13, %s7558_s29 }
  0x16   : > { %p5470_p7 = scmp.lt.s32.totalorder %s5677_s14, 2  ;;  %p73_p9 = scmp.eq.s32.totalorder %s71_s5, 0 }
  0x17   : > { %s160_s6 = sand.u32 1, %s5665_s11   ;;  %s5141_s15 = sshll.u32 %s5673_s13, 3 }
  0x18   : > { %s5447_s7 = smul.u32 1152, %s160_s6  ;;  %s172_s22 = scalar_lea.hbm %s7171_s1, %s5141_s15 }
  0x19   : > { %s5791_s8 = scalar_select %p73_p9, %s5665_s11, %s75_s30  }
  0x1a   : > { %s164_s23 = scalar_lea.vmem [#allocation5], %s5447_s7  ;;  %s173_s18 = sshll.u32 %s172_s22, 4  ;;  %s174_s18 = int_to_ptr.hbm [resolvable:$true] %s173_s18 }
  0x1b   : > { %s175_s25 = sshll.u32 %s164_s23, 4  ;;  %p5462_p2 = pnand %p5470_p7, %p5776_p3  ;;  %s176_s25 = int_to_ptr.vmem [resolvable:$true] %s175_s25 }
  0x1c   : > { %s161_s26 = scalar_lea.sflag [#allocation6], %s160_s6  ;;  %s5682_s27 = smov 256  }
  0x1d   : > { %s5683_s28 = smov 128   ;;  %s5684_s5 = smov 8  }
  0x1e   : > { %5464 = dma.hbm_to_vmem [thread:$0]  (!%p5462_p2), %s174_s18, 18432, %s176_s25, %s161_s26, %s5682_s27, %s5683_s28, %s5684_s5  }
  0x1f   : > { %187 = sbr.rel (%p5760_p8) target bundleno = 1365 (0x555), region = 28 }
  0x24   : > { %5644 = dma.done.wait (%p5737_p1), [#allocation3], 18432  }
  0x25   : > { %5646 = vsyncadd (%p5737_p1), [#allocation3], 4294948864  ;;  %s5806_s30 = sand.u32 1, %s5661_s10  }
  0x26   : > { %s5448_s3 = smul.u32 1152, %s5806_s30  ;;  %s195_s6 = scalar_lea.sflag [#allocation6], %s5806_s30 }
  0x28   : > { %s5810_s7 = scalar_lea.vmem [#allocation5], %s5448_s3 }
  0x29   : > { %5648 = dma.done.wait (%p5747_p4), %s195_s6, 18432  }
  0x2a   : > { %5650 = vsyncadd (%p5747_p4), %s195_s6, 4294948864  ;;  %v4618_v0 = vld [vmem:[%s5810_s7 + $0x70] sm:$0xf]  ;;  %v5301_v1 = vld [vmem:[%s5810_s7 + $0x74] sm:$0xf0]  ;;  %s3983_s17 = sshll.u32 %s5806_s30, 9 }
  0x2b   : > { %v4682_v2 = vld [vmem:[%s5810_s7 + $0xf0] sm:$0xf]  ;;  %v4619_v3 = vor.u32 %v5301_v1, %v4618_v0  ;;  %v5317_v4 = vld [vmem:[%s5810_s7 + $0xf4] sm:$0xf0]  ;;  %v4610_v5 = vld [vmem:[%s5810_s7 + $0x60] sm:$0xf] }
  0x2c   : > { %v5299_v6 = vld [vmem:[%s5810_s7 + $0x64] sm:$0xf0]  ;;  %v4683_v7 = vor.u32 %v5317_v4, %v4682_v2  ;;  %v4674_v8 = vld [vmem:[%s5810_s7 + $0xe0] sm:$0xf]  ;;  %v4602_v12 = vld [vmem:[%s5810_s7 + $0x50] sm:$0xf] }
  0x2d   : > { %v5315_v9 = vld [vmem:[%s5810_s7 + $0xe4] sm:$0xf0]  ;;  %5431 = vmatpush.bf16.msra.mxu2 %v4619_v3  ;;  %2118 = vmatpush.bf16.msra.mxu0 %v4619_v3  ;;  %v4611_v10 = vor.u32 %v5299_v6, %v4610_v5  ;;  %v5297_v13 = vld [vmem:[%s5810_s7 + $0x54] sm:$0xf0]  ;;  %v4666_v14 = vld [vmem:[%s5810_s7 + $0xd0] sm:$0xf] }
  0x2e   : > { %5439 = vmatpush.bf16.msra.mxu3 %v4683_v7  ;;  %2207 = vmatpush.bf16.msra.mxu1 %v4683_v7  ;;  %v4675_v11 = vor.u32 %v5315_v9, %v4674_v8  ;;  %v5313_v15 = vld [vmem:[%s5810_s7 + $0xd4] sm:$0xf0]  ;;  %v4603_v16 = vor.u32 %v5297_v13, %v4602_v12  ;;  %v4594_v18 = vld [vmem:[%s5810_s7 + $0x40] sm:$0xf]  ;;  %v5295_v19 = vld [vmem:[%s5810_s7 + $0x44] sm:$0xf0] }
  0x2f   : > { %v4667_v17 = vor.u32 %v5313_v15, %v4666_v14  ;;  %v4658_v20 = vld [vmem:[%s5810_s7 + $0xc0] sm:$0xf]  ;;  %v5311_v21 = vld [vmem:[%s5810_s7 + $0xc4] sm:$0xf0]  ;;  %v4595_v22 = vor.u32 %v5295_v19, %v4594_v18  ;;  %v4586_v24 = vld [vmem:[%s5810_s7 + $0x30] sm:$0xf] }
  0x30   : > { %v4659_v23 = vor.u32 %v5311_v21, %v4658_v20  ;;  %v5293_v25 = vld [vmem:[%s5810_s7 + $0x34] sm:$0xf0]  ;;  %v4650_v26 = vld [vmem:[%s5810_s7 + $0xb0] sm:$0xf]  ;;  %v4578_v30 = vld [vmem:[%s5810_s7 + $0x20] sm:$0xf] }
  0x31   : > { %5432 = vmatpush.bf16.msra.mxu2 %v4611_v10  ;;  %2119 = vmatpush.bf16.msra.mxu0 %v4611_v10  ;;  %v5309_v27 = vld [vmem:[%s5810_s7 + $0xb4] sm:$0xf0]  ;;  %v4587_v28 = vor.u32 %v5293_v25, %v4586_v24  ;;  %v5291_v31 = vld [vmem:[%s5810_s7 + $0x24] sm:$0xf0]  ;;  %v4642_v32 = vld [vmem:[%s5810_s7 + $0xa0] sm:$0xf] }
  0x32   : > { %5440 = vmatpush.bf16.msra.mxu3 %v4675_v11  ;;  %2208 = vmatpush.bf16.msra.mxu1 %v4675_v11  ;;  %v4651_v29 = vor.u32 %v5309_v27, %v4650_v26  ;;  %v5307_v33 = vld [vmem:[%s5810_s7 + $0xa4] sm:$0xf0]  ;;  %v4579_v34 = vor.u32 %v5291_v31, %v4578_v30  ;;  %v4570_v36 = vld [vmem:[%s5810_s7 + $0x10] sm:$0xf]  ;;  %v5289_v37 = vld [vmem:[%s5810_s7 + $0x14] sm:$0xf0] }
  0x33   : > { %v4643_v35 = vor.u32 %v5307_v33, %v4642_v32  ;;  %v4634_v38 = vld [vmem:[%s5810_s7 + $0x90] sm:$0xf]  ;;  %v5305_v39 = vld [vmem:[%s5810_s7 + $0x94] sm:$0xf0]  ;;  %v4571_v40 = vor.u32 %v5289_v37, %v4570_v36  ;;  %v4562_v41 = vld [vmem:[%s5810_s7] sm:$0xf] }
  0x34   : > { %v4635_v42 = vor.u32 %v5305_v39, %v4634_v38  ;;  %v5287_v43 = vld [vmem:[%s5810_s7 + $0x4] sm:$0xf0]  ;;  %v4626_v44 = vld [vmem:[%s5810_s7 + $0x80] sm:$0xf]  ;;  %v5218_v47 = vld [vmem:[#allocation2 + $0x260] sm:$0xf0] }
  0x35   : > { %5433 = vmatpush.bf16.msra.mxu2 %v4603_v16  ;;  %2120 = vmatpush.bf16.msra.mxu0 %v4603_v16  ;;  %v5303_v45 = vld [vmem:[%s5810_s7 + $0x84] sm:$0xf0]  ;;  %v4274_v46 = vld [vmem:[#allocation2 + $0x240] sm:$0xf]  ;;  %v4746_v48 = vld [vmem:[%s5810_s7 + $0x170] sm:$0xf]  ;;  %v4563_v54 = vor.u32 %v5287_v43, %v4562_v41 }
  0x36   : > { %5441 = vmatpush.bf16.msra.mxu3 %v4667_v17  ;;  %2209 = vmatpush.bf16.msra.mxu1 %v4667_v17  ;;  %v5214_v49 = vld [vmem:[#allocation2 + $0x244] sm:$0xf]  ;;  %v4276_v50 = vld [vmem:[#allocation2 + $0x264] sm:$0xf0]  ;;  %v5333_v51 = vld [vmem:[%s5810_s7 + $0x174] sm:$0xf0]  ;;  %v4627_v58 = vor.u32 %v5303_v45, %v4626_v44  ;;  %v5857_v3 = vor.u32 %v5218_v47, %v4274_v46 }
  0x37   : > { %v4810_v52 = vld [vmem:[%s5810_s7 + $0x1f0] sm:$0xf]  ;;  %v5349_v53 = vld [vmem:[%s5810_s7 + $0x1f4] sm:$0xf0]  ;;  %v3986_v55 = vld [vmem:[#allocation2] sm:$0xf]  ;;  %v4747_v62 = vor.u32 %v5333_v51, %v4746_v48  ;;  %v5864_v8 = vor.u32 %v5214_v49, %v4276_v50 }
  0x38   : > { %v5146_v56 = vld [vmem:[#allocation2 + $0x20] sm:$0xf0]  ;;  %v3988_v59 = vld [vmem:[#allocation2 + $0x24] sm:$0xf0]  ;;  %v4874_v60 = vld [vmem:[%s5810_s7 + $0x270] sm:$0xf]  ;;  %v4811_v63 = vor.u32 %v5349_v53, %v4810_v52 }
  0x39   : > { %5434 = vmatpush.bf16.msra.mxu2 %v4595_v22  ;;  %2121 = vmatpush.bf16.msra.mxu0 %v4595_v22  ;;  %v5142_v57 = vld [vmem:[#allocation2 + $0x4] sm:$0xf]  ;;  %v5365_v61 = vld [vmem:[%s5810_s7 + $0x274] sm:$0xf0]  ;;  %v4938_v0 = vld [vmem:[%s5810_s7 + $0x2f0] sm:$0xf]  ;;  %v5859_v4 = vor.u32 %v5146_v56, %v3986_v55 }
  0x3a   : > { %5442 = vmatpush.bf16.msra.mxu3 %v4659_v23  ;;  %2210 = vmatpush.bf16.msra.mxu1 %v4659_v23  ;;  %v5381_v1 = vld [vmem:[%s5810_s7 + $0x2f4] sm:$0xf0]  ;;  %v4738_v2 = vld [vmem:[%s5810_s7 + $0x160] sm:$0xf]  ;;  %7304 = vst [vmem:[#allocation11_spill] sm:$0xff] %v5857_v3  ;;  %v5866_v9 = vor.u32 %v5142_v57, %v3988_v59  ;;  %v4875_v10 = vor.u32 %v5365_v61, %v4874_v60  ;;  %s6564_s19 = scalar_lea.vmem [#allocation7], %s3983_s17 }
  0x3b   : > { %v5331_v5 = vld [vmem:[%s5810_s7 + $0x164] sm:$0xf0]  ;;  %v4802_v6 = vld [vmem:[%s5810_s7 + $0x1e0] sm:$0xf]  ;;  %7305 = vst [vmem:[#allocation12_spill] sm:$0xff] %v5864_v8  ;;  %v4939_v11 = vor.u32 %v5381_v1, %v4938_v0  ;;  %s5430_s24 = sshll.u32 %s5669_s12, 4 }
  0x3c   : > { %v5347_v7 = vld [vmem:[%s5810_s7 + $0x1e4] sm:$0xf0]  ;;  %7306 = vst [vmem:[#allocation13_spill] sm:$0xff] %v5866_v9  ;;  %v4866_v12 = vld [vmem:[%s5810_s7 + $0x260] sm:$0xf]  ;;  %v4739_v13 = vor.u32 %v5331_v5, %v4738_v2  ;;  %s3863_s21 = scalar_lea.hbm %s7172_s2, %s5430_s24  ;;  %s3864_s22 = sshll.u32 %s6564_s19, 4  ;;  %s3865_s22 = int_to_ptr.vmem [resolvable:$true] %s3864_s22 }
  0x3d   : > { %5435 = vmatpush.bf16.msra.mxu2 %v4587_v28  ;;  %2122 = vmatpush.bf16.msra.mxu0 %v4587_v28  ;;  %v4803_v14 = vor.u32 %v5347_v7, %v4802_v6  ;;  %v5363_v15 = vld [vmem:[%s5810_s7 + $0x264] sm:$0xf0]  ;;  %v4930_v16 = vld [vmem:[%s5810_s7 + $0x2e0] sm:$0xf]  ;;  %v4730_v18 = vld [vmem:[%s5810_s7 + $0x150] sm:$0xf] }
  0x3e   : > { %5443 = vmatpush.bf16.msra.mxu3 %v4651_v29  ;;  %2211 = vmatpush.bf16.msra.mxu1 %v4651_v29  ;;  %v5379_v17 = vld [vmem:[%s5810_s7 + $0x2e4] sm:$0xf0]  ;;  %v5329_v19 = vld [vmem:[%s5810_s7 + $0x154] sm:$0xf0]  ;;  %v4867_v20 = vor.u32 %v5363_v15, %v4866_v12  ;;  %v4794_v22 = vld [vmem:[%s5810_s7 + $0x1d0] sm:$0xf] }
  0x3f   : > { %v4931_v21 = vor.u32 %v5379_v17, %v4930_v16  ;;  %v5345_v23 = vld [vmem:[%s5810_s7 + $0x1d4] sm:$0xf0]  ;;  %v4858_v24 = vld [vmem:[%s5810_s7 + $0x250] sm:$0xf]  ;;  %v4731_v25 = vor.u32 %v5329_v19, %v4730_v18  ;;  %v4310_v32 = vld [vmem:[#allocation2 + $0x288] sm:$0xf] }
  0x40   : > { %v4795_v26 = vor.u32 %v5345_v23, %v4794_v22  ;;  %v5361_v27 = vld [vmem:[%s5810_s7 + $0x254] sm:$0xf0]  ;;  %v4922_v28 = vld [vmem:[%s5810_s7 + $0x2d0] sm:$0xf]  ;;  %v5227_v33 = vld [vmem:[#allocation2 + $0x2a8] sm:$0xf0] }
  0x41   : > { %5436 = vmatpush.bf16.msra.mxu2 %v4579_v34  ;;  %2123 = vmatpush.bf16.msra.mxu0 %v4579_v34  ;;  %v5377_v29 = vld [vmem:[%s5810_s7 + $0x2d4] sm:$0xf0]  ;;  %v4859_v30 = vor.u32 %v5361_v27, %v4858_v24  ;;  %v5223_v34 = vld [vmem:[#allocation2 + $0x28c] sm:$0xf]  ;;  %v4312_v37 = vld [vmem:[#allocation2 + $0x2ac] sm:$0xf0] }
  0x42   : > { %5444 = vmatpush.bf16.msra.mxu3 %v4643_v35  ;;  %2212 = vmatpush.bf16.msra.mxu1 %v4643_v35  ;;  %v4923_v31 = vor.u32 %v5377_v29, %v4922_v28  ;;  %v4022_v35 = vld [vmem:[#allocation2 + $0x48] sm:$0xf]  ;;  %v5155_v36 = vld [vmem:[#allocation2 + $0x68] sm:$0xf0]  ;;  %v4024_v39 = vld [vmem:[#allocation2 + $0x6c] sm:$0xf0] }
  0x43   : > { %v5151_v38 = vld [vmem:[#allocation2 + $0x4c] sm:$0xf]  ;;  %v5886_v41 = vor.u32 %v5155_v36, %v4022_v35  ;;  %v4722_v44 = vld [vmem:[%s5810_s7 + $0x140] sm:$0xf]  ;;  %v5327_v45 = vld [vmem:[%s5810_s7 + $0x144] sm:$0xf0] }
  0x44   : > { %v5890_v43 = vor.u32 %v5151_v38, %v4024_v39  ;;  %v4723_v46 = vor.u32 %v5327_v45, %v4722_v44  ;;  %v4786_v47 = vld [vmem:[%s5810_s7 + $0x1c0] sm:$0xf]  ;;  %v5343_v48 = vld [vmem:[%s5810_s7 + $0x1c4] sm:$0xf0]  ;;  %v4346_v56 = vld [vmem:[#allocation2 + $0x2d0] sm:$0xf] }
  0x45   : > { %5437 = vmatpush.bf16.msra.mxu2 %v4571_v40  ;;  %2124 = vmatpush.bf16.msra.mxu0 %v4571_v40  ;;  %v5884_v40 = vor.u32 %v5227_v33, %v4310_v32  ;;  %v4850_v49 = vld [vmem:[%s5810_s7 + $0x240] sm:$0xf]  ;;  %v4787_v50 = vor.u32 %v5343_v48, %v4786_v47  ;;  %v5359_v51 = vld [vmem:[%s5810_s7 + $0x244] sm:$0xf0]  ;;  %v5236_v57 = vld [vmem:[#allocation2 + $0x2f0] sm:$0xf0] }
  0x46   : > { %5445 = vmatpush.bf16.msra.mxu3 %v4635_v42  ;;  %2213 = vmatpush.bf16.msra.mxu1 %v4635_v42  ;;  %v5888_v42 = vor.u32 %v5223_v34, %v4312_v37  ;;  %7309 = vst [vmem:[#allocation16_spill] sm:$0xff] %v5890_v43  ;;  %v4914_v52 = vld [vmem:[%s5810_s7 + $0x2c0] sm:$0xf]  ;;  %v5375_v53 = vld [vmem:[%s5810_s7 + $0x2c4] sm:$0xf0]  ;;  %v5904_v0 = vor.u32 %v5236_v57, %v4346_v56  ;;  %s3866_s23 = sshll.u32 %s3863_s21, 4  ;;  %s3867_s23 = int_to_ptr.hbm [resolvable:$true] %s3866_s23 }
  0x47   : > { %7307 = vst [vmem:[#allocation14_spill] sm:$0xff] %v5884_v40  ;;  %v4915_v55 = vor.u32 %v5375_v53, %v4914_v52  ;;  %v4058_v59 = vld [vmem:[#allocation2 + $0x90] sm:$0xf]  ;;  %v5164_v60 = vld [vmem:[#allocation2 + $0xb0] sm:$0xf0]  ;;  %s3849_s12 = scalar_lea.sflag [#allocation4], %s5806_s30 }
  0x48   : > { %7308 = vst [vmem:[#allocation15_spill] sm:$0xff] %v5888_v42  ;;  %v4348_v61 = vld [vmem:[#allocation2 + $0x2f4] sm:$0xf0]  ;;  %v5906_v1 = vor.u32 %v5164_v60, %v4058_v59  ;;  %v4714_v6 = vld [vmem:[%s5810_s7 + $0x130] sm:$0xf]  ;;  %s5605_s25 = sshra.s32 %s3867_s23, 4  ;;  %s5606_s25 = int_to_ptr.hbm [resolvable:$true] %s5605_s25 }
  0x49   : > { %5438 = vmatpush.bf16.msra.mxu2 %v4563_v54  ;;  %2125 = vmatpush.bf16.msra.mxu0 %v4563_v54  ;;  %v4851_v54 = vor.u32 %v5359_v51, %v4850_v49  ;;  %7310 = vst [vmem:[#allocation17_spill] sm:$0xff] %v5904_v0  ;;  %v5325_v7 = vld [vmem:[%s5810_s7 + $0x134] sm:$0xf0]  ;;  %v4906_v16 = vld [vmem:[%s5810_s7 + $0x2b0] sm:$0xf]  ;;  %s5607_s18 = scalar_lea.hbm %s5606_s25, 512  ;;  %p5612_p10 = scmp.lt.s32.totalorder %s5606_s25, %s7172_s2 }
  0x4a   : > { %5446 = vmatpush.bf16.msra.mxu3 %v4627_v58  ;;  %2214 = vmatpush.bf16.msra.mxu1 %v4627_v58  ;;  %v5232_v58 = vld [vmem:[#allocation2 + $0x2d4] sm:$0xf]  ;;  %v5341_v12 = vld [vmem:[%s5810_s7 + $0x1b4] sm:$0xf0]  ;;  %v5241_v22 = vld [vmem:[#allocation2 + $0x31c] sm:$0xf]  ;;  %p5608_p1 = scmp.ne.s32.totalorder %s5606_s25, %s5607_s18 }
  0x4b   : > { %v5908_v2 = vor.u32 %v5232_v58, %v4348_v61  ;;  %v5357_v15 = vld [vmem:[%s5810_s7 + $0x234] sm:$0xf0]  ;;  %v5173_v24 = vld [vmem:[#allocation2 + $0xf8] sm:$0xf0]  ;;  %v4096_v27 = vld [vmem:[#allocation2 + $0xfc] sm:$0xf0] }
  0x4c   : > { %2166 = vmatmul.bf16.vlgmr.msra.gmra.mxu2 %v5857_v3  ;;  %2126 = vmatmul.bf16.vlgmr.msra.gmra.mxu0 %v5859_v4  ;;  %v5373_v17 = vld [vmem:[%s5810_s7 + $0x2b4] sm:$0xf0]  ;;  %v4706_v32 = vld [vmem:[%s5810_s7 + $0x120] sm:$0xf]  ;;  %v5323_v33 = vld [vmem:[%s5810_s7 + $0x124] sm:$0xf0]  ;;  %p5609_p4 = pnand %p5608_p1, %p5782_p5 }
  0x4d   : > { %2296 = vmatpush.bf16.msrb.mxu2 %v4747_v62  ;;  %2255 = vmatmul.bf16.vlgmr.msra.gmra.mxu3 %v5864_v8  ;;  %v5160_v62 = vld [vmem:[#allocation2 + $0x94] sm:$0xf]  ;;  %7311 = vst [vmem:[#allocation18_spill] sm:$0xff] %v5908_v2  ;;  %v4907_v19 = vor.u32 %v5373_v17, %v4906_v16  ;;  %v4094_v23 = vld [vmem:[#allocation2 + $0xd8] sm:$0xf]  ;;  %v4707_v34 = vor.u32 %v5323_v33, %v4706_v32  ;;  %s5611_s28 = scalar_lea.hbm %s7172_s2, 1024 }
  0x4e   : > { %2385 = vmatpush.bf16.msrb.mxu3 %v4811_v63  ;;  %2215 = vmatmul.bf16.vlgmr.msra.gmra.mxu1 %v5866_v9  ;;  %v4060_v63 = vld [vmem:[#allocation2 + $0xb4] sm:$0xf0]  ;;  %v5926_v29 = vor.u32 %v5173_v24, %v4094_v23  ;;  %v4770_v35 = vld [vmem:[%s5810_s7 + $0x1a0] sm:$0xf]  ;;  %v5339_v36 = vld [vmem:[%s5810_s7 + $0x1a4] sm:$0xf0]  ;;  %p5610_p8 = pneg %p5609_p4  ;;  %p5613_p12 = scmp.lt.s32.totalorder %s5611_s28, %s5607_s18 }
  0x4f   : > { %2474 = vmatpush.bf16.msrb.mxu0 %v4875_v10  ;;  %2563 = vmatpush.bf16.msrb.mxu1 %v4939_v11  ;;  %v5910_v5 = vor.u32 %v5160_v62, %v4060_v63  ;;  %v4715_v10 = vor.u32 %v5325_v7, %v4714_v6  ;;  %v4778_v11 = vld [vmem:[%s5810_s7 + $0x1b0] sm:$0xf]  ;;  %v4834_v37 = vld [vmem:[%s5810_s7 + $0x220] sm:$0xf]  ;;  %v4771_v38 = vor.u32 %v5339_v36, %v4770_v35  ;;  %v5355_v39 = vld [vmem:[%s5810_s7 + $0x224] sm:$0xf0] }
  0x50   : > { %v4898_v44 = vld [vmem:[%s5810_s7 + $0x2a0] sm:$0xf]  ;;  %v5371_v45 = vld [vmem:[%s5810_s7 + $0x2a4] sm:$0xf0]  ;;  %v5254_v49 = vld [vmem:[#allocation2 + $0x380] sm:$0xf0]  ;;  %p5614_p13 = por %p5613_p12, %p5612_p10 }
  0x51   : > { %2297 = vmatpush.bf16.msrb.mxu2 %v4739_v13  ;;  %7312 = vst [vmem:[#allocation19_spill] sm:$0xff] %v5910_v5  ;;  %v4842_v13 = vld [vmem:[%s5810_s7 + $0x230] sm:$0xf]  ;;  %v4899_v47 = vor.u32 %v5371_v45, %v4898_v44  ;;  %v4418_v48 = vld [vmem:[#allocation2 + $0x360] sm:$0xf] }
  0x52   : > { %2386 = vmatpush.bf16.msrb.mxu3 %v4803_v14  ;;  %v4779_v14 = vor.u32 %v5341_v12, %v4778_v11  ;;  %v4843_v18 = vor.u32 %v5357_v15, %v4842_v13  ;;  %v4130_v51 = vld [vmem:[#allocation2 + $0x120] sm:$0xf]  ;;  %v5182_v52 = vld [vmem:[#allocation2 + $0x140] sm:$0xf0]  ;;  %v4420_v53 = vld [vmem:[#allocation2 + $0x384] sm:$0xf0]  ;;  %v5944_v56 = vor.u32 %v5254_v49, %v4418_v48  ;;  %p5615_p0 = pnand %p5614_p13, %p5610_p8 }
  0x53   : > { %2475 = vmatpush.bf16.msrb.mxu0 %v4867_v20  ;;  %2564 = vmatpush.bf16.msrb.mxu1 %v4931_v21  ;;  %v4382_v20 = vld [vmem:[#allocation2 + $0x318] sm:$0xf]  ;;  %v5245_v21 = vld [vmem:[#allocation2 + $0x338] sm:$0xf0]  ;;  %v5946_v57 = vor.u32 %v5182_v52, %v4130_v51  ;;  %v4698_v60 = vld [vmem:[%s5810_s7 + $0x110] sm:$0xf] }
  0x54   : > { %v5924_v28 = vor.u32 %v5245_v21, %v4382_v20  ;;  %7316 = vst [vmem:[#allocation23_spill] sm:$0xff] %v5944_v56  ;;  %v5321_v61 = vld [vmem:[%s5810_s7 + $0x114] sm:$0xf0]  ;;  %v4762_v63 = vld [vmem:[%s5810_s7 + $0x190] sm:$0xf] }
  0x55   : > { %2298 = vmatpush.bf16.msrb.mxu2 %v4731_v25  ;;  %v4384_v25 = vld [vmem:[#allocation2 + $0x33c] sm:$0xf0]  ;;  %v4699_v62 = vor.u32 %v5321_v61, %v4698_v60  ;;  %v5337_v6 = vld [vmem:[%s5810_s7 + $0x194] sm:$0xf0]  ;;  %v4826_v7 = vld [vmem:[%s5810_s7 + $0x210] sm:$0xf] }
  0x56   : > { %2387 = vmatpush.bf16.msrb.mxu3 %v4795_v26  ;;  %v5169_v26 = vld [vmem:[#allocation2 + $0xdc] sm:$0xf]  ;;  %7313 = vst [vmem:[#allocation20_spill] sm:$0xff] %v5924_v28  ;;  %v5353_v11 = vld [vmem:[%s5810_s7 + $0x214] sm:$0xf0] }
  0x57   : > { %2476 = vmatpush.bf16.msrb.mxu0 %v4859_v30  ;;  %2565 = vmatpush.bf16.msrb.mxu1 %v4923_v31  ;;  %v5928_v30 = vor.u32 %v5241_v22, %v4384_v25  ;;  %v5930_v31 = vor.u32 %v5169_v26, %v4096_v27  ;;  %v4890_v12 = vld [vmem:[%s5810_s7 + $0x290] sm:$0xf]  ;;  %v5369_v13 = vld [vmem:[%s5810_s7 + $0x294] sm:$0xf0]  ;;  %v4454_v16 = vld [vmem:[#allocation2 + $0x3a8] sm:$0xf] }
  0x58   : > { %v4891_v15 = vor.u32 %v5369_v13, %v4890_v12  ;;  %v5263_v17 = vld [vmem:[#allocation2 + $0x3c8] sm:$0xf0]  ;;  %v4456_v21 = vld [vmem:[#allocation2 + $0x3cc] sm:$0xf0]  ;;  %v4690_v32 = vld [vmem:[%s5810_s7 + $0x100] sm:$0xf] }
  0x59   : > { %2299 = vmatpush.bf16.msrb.mxu2 %v4723_v46  ;;  %7314 = vst [vmem:[#allocation21_spill] sm:$0xff] %v5928_v30  ;;  %v4835_v46 = vor.u32 %v5355_v39, %v4834_v37  ;;  %v5191_v20 = vld [vmem:[#allocation2 + $0x188] sm:$0xf0]  ;;  %v4168_v23 = vld [vmem:[#allocation2 + $0x18c] sm:$0xf0]  ;;  %v5964_v24 = vor.u32 %v5263_v17, %v4454_v16 }
  0x5a   : > { %2388 = vmatpush.bf16.msrb.mxu3 %v4787_v50  ;;  %7315 = vst [vmem:[#allocation22_spill] sm:$0xff] %v5930_v31  ;;  %v5250_v50 = vld [vmem:[#allocation2 + $0x364] sm:$0xf]  ;;  %v5187_v22 = vld [vmem:[#allocation2 + $0x16c] sm:$0xf] }
  0x5b   : > { %2477 = vmatpush.bf16.msrb.mxu0 %v4851_v54  ;;  %2566 = vmatpush.bf16.msrb.mxu1 %v4915_v55  ;;  %v5178_v54 = vld [vmem:[#allocation2 + $0x124] sm:$0xf]  ;;  %v4132_v55 = vld [vmem:[#allocation2 + $0x144] sm:$0xf0]  ;;  %v5948_v58 = vor.u32 %v5250_v50, %v4420_v53  ;;  %7319 = vst [vmem:[#allocation26_spill] sm:$0xff] %v5964_v24  ;;  %v5970_v27 = vor.u32 %v5187_v22, %v4168_v23 }
  0x5c   : > { %2171 = vmatmul.bf16.gmra.mxu2 %v5884_v40  ;;  %2131 = vmatmul.bf16.gmra.mxu0 %v5886_v41  ;;  %v5950_v59 = vor.u32 %v5178_v54, %v4132_v55  ;;  %v5319_v33 = vld [vmem:[%s5810_s7 + $0x104] sm:$0xf0]  ;;  %v4754_v35 = vld [vmem:[%s5810_s7 + $0x180] sm:$0xf]  ;;  %v4490_v48 = vld [vmem:[#allocation2 + $0x3f0] sm:$0xf] }
  0x5d   : > { %2260 = vmatmul.bf16.gmra.mxu3 %v5888_v42  ;;  %2300 = vmatpush.bf16.msrb.mxu2 %v4715_v10  ;;  %7317 = vst [vmem:[#allocation24_spill] sm:$0xff] %v5948_v58  ;;  %v4763_v10 = vor.u32 %v5337_v6, %v4762_v63  ;;  %v5335_v36 = vld [vmem:[%s5810_s7 + $0x184] sm:$0xf0]  ;;  %v4818_v37 = vld [vmem:[%s5810_s7 + $0x200] sm:$0xf] }
  0x5e   : > { %2220 = vmatmul.bf16.gmra.mxu1 %v5890_v43  ;;  %2389 = vmatpush.bf16.msrb.mxu3 %v4779_v14  ;;  %7318 = vst [vmem:[#allocation25_spill] sm:$0xff] %v5950_v59  ;;  %v4827_v14 = vor.u32 %v5353_v11, %v4826_v7  ;;  %v5351_v39 = vld [vmem:[%s5810_s7 + $0x204] sm:$0xf0]  ;;  %v4882_v44 = vld [vmem:[%s5810_s7 + $0x280] sm:$0xf] }
  0x5f   : > { %2478 = vmatpush.bf16.msrb.mxu0 %v4843_v18  ;;  %2567 = vmatpush.bf16.msrb.mxu1 %v4907_v19  ;;  %v5259_v18 = vld [vmem:[#allocation2 + $0x3ac] sm:$0xf]  ;;  %v4166_v19 = vld [vmem:[#allocation2 + $0x168] sm:$0xf]  ;;  %7321 = vst [vmem:[#allocation28_spill] sm:$0xff] %v5970_v27 }
  0x60   : > { %v5966_v25 = vor.u32 %v5191_v20, %v4166_v19  ;;  %v5968_v26 = vor.u32 %v5259_v18, %v4456_v21  ;;  %v5367_v45 = vld [vmem:[%s5810_s7 + $0x284] sm:$0xf0]  ;;  %v5272_v49 = vld [vmem:[#allocation2 + $0x410] sm:$0xf0]  ;;  %v4202_v51 = vld [vmem:[#allocation2 + $0x1b0] sm:$0xf] }
  0x61   : > { %2301 = vmatpush.bf16.msrb.mxu2 %v4707_v34  ;;  %v4691_v34 = vor.u32 %v5319_v33, %v4690_v32  ;;  %v5268_v50 = vld [vmem:[#allocation2 + $0x3f4] sm:$0xf]  ;;  %v4492_v53 = vld [vmem:[#allocation2 + $0x414] sm:$0xf0]  ;;  %v5984_v60 = vor.u32 %v5272_v49, %v4490_v48  ;;  %v5002_v6 = vld [vmem:[%s5810_s7 + $0x370] sm:$0xf] }
  0x62   : > { %2390 = vmatpush.bf16.msrb.mxu3 %v4771_v38  ;;  %7320 = vst [vmem:[#allocation27_spill] sm:$0xff] %v5968_v26  ;;  %v4755_v38 = vor.u32 %v5335_v36, %v4754_v35  ;;  %v5200_v52 = vld [vmem:[#allocation2 + $0x1d0] sm:$0xf0]  ;;  %v4204_v55 = vld [vmem:[#allocation2 + $0x1d4] sm:$0xf0] }
  0x63   : > { %2479 = vmatpush.bf16.msrb.mxu0 %v4835_v46  ;;  %2568 = vmatpush.bf16.msrb.mxu1 %v4899_v47  ;;  %v4819_v46 = vor.u32 %v5351_v39, %v4818_v37  ;;  %v4883_v47 = vor.u32 %v5367_v45, %v4882_v44  ;;  %v5196_v54 = vld [vmem:[#allocation2 + $0x1b4] sm:$0xf]  ;;  %7322 = vst [vmem:[#allocation29_spill] sm:$0xff] %v5984_v60  ;;  %v5397_v7 = vld [vmem:[%s5810_s7 + $0x374] sm:$0xf0] }
  0x64   : > { %v5986_v61 = vor.u32 %v5200_v52, %v4202_v51  ;;  %v5990_v63 = vor.u32 %v5196_v54, %v4204_v55  ;;  %v5003_v11 = vor.u32 %v5397_v7, %v5002_v6  ;;  %v5413_v12 = vld [vmem:[%s5810_s7 + $0x3f4] sm:$0xf0]  ;;  %v5281_v17 = vld [vmem:[#allocation2 + $0x458] sm:$0xf0]  ;;  %v4528_v22 = vld [vmem:[#allocation2 + $0x45c] sm:$0xf0] }
  0x65   : > { %2302 = vmatpush.bf16.msrb.mxu2 %v4699_v62  ;;  %v5988_v62 = vor.u32 %v5268_v50, %v4492_v53  ;;  %v4526_v16 = vld [vmem:[#allocation2 + $0x438] sm:$0xf]  ;;  %v5277_v19 = vld [vmem:[#allocation2 + $0x43c] sm:$0xf]  ;;  %v4240_v32 = vld [vmem:[#allocation2 + $0x21c] sm:$0xf0] }
  0x66   : > { %2391 = vmatpush.bf16.msrb.mxu3 %v4763_v10  ;;  %7324 = vst [vmem:[#allocation31_spill] sm:$0xff] %v5990_v63  ;;  %v5066_v10 = vld [vmem:[%s5810_s7 + $0x3f0] sm:$0xf]  ;;  %v4238_v20 = vld [vmem:[#allocation2 + $0x1f8] sm:$0xf]  ;;  %v6002_v33 = vor.u32 %v5281_v17, %v4526_v16  ;;  %v6006_v35 = vor.u32 %v5277_v19, %v4528_v22 }
  0x67   : > { %2480 = vmatpush.bf16.msrb.mxu0 %v4827_v14  ;;  %2569 = vmatpush.bf16.msrb.mxu1 %v4891_v15  ;;  %7323 = vst [vmem:[#allocation30_spill] sm:$0xff] %v5988_v62  ;;  %v5067_v13 = vor.u32 %v5413_v12, %v5066_v10  ;;  %v5130_v14 = vld [vmem:[%s5810_s7 + $0x470] sm:$0xf]  ;;  %v5429_v15 = vld [vmem:[%s5810_s7 + $0x474] sm:$0xf0] }
  0x68   : > { %v5131_v18 = vor.u32 %v5429_v15, %v5130_v14  ;;  %v5209_v21 = vld [vmem:[#allocation2 + $0x218] sm:$0xf0]  ;;  %7325 = vst [vmem:[#allocation32_spill] sm:$0xff] %v6002_v33  ;;  %v5300_v37 = vld [vmem:[%s5810_s7 + $0x74] sm:$0xf] }
  0x69   : > { %2303 = vmatpush.bf16.msrb.mxu2 %v4691_v34  ;;  %v5205_v23 = vld [vmem:[#allocation2 + $0x1fc] sm:$0xf]  ;;  %v6004_v34 = vor.u32 %v5209_v21, %v4238_v20  ;;  %7326 = vst [vmem:[#allocation33_spill] sm:$0xff] %v6006_v35  ;;  %v3994_v44 = vld [vmem:[#allocation2 + $0x8] sm:$0xf] }
  0x6a   : > { %2392 = vmatpush.bf16.msrb.mxu3 %v4755_v38  ;;  %v6008_v36 = vor.u32 %v5205_v23, %v4240_v32  ;;  %v4620_v38 = vld [vmem:[%s5810_s7 + $0x78] sm:$0xf0]  ;;  %v5147_v45 = vld [vmem:[#allocation2 + $0x28] sm:$0xf0]  ;;  %v5148_v48 = vld [vmem:[#allocation2 + $0x30] sm:$0xf0] }
  0x6b   : > { %2481 = vmatpush.bf16.msrb.mxu0 %v4819_v46  ;;  %2570 = vmatpush.bf16.msrb.mxu1 %v4883_v47  ;;  %v4623_v39 = vor.u32 %v5300_v37, %v4620_v38  ;;  %v5143_v46 = vld [vmem:[#allocation2 + $0xc] sm:$0xf]  ;;  %v4002_v47 = vld [vmem:[#allocation2 + $0x10] sm:$0xf]  ;;  %v5144_v50 = vld [vmem:[#allocation2 + $0x14] sm:$0xf]  ;;  %v6016_v52 = vor.u32 %v5147_v45, %v3994_v44 }
  0x6c   : > { %2176 = vmatmul.bf16.gmra.mxu2 %v5904_v0  ;;  %2136 = vmatmul.bf16.gmra.mxu0 %v5906_v1  ;;  %7327 = vst [vmem:[#allocation34_spill] sm:$0xff] %v6008_v36  ;;  %v3996_v49 = vld [vmem:[#allocation2 + $0x2c] sm:$0xf0]  ;;  %v4004_v51 = vld [vmem:[#allocation2 + $0x34] sm:$0xf0]  ;;  %v6018_v53 = vor.u32 %v5148_v48, %v4002_v47 }
  0x6d   : > { %2265 = vmatmul.bf16.gmra.mxu3 %v5908_v2  ;;  %2652 = vmatpush.bf16.msra.mxu2 %v5003_v11  ;;  %7328 = vst [vmem:[#allocation35_spill] sm:$0xff] %v6016_v52  ;;  %v6020_v55 = vor.u32 %v5143_v46, %v3996_v49  ;;  %v6022_v6 = vor.u32 %v5144_v50, %v4004_v51  ;;  %v4994_v11 = vld [vmem:[%s5810_s7 + $0x360] sm:$0xf]  ;;  %v5395_v12 = vld [vmem:[%s5810_s7 + $0x364] sm:$0xf0] }
  0x6e   : > { %2225 = vmatmul.bf16.gmra.mxu1 %v5910_v5  ;;  %2741 = vmatpush.bf16.msra.mxu3 %v5067_v13  ;;  %7329 = vst [vmem:[#allocation36_spill] sm:$0xff] %v6018_v53  ;;  %v5058_v13 = vld [vmem:[%s5810_s7 + $0x3e0] sm:$0xf]  ;;  %v4995_v14 = vor.u32 %v5395_v12, %v4994_v11  ;;  %v5411_v15 = vld [vmem:[%s5810_s7 + $0x3e4] sm:$0xf0] }
  0x6f   : > { %2830 = vmatpush.bf16.msra.mxu0 %v5131_v18  ;;  %2919 = vmatpush.bf16.msra.mxu1 %v4623_v39  ;;  %7330 = vst [vmem:[#allocation37_spill] sm:$0xff] %v6020_v55  ;;  %v5059_v17 = vor.u32 %v5411_v15, %v5058_v13  ;;  %v5122_v23 = vld [vmem:[%s5810_s7 + $0x460] sm:$0xf]  ;;  %v5427_v32 = vld [vmem:[%s5810_s7 + $0x464] sm:$0xf0] }
  0x70   : > { %7331 = vst [vmem:[#allocation38_spill] sm:$0xff] %v6022_v6  ;;  %v4030_v37 = vld [vmem:[#allocation2 + $0x50] sm:$0xf]  ;;  %v5156_v38 = vld [vmem:[#allocation2 + $0x70] sm:$0xf0]  ;;  %v5123_v39 = vor.u32 %v5427_v32, %v5122_v23 }
  0x71   : > { %2653 = vmatpush.bf16.msra.mxu2 %v4995_v14  ;;  %v5152_v44 = vld [vmem:[#allocation2 + $0x54] sm:$0xf]  ;;  %v4038_v45 = vld [vmem:[#allocation2 + $0x58] sm:$0xf]  ;;  %v5157_v46 = vld [vmem:[#allocation2 + $0x78] sm:$0xf0] }
  0x72   : > { %2742 = vmatpush.bf16.msra.mxu3 %v5059_v17  ;;  %v4032_v47 = vld [vmem:[#allocation2 + $0x74] sm:$0xf0]  ;;  %v5153_v48 = vld [vmem:[#allocation2 + $0x5c] sm:$0xf]  ;;  %v4040_v49 = vld [vmem:[#allocation2 + $0x7c] sm:$0xf0] }
  0x73   : > { %2831 = vmatpush.bf16.msra.mxu0 %v5123_v39  ;;  %v6046_v13 = vor.u32 %v5152_v44, %v4032_v47  ;;  %v6048_v14 = vor.u32 %v5153_v48, %v4040_v49  ;;  %v5298_v15 = vld [vmem:[%s5810_s7 + $0x64] sm:$0xf]  ;;  %v4066_v44 = vld [vmem:[#allocation2 + $0x98] sm:$0xf]  ;;  %v4074_v47 = vld [vmem:[#allocation2 + $0xa0] sm:$0xf] }
  0x74   : > { %v5166_v48 = vld [vmem:[#allocation2 + $0xc0] sm:$0xf0]  ;;  %v4068_v49 = vld [vmem:[#allocation2 + $0xbc] sm:$0xf0]  ;;  %v4604_v42 = vld [vmem:[%s5810_s7 + $0x58] sm:$0xf0] }
  0x75   : > { %7334 = vst [vmem:[#allocation41_spill] sm:$0xff] %v6046_v13  ;;  %v5211_v43 = vld [vmem:[#allocation2 + $0x228] sm:$0xf0]  ;;  %v5229_v0 = vld [vmem:[#allocation2 + $0x2b8] sm:$0xf0] }
  0x76   : > { %7335 = vst [vmem:[#allocation42_spill] sm:$0xff] %v6048_v14  ;;  %v5225_v40 = vld [vmem:[#allocation2 + $0x29c] sm:$0xf] }
  0x7c   : > { %2181 = vmatmul.bf16.gmra.mxu2 %v5924_v28  ;;  %2141 = vmatmul.bf16.gmra.mxu0 %v5926_v29  ;;  %v4326_v28 = vld [vmem:[#allocation2 + $0x298] sm:$0xf] }
  0x7d   : > { %2270 = vmatmul.bf16.gmra.mxu3 %v5928_v30 }
  0x7e   : > { %2230 = vmatmul.bf16.gmra.mxu1 %v5930_v31 }
  0x8c   : > { %2186 = vmatmul.bf16.gmra.mxu2 %v5944_v56  ;;  %2146 = vmatmul.bf16.gmra.mxu0 %v5946_v57  ;;  %v5224_v56 = vld [vmem:[#allocation2 + $0x294] sm:$0xf] }
  0x8d   : > { %2275 = vmatmul.bf16.gmra.mxu3 %v5948_v58  ;;  %v5170_v58 = vld [vmem:[#allocation2 + $0xe4] sm:$0xf] }
  0x8e   : > { %2235 = vmatmul.bf16.gmra.mxu1 %v5950_v59 }
  0x9c   : > { %2191 = vmatmul.bf16.gmra.mxu2 %v5964_v24  ;;  %2151 = vmatmul.bf16.gmra.mxu0 %v5966_v25  ;;  %v5419_v24 = vld [vmem:[%s5810_s7 + $0x424] sm:$0xf0] }
  0x9d   : > { %2280 = vmatmul.bf16.gmra.mxu3 %v5968_v26 }
  0x9e   : > { %2240 = vmatmul.bf16.gmra.mxu1 %v5970_v27 }
  0xac   : > { %2196 = vmatmul.bf16.gmra.mxu2 %v5984_v60  ;;  %2156 = vmatmul.bf16.gmra.mxu0 %v5986_v61  ;;  %v5090_v60 = vld [vmem:[%s5810_s7 + $0x420] sm:$0xf] }
  0xad   : > { %2285 = vmatmul.bf16.gmra.mxu3 %v5988_v62  ;;  %v5174_v62 = vld [vmem:[#allocation2 + $0x100] sm:$0xf0] }
  0xae   : > { %2245 = vmatmul.bf16.gmra.mxu1 %v5990_v63 }
  0xbc   : > { %2201 = vmatmul.bf16.gmra.mxu2 %v6002_v33  ;;  %2161 = vmatmul.bf16.gmra.mxu0 %v6004_v34 }
  0xbd   : > { %2290 = vmatmul.bf16.gmra.mxu3 %v6006_v35  ;;  %v5425_v35 = vld [vmem:[%s5810_s7 + $0x454] sm:$0xf0] }
  0xbe   : > { %2250 = vmatmul.bf16.gmra.mxu1 %v6008_v36 }
  0xc9   : > { %v2127_v54 = vpop.f32.mrf.mxu0 }
  0xcb   : > { %v2216_v7 = vpop.f32.mrf.mxu1 }
  0xcc   : > { %v6024_v10 = vadd.f32 %v2216_v7, %v2127_v54  ;;  %2304 = vmatmul.bf16.vlgmr.msrb.gmra.mxu2 %v6016_v52  ;;  %2482 = vmatmul.bf16.vlgmr.msrb.gmra.mxu0 %v6018_v53  ;;  %v6040_v54 = vor.u32 %v5156_v38, %v4030_v37  ;;  %v6042_v7 = vor.u32 %v5157_v46, %v4038_v45  ;;  %v5165_v45 = vld [vmem:[#allocation2 + $0xb8] sm:$0xf0] }
  0xcd   : > { %2393 = vmatmul.bf16.vlgmr.msrb.gmra.mxu3 %v6020_v55  ;;  %v5161_v46 = vld [vmem:[#allocation2 + $0x9c] sm:$0xf] }
  0xce   : > { %2571 = vmatmul.bf16.vlgmr.msrb.gmra.mxu1 %v6022_v6  ;;  %7332 = vst [vmem:[#allocation39_spill] sm:$0xff] %v6040_v54  ;;  %v5114_v6 = vld [vmem:[%s5810_s7 + $0x450] sm:$0xf]  ;;  %v4588_v55 = vld [vmem:[%s5810_s7 + $0x38] sm:$0xf0] }
  0xcf   : > { %v2167_v16 = vpop.f32.mrf.mxu2  ;;  %7333 = vst [vmem:[#allocation40_spill] sm:$0xff] %v6042_v7  ;;  %v5115_v26 = vor.u32 %v5425_v35, %v5114_v6  ;;  %v5296_v6 = vld [vmem:[%s5810_s7 + $0x54] sm:$0xf] }
  0xd0   : > { %v2256_v18 = vpop.f32.mrf.mxu3  ;;  %v4607_v36 = vor.u32 %v5296_v6, %v4604_v42  ;;  %v4138_v42 = vld [vmem:[#allocation2 + $0x128] sm:$0xf] }
  0xd1   : > { %v6034_v19 = vadd.f32 %v2256_v18, %v2167_v16  ;;  %v2129_v20 = vpop.f32.mrf.mxu0  ;;  %v4612_v16 = vld [vmem:[%s5810_s7 + $0x68] sm:$0xf0]  ;;  %2832 = vmatpush.bf16.msra.mxu0 %v5115_v26 }
  0xd2   : > { %v4615_v18 = vor.u32 %v5298_v15, %v4612_v16  ;;  %v6062_v16 = vor.u32 %v5165_v45, %v4066_v44  ;;  %v4986_v44 = vld [vmem:[%s5810_s7 + $0x350] sm:$0xf]  ;;  %v5393_v45 = vld [vmem:[%s5810_s7 + $0x354] sm:$0xf0] }
  0xd3   : > { %v2218_v21 = vpop.f32.mrf.mxu1 }
  0xd4   : > { %v6036_v22 = vadd.f32 %v2218_v21, %v2129_v20  ;;  %2920 = vmatpush.bf16.msra.mxu1 %v4615_v18  ;;  %7336 = vst [vmem:[#allocation43_spill] sm:$0xff] %v6062_v16 }
  0xd7   : > { %v2169_v50 = vpop.f32.mrf.mxu2 }
  0xd8   : > { %v2258_v51 = vpop.f32.mrf.mxu3  ;;  %2921 = vmatpush.bf16.msra.mxu1 %v4607_v36 }
  0xd9   : > { %v6044_v11 = vadd.f32 %v2258_v51, %v2169_v50  ;;  %v2132_v12 = vpop.f32.mrf.mxu0  ;;  %v5162_v50 = vld [vmem:[#allocation2 + $0xa4] sm:$0xf]  ;;  %v4076_v51 = vld [vmem:[#allocation2 + $0xc4] sm:$0xf0] }
  0xdb   : > { %v2221_v17 = vpop.f32.mrf.mxu1 }
  0xdc   : > { %v6052_v20 = vadd.f32 %v2221_v17, %v2132_v12  ;;  %2309 = vmatmul.bf16.gmra.mxu2 %v6040_v54  ;;  %2487 = vmatmul.bf16.gmra.mxu0 %v6042_v7  ;;  %v6064_v17 = vor.u32 %v5166_v48, %v4074_v47  ;;  %v5050_v47 = vld [vmem:[%s5810_s7 + $0x3d0] sm:$0xf]  ;;  %v5409_v48 = vld [vmem:[%s5810_s7 + $0x3d4] sm:$0xf0]  ;;  %v5206_v54 = vld [vmem:[#allocation2 + $0x204] sm:$0xf] }
  0xdd   : > { %2398 = vmatmul.bf16.gmra.mxu3 %v6046_v13  ;;  %v4254_v13 = vld [vmem:[#allocation2 + $0x208] sm:$0xf] }
  0xde   : > { %2576 = vmatmul.bf16.gmra.mxu1 %v6048_v14  ;;  %7337 = vst [vmem:[#allocation44_spill] sm:$0xff] %v6064_v17 }
  0xdf   : > { %v2172_v21 = vpop.f32.mrf.mxu2 }
  0xe0   : > { %v2261_v23 = vpop.f32.mrf.mxu3 }
  0xe1   : > { %v6058_v32 = vadd.f32 %v2261_v23, %v2172_v21  ;;  %v2134_v37 = vpop.f32.mrf.mxu0  ;;  %v6068_v23 = vor.u32 %v5161_v46, %v4068_v49  ;;  %v4987_v46 = vor.u32 %v5393_v45, %v4986_v44  ;;  %v4110_v44 = vld [vmem:[#allocation2 + $0xe8] sm:$0xf]  ;;  %v5175_v45 = vld [vmem:[#allocation2 + $0x108] sm:$0xf0] }
  0xe3   : > { %v2223_v38 = vpop.f32.mrf.mxu1  ;;  %7338 = vst [vmem:[#allocation45_spill] sm:$0xff] %v6068_v23  ;;  %2654 = vmatpush.bf16.msra.mxu2 %v4987_v46  ;;  %v4112_v46 = vld [vmem:[#allocation2 + $0x10c] sm:$0xf0] }
  0xe4   : > { %v6060_v39 = vadd.f32 %v2223_v38, %v2134_v37  ;;  %v6070_v37 = vor.u32 %v5162_v50, %v4076_v51  ;;  %v5051_v50 = vor.u32 %v5409_v48, %v5050_v47  ;;  %v4104_v47 = vld [vmem:[#allocation2 + $0x104] sm:$0xf0]  ;;  %v5171_v48 = vld [vmem:[#allocation2 + $0xec] sm:$0xf] }
  0xe5   : > { %v6094_v2 = vor.u32 %v5170_v58, %v4104_v47  ;;  %v6096_v35 = vor.u32 %v5171_v48, %v4112_v46  ;;  %v4146_v47 = vld [vmem:[#allocation2 + $0x130] sm:$0xf]  ;;  %v5184_v48 = vld [vmem:[#allocation2 + $0x150] sm:$0xf0] }
  0xe6   : > { %7339 = vst [vmem:[#allocation46_spill] sm:$0xff] %v6070_v37  ;;  %2743 = vmatpush.bf16.msra.mxu3 %v5051_v50  ;;  %v4140_v46 = vld [vmem:[#allocation2 + $0x14c] sm:$0xf0] }
  0xe7   : > { %v2174_v12 = vpop.f32.mrf.mxu2  ;;  %7342 = vst [vmem:[#allocation49_spill] sm:$0xff] %v6094_v2 }
  0xe8   : > { %v2263_v15 = vpop.f32.mrf.mxu3  ;;  %7343 = vst [vmem:[#allocation50_spill] sm:$0xff] %v6096_v35 }
  0xe9   : > { %v6066_v18 = vadd.f32 %v2263_v15, %v2174_v12  ;;  %v2137_v21 = vpop.f32.mrf.mxu0 }
  0xeb   : > { %v2226_v38 = vpop.f32.mrf.mxu1 }
  0xec   : > { %v6072_v14 = vadd.f32 %v2226_v38, %v2137_v21  ;;  %2314 = vmatmul.bf16.gmra.mxu2 %v6062_v16  ;;  %2492 = vmatmul.bf16.gmra.mxu0 %v6064_v17  ;;  %v4596_v16 = vld [vmem:[%s5810_s7 + $0x48] sm:$0xf0] }
  0xed   : > { %2403 = vmatmul.bf16.gmra.mxu3 %v6068_v23 }
  0xee   : > { %2581 = vmatmul.bf16.gmra.mxu1 %v6070_v37  ;;  %v4102_v37 = vld [vmem:[#allocation2 + $0xe0] sm:$0xf] }
  0xef   : > { %v2177_v49 = vpop.f32.mrf.mxu2  ;;  %v6088_v50 = vor.u32 %v5174_v62, %v4102_v37 }
  0xf0   : > { %v2266_v51 = vpop.f32.mrf.mxu3 }
  0xf1   : > { %v6082_v12 = vadd.f32 %v2266_v51, %v2177_v49  ;;  %v2139_v15 = vpop.f32.mrf.mxu0  ;;  %7340 = vst [vmem:[#allocation47_spill] sm:$0xff] %v6088_v50 }
  0xf3   : > { %v2228_v21 = vpop.f32.mrf.mxu1 }
  0xf4   : > { %v6084_v38 = vadd.f32 %v2228_v21, %v2139_v15  ;;  %v6090_v15 = vor.u32 %v5175_v45, %v4110_v44 }
  0xf6   : > { %7341 = vst [vmem:[#allocation48_spill] sm:$0xff] %v6090_v15 }
  0xf7   : > { %v2179_v49 = vpop.f32.mrf.mxu2 }
  0xf8   : > { %v2268_v51 = vpop.f32.mrf.mxu3 }
  0xf9   : > { %v6092_v21 = vadd.f32 %v2268_v51, %v2179_v49  ;;  %v2142_v30 = vpop.f32.mrf.mxu0  ;;  %v5180_v49 = vld [vmem:[#allocation2 + $0x134] sm:$0xf]  ;;  %v4148_v51 = vld [vmem:[#allocation2 + $0x154] sm:$0xf0] }
  0xfa   : > { %v6118_v27 = vor.u32 %v5180_v49, %v4148_v51 }
  0xfb   : > { %v2231_v8 = vpop.f32.mrf.mxu1 }
  0xfc   : > { %v6100_v63 = vadd.f32 %v2231_v8, %v2142_v30  ;;  %2319 = vmatmul.bf16.gmra.mxu2 %v6088_v50  ;;  %2497 = vmatmul.bf16.gmra.mxu0 %v6090_v15  ;;  %v5183_v8 = vld [vmem:[#allocation2 + $0x148] sm:$0xf0]  ;;  %7347 = vst [vmem:[#allocation54_spill] sm:$0xff] %v6118_v27 }
  0xfd   : > { %2408 = vmatmul.bf16.gmra.mxu3 %v6094_v2  ;;  %v5179_v30 = vld [vmem:[#allocation2 + $0x12c] sm:$0xf]  ;;  %v5188_v2 = vld [vmem:[#allocation2 + $0x174] sm:$0xf] }
  0xfe   : > { %2586 = vmatmul.bf16.gmra.mxu1 %v6096_v35  ;;  %v6110_v35 = vor.u32 %v5183_v8, %v4138_v42  ;;  %v4978_v42 = vld [vmem:[%s5810_s7 + $0x340] sm:$0xf]  ;;  %v5391_v8 = vld [vmem:[%s5810_s7 + $0x344] sm:$0xf0] }
  0xff   : > { %v2182_v26 = vpop.f32.mrf.mxu2 }
 0x100   : > { %v2271_v58 = vpop.f32.mrf.mxu3  ;;  %7344 = vst [vmem:[#allocation51_spill] sm:$0xff] %v6110_v35 }
 0x101   : > { %v6106_v62 = vadd.f32 %v2271_v58, %v2182_v26  ;;  %v2144_v37 = vpop.f32.mrf.mxu0  ;;  %v6112_v26 = vor.u32 %v5184_v48, %v4146_v47  ;;  %v5042_v47 = vld [vmem:[%s5810_s7 + $0x3c0] sm:$0xf]  ;;  %v5407_v48 = vld [vmem:[%s5810_s7 + $0x3c4] sm:$0xf0] }
 0x102   : > { %v5043_v49 = vor.u32 %v5407_v48, %v5042_v47  ;;  %v4176_v47 = vld [vmem:[#allocation2 + $0x194] sm:$0xf0]  ;;  %v5189_v48 = vld [vmem:[#allocation2 + $0x17c] sm:$0xf] }
 0x103   : > { %v2233_v44 = vpop.f32.mrf.mxu1  ;;  %7345 = vst [vmem:[#allocation52_spill] sm:$0xff] %v6112_v26  ;;  %v6142_v17 = vor.u32 %v5188_v2, %v4176_v47  ;;  %v4218_v47 = vld [vmem:[#allocation2 + $0x1c0] sm:$0xf] }
 0x104   : > { %v6108_v45 = vadd.f32 %v2233_v44, %v2144_v37  ;;  %v6116_v44 = vor.u32 %v5179_v30, %v4140_v46  ;;  %v4979_v30 = vor.u32 %v5391_v8, %v4978_v42  ;;  %2744 = vmatpush.bf16.msra.mxu3 %v5043_v49  ;;  %v4182_v42 = vld [vmem:[#allocation2 + $0x178] sm:$0xf]  ;;  %v5193_v8 = vld [vmem:[#allocation2 + $0x198] sm:$0xf0] }
 0x105   : > { %7350 = vst [vmem:[#allocation57_spill] sm:$0xff] %v6142_v17 }
 0x106   : > { %7346 = vst [vmem:[#allocation53_spill] sm:$0xff] %v6116_v44  ;;  %2655 = vmatpush.bf16.msra.mxu2 %v4979_v30  ;;  %v4184_v30 = vld [vmem:[#allocation2 + $0x19c] sm:$0xf0] }
 0x107   : > { %v2184_v6 = vpop.f32.mrf.mxu2 }
 0x108   : > { %v2273_v36 = vpop.f32.mrf.mxu3 }
 0x109   : > { %v6114_v58 = vadd.f32 %v2273_v36, %v2184_v6  ;;  %v2147_v37 = vpop.f32.mrf.mxu0 }
 0x10b   : > { %v2236_v59 = vpop.f32.mrf.mxu1 }
 0x10c   : > { %v6120_v15 = vadd.f32 %v2236_v59, %v2147_v37  ;;  %2324 = vmatmul.bf16.gmra.mxu2 %v6110_v35  ;;  %2502 = vmatmul.bf16.gmra.mxu0 %v6112_v26  ;;  %v5106_v26 = vld [vmem:[%s5810_s7 + $0x440] sm:$0xf]  ;;  %v5423_v35 = vld [vmem:[%s5810_s7 + $0x444] sm:$0xf0] }
 0x10d   : > { %2413 = vmatmul.bf16.gmra.mxu3 %v6116_v44  ;;  %v5192_v44 = vld [vmem:[#allocation2 + $0x190] sm:$0xf0]  ;;  %v5107_v50 = vor.u32 %v5423_v35, %v5106_v26  ;;  %v6144_v35 = vor.u32 %v5189_v48, %v4184_v30  ;;  %v5294_v26 = vld [vmem:[%s5810_s7 + $0x44] sm:$0xf]  ;;  %v4212_v30 = vld [vmem:[#allocation2 + $0x1dc] sm:$0xf0] }
 0x10e   : > { %2591 = vmatmul.bf16.gmra.mxu1 %v6118_v27  ;;  %v4174_v27 = vld [vmem:[#allocation2 + $0x170] sm:$0xf]  ;;  %v4599_v5 = vor.u32 %v5294_v26, %v4596_v16  ;;  %v4210_v16 = vld [vmem:[#allocation2 + $0x1b8] sm:$0xf]  ;;  %v5202_v48 = vld [vmem:[#allocation2 + $0x1e0] sm:$0xf0] }
 0x10f   : > { %v2187_v46 = vpop.f32.mrf.mxu2  ;;  %2833 = vmatpush.bf16.msra.mxu0 %v5107_v50  ;;  %v6136_v49 = vor.u32 %v5192_v44, %v4174_v27  ;;  %7351 = vst [vmem:[#allocation58_spill] sm:$0xff] %v6144_v35 }
 0x110   : > { %v2276_v51 = vpop.f32.mrf.mxu3  ;;  %2922 = vmatpush.bf16.msra.mxu1 %v4599_v5 }
 0x111   : > { %v6130_v59 = vadd.f32 %v2276_v51, %v2187_v46  ;;  %v2149_v6 = vpop.f32.mrf.mxu0  ;;  %7348 = vst [vmem:[#allocation55_spill] sm:$0xff] %v6136_v49 }
 0x113   : > { %v2238_v36 = vpop.f32.mrf.mxu1 }
 0x114   : > { %v6132_v37 = vadd.f32 %v2238_v36, %v2149_v6  ;;  %v6138_v6 = vor.u32 %v5193_v8, %v4182_v42 }
 0x116   : > { %7349 = vst [vmem:[#allocation56_spill] sm:$0xff] %v6138_v6 }
 0x117   : > { %v2189_v46 = vpop.f32.mrf.mxu2 }
 0x118   : > { %v2278_v51 = vpop.f32.mrf.mxu3 }
 0x119   : > { %v6140_v36 = vadd.f32 %v2278_v51, %v2189_v46  ;;  %v2152_v31 = vpop.f32.mrf.mxu0  ;;  %v5198_v46 = vld [vmem:[#allocation2 + $0x1c4] sm:$0xf]  ;;  %v4220_v51 = vld [vmem:[#allocation2 + $0x1e4] sm:$0xf0] }
 0x11b   : > { %v2241_v23 = vpop.f32.mrf.mxu1 }
 0x11c   : > { %v6148_v7 = vadd.f32 %v2241_v23, %v2152_v31  ;;  %2329 = vmatmul.bf16.gmra.mxu2 %v6136_v49  ;;  %2507 = vmatmul.bf16.gmra.mxu0 %v6138_v6  ;;  %v5201_v31 = vld [vmem:[#allocation2 + $0x1d8] sm:$0xf0]  ;;  %v6166_v6 = vor.u32 %v5198_v46, %v4220_v51 }
 0x11d   : > { %2418 = vmatmul.bf16.gmra.mxu3 %v6142_v17  ;;  %v5197_v23 = vld [vmem:[#allocation2 + $0x1bc] sm:$0xf] }
 0x11e   : > { %2596 = vmatmul.bf16.gmra.mxu1 %v6144_v35  ;;  %v6158_v35 = vor.u32 %v5201_v31, %v4210_v16  ;;  %7355 = vst [vmem:[#allocation62_spill] sm:$0xff] %v6166_v6  ;;  %v4970_v16 = vld [vmem:[%s5810_s7 + $0x330] sm:$0xf]  ;;  %v5389_v31 = vld [vmem:[%s5810_s7 + $0x334] sm:$0xf0] }
 0x11f   : > { %v2192_v27 = vpop.f32.mrf.mxu2 }
 0x120   : > { %v2281_v2 = vpop.f32.mrf.mxu3  ;;  %7352 = vst [vmem:[#allocation59_spill] sm:$0xff] %v6158_v35 }
 0x121   : > { %v6154_v50 = vadd.f32 %v2281_v2, %v2192_v27  ;;  %v2154_v44 = vpop.f32.mrf.mxu0  ;;  %v6160_v27 = vor.u32 %v5202_v48, %v4218_v47  ;;  %v5034_v47 = vld [vmem:[%s5810_s7 + $0x3b0] sm:$0xf]  ;;  %v5405_v48 = vld [vmem:[%s5810_s7 + $0x3b4] sm:$0xf0] }
 0x122   : > { %v5035_v46 = vor.u32 %v5405_v48, %v5034_v47  ;;  %v5207_v47 = vld [vmem:[#allocation2 + $0x20c] sm:$0xf] }
 0x123   : > { %v2243_v42 = vpop.f32.mrf.mxu1  ;;  %7353 = vst [vmem:[#allocation60_spill] sm:$0xff] %v6160_v27 }
 0x124   : > { %v6156_v8 = vadd.f32 %v2243_v42, %v2154_v44  ;;  %v6164_v42 = vor.u32 %v5197_v23, %v4212_v30  ;;  %v4971_v23 = vor.u32 %v5389_v31, %v4970_v16  ;;  %2745 = vmatpush.bf16.msra.mxu3 %v5035_v46  ;;  %v4248_v31 = vld [vmem:[#allocation2 + $0x224] sm:$0xf0] }
 0x125   : > { %v6190_v53 = vor.u32 %v5206_v54, %v4248_v31 }
 0x126   : > { %7354 = vst [vmem:[#allocation61_spill] sm:$0xff] %v6164_v42  ;;  %2656 = vmatpush.bf16.msra.mxu2 %v4971_v23  ;;  %v4256_v23 = vld [vmem:[#allocation2 + $0x22c] sm:$0xf0] }
 0x127   : > { %v2194_v26 = vpop.f32.mrf.mxu2  ;;  %7358 = vst [vmem:[#allocation65_spill] sm:$0xff] %v6190_v53  ;;  %v6192_v52 = vor.u32 %v5207_v47, %v4256_v23  ;;  %v4282_v23 = vld [vmem:[#allocation2 + $0x248] sm:$0xf] }
 0x128   : > { %v2283_v5 = vpop.f32.mrf.mxu3 }
 0x129   : > { %v6162_v2 = vadd.f32 %v2283_v5, %v2194_v26  ;;  %v2157_v44 = vpop.f32.mrf.mxu0  ;;  %7359 = vst [vmem:[#allocation66_spill] sm:$0xff] %v6192_v52 }
 0x12b   : > { %v2246_v49 = vpop.f32.mrf.mxu1 }
 0x12c   : > { %v6168_v17 = vadd.f32 %v2246_v49, %v2157_v44  ;;  %2334 = vmatmul.bf16.gmra.mxu2 %v6158_v35  ;;  %2512 = vmatmul.bf16.gmra.mxu0 %v6160_v27  ;;  %v4246_v27 = vld [vmem:[#allocation2 + $0x200] sm:$0xf]  ;;  %v5098_v35 = vld [vmem:[%s5810_s7 + $0x430] sm:$0xf] }
 0x12d   : > { %2423 = vmatmul.bf16.gmra.mxu3 %v6164_v42  ;;  %v5421_v42 = vld [vmem:[%s5810_s7 + $0x434] sm:$0xf0] }
 0x12e   : > { %2601 = vmatmul.bf16.gmra.mxu1 %v6166_v6  ;;  %v5210_v6 = vld [vmem:[#allocation2 + $0x220] sm:$0xf0]  ;;  %v5099_v16 = vor.u32 %v5421_v42, %v5098_v35 }
 0x12f   : > { %v2197_v30 = vpop.f32.mrf.mxu2  ;;  %v6184_v46 = vor.u32 %v5210_v6, %v4246_v27 }
 0x130   : > { %v2286_v51 = vpop.f32.mrf.mxu3  ;;  %2834 = vmatpush.bf16.msra.mxu0 %v5099_v16  ;;  %v5292_v16 = vld [vmem:[%s5810_s7 + $0x34] sm:$0xf] }
 0x131   : > { %v6178_v49 = vadd.f32 %v2286_v51, %v2197_v30  ;;  %v2159_v26 = vpop.f32.mrf.mxu0  ;;  %7356 = vst [vmem:[#allocation63_spill] sm:$0xff] %v6184_v46  ;;  %v6186_v51 = vor.u32 %v5211_v43, %v4254_v13  ;;  %v4591_v43 = vor.u32 %v5292_v16, %v4588_v55 }
 0x133   : > { %v2248_v5 = vpop.f32.mrf.mxu1  ;;  %7357 = vst [vmem:[#allocation64_spill] sm:$0xff] %v6186_v51  ;;  %2923 = vmatpush.bf16.msra.mxu1 %v4591_v43 }
 0x134   : > { %v6180_v44 = vadd.f32 %v2248_v5, %v2159_v26 }
 0x137   : > { %v2199_v48 = vpop.f32.mrf.mxu2 }
 0x138   : > { %v2288_v30 = vpop.f32.mrf.mxu3 }
 0x139   : > { %v6188_v26 = vadd.f32 %v2288_v30, %v2199_v48  ;;  %v2162_v5 = vpop.f32.mrf.mxu0  ;;  %v5219_v48 = vld [vmem:[#allocation2 + $0x268] sm:$0xf0] }
 0x13a   : > { %v5215_v30 = vld [vmem:[#allocation2 + $0x24c] sm:$0xf]  ;;  %v6206_v43 = vor.u32 %v5219_v48, %v4282_v23  ;;  %v4962_v23 = vld [vmem:[%s5810_s7 + $0x320] sm:$0xf]  ;;  %v5387_v48 = vld [vmem:[%s5810_s7 + $0x324] sm:$0xf0] }
 0x13b   : > { %v2251_v35 = vpop.f32.mrf.mxu1 }
 0x13c   : > { %v6194_v42 = vadd.f32 %v2251_v35, %v2162_v5  ;;  %2339 = vmatmul.bf16.gmra.mxu2 %v6184_v46  ;;  %2517 = vmatmul.bf16.gmra.mxu0 %v6186_v51  ;;  %v4290_v5 = vld [vmem:[#allocation2 + $0x250] sm:$0xf]  ;;  %v5220_v35 = vld [vmem:[#allocation2 + $0x270] sm:$0xf0]  ;;  %7360 = vst [vmem:[#allocation67_spill] sm:$0xff] %v6206_v43 }
 0x13d   : > { %2428 = vmatmul.bf16.gmra.mxu3 %v6190_v53  ;;  %v4284_v51 = vld [vmem:[#allocation2 + $0x26c] sm:$0xf0]  ;;  %v5216_v46 = vld [vmem:[#allocation2 + $0x254] sm:$0xf] }
 0x13e   : > { %2606 = vmatmul.bf16.gmra.mxu1 %v6192_v52  ;;  %v4292_v52 = vld [vmem:[#allocation2 + $0x274] sm:$0xf0] }
 0x13f   : > { %v2202_v13 = vpop.f32.mrf.mxu2  ;;  %v6214_v53 = vor.u32 %v5216_v46, %v4292_v52 }
 0x140   : > { %v2291_v54 = vpop.f32.mrf.mxu3 }
 0x141   : > { %v6202_v6 = vadd.f32 %v2291_v54, %v2202_v13  ;;  %v2164_v27 = vpop.f32.mrf.mxu0  ;;  %v6208_v13 = vor.u32 %v5220_v35, %v4290_v5  ;;  %7363 = vst [vmem:[#allocation70_spill] sm:$0xff] %v6214_v53  ;;  %v5026_v5 = vld [vmem:[%s5810_s7 + $0x3a0] sm:$0xf]  ;;  %v4963_v35 = vor.u32 %v5387_v48, %v4962_v23  ;;  %v5091_v23 = vor.u32 %v5419_v24, %v5090_v60  ;;  %v4320_v48 = vld [vmem:[#allocation2 + $0x2b4] sm:$0xf0] }
 0x143   : > { %v2253_v31 = vpop.f32.mrf.mxu1  ;;  %7361 = vst [vmem:[#allocation68_spill] sm:$0xff] %v6208_v13  ;;  %2657 = vmatpush.bf16.msra.mxu2 %v4963_v35  ;;  %2835 = vmatpush.bf16.msra.mxu0 %v5091_v23 }
 0x144   : > { %v6204_v47 = vadd.f32 %v2253_v31, %v2164_v27  ;;  %v6212_v31 = vor.u32 %v5215_v30, %v4284_v51 }
 0x146   : > { %7362 = vst [vmem:[#allocation69_spill] sm:$0xff] %v6212_v31 }
 0x147   : > { %v2204_v55 = vpop.f32.mrf.mxu2 }
 0x148   : > { %v2293_v16 = vpop.f32.mrf.mxu3 }
 0x149   : > { %v6210_v54 = vadd.f32 %v2293_v16, %v2204_v55  ;;  %v2483_v27 = vpop.f32.mrf.mxu0  ;;  %v5403_v55 = vld [vmem:[%s5810_s7 + $0x3a4] sm:$0xf0] }
 0x14a   : > { %v5027_v30 = vor.u32 %v5403_v55, %v5026_v5  ;;  %v4328_v5 = vld [vmem:[#allocation2 + $0x2bc] sm:$0xf0] }
 0x14b   : > { %v2572_v9 = vpop.f32.mrf.mxu1  ;;  %v6236_v24 = vor.u32 %v5225_v40, %v4328_v5  ;;  %v5237_v5 = vld [vmem:[#allocation2 + $0x2f8] sm:$0xf0] }
 0x14c   : > { %2344 = vmatmul.bf16.gmra.mxu2 %v6206_v43  ;;  %2522 = vmatmul.bf16.gmra.mxu0 %v6208_v13 }
 0x14d   : > { %2433 = vmatmul.bf16.gmra.mxu3 %v6212_v31  ;;  %v4318_v31 = vld [vmem:[#allocation2 + $0x290] sm:$0xf]  ;;  %7367 = vst [vmem:[#allocation74_spill] sm:$0xff] %v6236_v24 }
 0x14e   : > { %2611 = vmatmul.bf16.gmra.mxu1 %v6214_v53  ;;  %2746 = vmatpush.bf16.msra.mxu3 %v5027_v30  ;;  %v5228_v53 = vld [vmem:[#allocation2 + $0x2b0] sm:$0xf0] }
 0x14f   : > { %v2305_v51 = vpop.f32.mrf.mxu2 }
 0x150   : > { %v2306_v52 = vadd.f32 %v2305_v51, %v6024_v10  ;;  %v2394_v46 = vpop.f32.mrf.mxu3 }
 0x151   : > { %v2485_v16 = vpop.f32.mrf.mxu0 }
 0x152   : > { %v2395_v13 = vadd.f32 %v2394_v46, %v2306_v52  ;;  %v6234_v52 = vor.u32 %v5224_v56, %v4320_v48  ;;  %v4354_v48 = vld [vmem:[#allocation2 + $0x2d8] sm:$0xf] }
 0x153   : > { %v2574_v43 = vpop.f32.mrf.mxu1 }
 0x154   : > { %v2484_v33 = vadd.f32 %v2483_v27, %v2395_v13  ;;  %v6230_v13 = vor.u32 %v5228_v53, %v4318_v31  ;;  %v6232_v27 = vor.u32 %v5229_v0, %v4326_v28  ;;  %7366 = vst [vmem:[#allocation73_spill] sm:$0xff] %v6234_v52 }
 0x156   : > { %v6227_v10 = vadd.f32 %v2572_v9, %v2484_v33  ;;  %7364 = vst [vmem:[#allocation71_spill] sm:$0xff] %v6230_v13  ;;  %v5290_v9 = vld [vmem:[%s5810_s7 + $0x24] sm:$0xf]  ;;  %v4580_v33 = vld [vmem:[%s5810_s7 + $0x28] sm:$0xf0] }
 0x157   : > { %v2307_v35 = vpop.f32.mrf.mxu2  ;;  %7365 = vst [vmem:[#allocation72_spill] sm:$0xff] %v6232_v27  ;;  %v4583_v0 = vor.u32 %v5290_v9, %v4580_v33  ;;  %v6250_v33 = vor.u32 %v5237_v5, %v4354_v48  ;;  %v5018_v48 = vld [vmem:[%s5810_s7 + $0x390] sm:$0xf] }
 0x158   : > { %v2308_v55 = vadd.f32 %v2307_v35, %v6036_v22  ;;  %v2396_v51 = vpop.f32.mrf.mxu3  ;;  %v5233_v35 = vld [vmem:[#allocation2 + $0x2dc] sm:$0xf] }
 0x159   : > { %v2488_v30 = vpop.f32.mrf.mxu0  ;;  %2924 = vmatpush.bf16.msra.mxu1 %v4583_v0  ;;  %7368 = vst [vmem:[#allocation75_spill] sm:$0xff] %v6250_v33 }
 0x15a   : > { %v2397_v60 = vadd.f32 %v2396_v51, %v2308_v55  ;;  %v4362_v55 = vld [vmem:[#allocation2 + $0x2e0] sm:$0xf]  ;;  %v5238_v51 = vld [vmem:[#allocation2 + $0x300] sm:$0xf0] }
 0x15b   : > { %v2577_v46 = vpop.f32.mrf.mxu1 }
 0x15c   : > { %v2486_v3 = vadd.f32 %v2485_v16, %v2397_v60  ;;  %2349 = vmatmul.bf16.gmra.mxu2 %v6230_v13  ;;  %2527 = vmatmul.bf16.gmra.mxu0 %v6232_v27  ;;  %v4356_v60 = vld [vmem:[#allocation2 + $0x2fc] sm:$0xf0]  ;;  %v5234_v27 = vld [vmem:[#allocation2 + $0x2e4] sm:$0xf]  ;;  %v5243_v13 = vld [vmem:[#allocation2 + $0x32c] sm:$0xf] }
 0x15d   : > { %2438 = vmatmul.bf16.gmra.mxu3 %v6234_v52 }
 0x15e   : > { %2616 = vmatmul.bf16.gmra.mxu1 %v6236_v24  ;;  %v6244_v28 = vadd.f32 %v2574_v43, %v2486_v3  ;;  %v4364_v24 = vld [vmem:[#allocation2 + $0x304] sm:$0xf0] }
 0x15f   : > { %v2310_v56 = vpop.f32.mrf.mxu2 }
 0x160   : > { %v2311_v40 = vadd.f32 %v2310_v56, %v6052_v20  ;;  %v2399_v53 = vpop.f32.mrf.mxu3  ;;  %v6254_v56 = vor.u32 %v5233_v35, %v4356_v60  ;;  %v5401_v35 = vld [vmem:[%s5810_s7 + $0x394] sm:$0xf0] }
 0x161   : > { %v2490_v22 = vpop.f32.mrf.mxu0 }
 0x162   : > { %v2400_v31 = vadd.f32 %v2399_v53, %v2311_v40  ;;  %7370 = vst [vmem:[#allocation77_spill] sm:$0xff] %v6254_v56  ;;  %v6256_v40 = vor.u32 %v5234_v27, %v4364_v24 }
 0x163   : > { %v2579_v16 = vpop.f32.mrf.mxu1 }
 0x164   : > { %v2489_v23 = vadd.f32 %v2488_v30, %v2400_v31  ;;  %v6252_v30 = vor.u32 %v5238_v51, %v4362_v55  ;;  %7371 = vst [vmem:[#allocation78_spill] sm:$0xff] %v6256_v40  ;;  %v5019_v55 = vor.u32 %v5401_v35, %v5018_v48  ;;  %v4400_v48 = vld [vmem:[#allocation2 + $0x34c] sm:$0xf0] }
 0x166   : > { %v6247_v9 = vadd.f32 %v2577_v46, %v2489_v23  ;;  %7369 = vst [vmem:[#allocation76_spill] sm:$0xff] %v6252_v30  ;;  %v5385_v23 = vld [vmem:[%s5810_s7 + $0x314] sm:$0xf0]  ;;  %2747 = vmatpush.bf16.msra.mxu3 %v5019_v55 }
 0x167   : > { %v2312_v3 = vpop.f32.mrf.mxu2 }
 0x168   : > { %v2313_v20 = vadd.f32 %v2312_v3, %v6060_v39  ;;  %v2401_v43 = vpop.f32.mrf.mxu3  ;;  %v4954_v39 = vld [vmem:[%s5810_s7 + $0x310] sm:$0xf] }
 0x169   : > { %v2493_v0 = vpop.f32.mrf.mxu0  ;;  %v4955_v5 = vor.u32 %v5385_v23, %v4954_v39  ;;  %v5242_v39 = vld [vmem:[#allocation2 + $0x324] sm:$0xf]  ;;  %v4398_v23 = vld [vmem:[#allocation2 + $0x328] sm:$0xf] }
 0x16a   : > { %v2402_v53 = vadd.f32 %v2401_v43, %v2313_v20  ;;  %v4390_v43 = vld [vmem:[#allocation2 + $0x320] sm:$0xf] }
 0x16b   : > { %v2582_v46 = vpop.f32.mrf.mxu1  ;;  %2658 = vmatpush.bf16.msra.mxu2 %v4955_v5 }
 0x16c   : > { %v2491_v31 = vadd.f32 %v2490_v22, %v2402_v53  ;;  %2354 = vmatmul.bf16.gmra.mxu2 %v6250_v33  ;;  %2532 = vmatmul.bf16.gmra.mxu0 %v6252_v30  ;;  %v5082_v30 = vld [vmem:[%s5810_s7 + $0x410] sm:$0xf]  ;;  %v5417_v33 = vld [vmem:[%s5810_s7 + $0x414] sm:$0xf0] }
 0x16d   : > { %2443 = vmatmul.bf16.gmra.mxu3 %v6254_v56  ;;  %v5247_v56 = vld [vmem:[#allocation2 + $0x348] sm:$0xf0] }
 0x16e   : > { %2621 = vmatmul.bf16.gmra.mxu1 %v6256_v40  ;;  %v6266_v27 = vadd.f32 %v2579_v16, %v2491_v31  ;;  %v5246_v40 = vld [vmem:[#allocation2 + $0x340] sm:$0xf0]  ;;  %v5083_v16 = vor.u32 %v5417_v33, %v5082_v30  ;;  %v4392_v31 = vld [vmem:[#allocation2 + $0x344] sm:$0xf0]  ;;  %v6276_v55 = vor.u32 %v5247_v56, %v4398_v23  ;;  %v6280_v33 = vor.u32 %v5243_v13, %v4400_v48  ;;  %v5255_v48 = vld [vmem:[#allocation2 + $0x388] sm:$0xf0] }
 0x16f   : > { %v2315_v24 = vpop.f32.mrf.mxu2 }
 0x170   : > { %v2316_v22 = vadd.f32 %v2315_v24, %v6072_v14  ;;  %v2404_v51 = vpop.f32.mrf.mxu3  ;;  %2836 = vmatpush.bf16.msra.mxu0 %v5083_v16  ;;  %7373 = vst [vmem:[#allocation80_spill] sm:$0xff] %v6276_v55 }
 0x171   : > { %v2495_v60 = vpop.f32.mrf.mxu0  ;;  %7375 = vst [vmem:[#allocation82_spill] sm:$0xff] %v6280_v33 }
 0x172   : > { %v2405_v3 = vadd.f32 %v2404_v51, %v2316_v22  ;;  %v6278_v51 = vor.u32 %v5242_v39, %v4392_v31  ;;  %v4426_v31 = vld [vmem:[#allocation2 + $0x368] sm:$0xf] }
 0x173   : > { %v2584_v20 = vpop.f32.mrf.mxu1 }
 0x174   : > { %v2494_v53 = vadd.f32 %v2493_v0, %v2405_v3  ;;  %v6274_v0 = vor.u32 %v5246_v40, %v4390_v43  ;;  %7374 = vst [vmem:[#allocation81_spill] sm:$0xff] %v6278_v51 }
 0x176   : > { %v6271_v14 = vadd.f32 %v2582_v46, %v2494_v53  ;;  %7372 = vst [vmem:[#allocation79_spill] sm:$0xff] %v6274_v0  ;;  %v5288_v46 = vld [vmem:[%s5810_s7 + $0x14] sm:$0xf]  ;;  %v4572_v53 = vld [vmem:[%s5810_s7 + $0x18] sm:$0xf0] }
 0x177   : > { %v2317_v5 = vpop.f32.mrf.mxu2 }
 0x178   : > { %v2318_v35 = vadd.f32 %v2317_v5, %v6084_v38  ;;  %v2406_v24 = vpop.f32.mrf.mxu3  ;;  %v4575_v38 = vor.u32 %v5288_v46, %v4572_v53  ;;  %v5251_v5 = vld [vmem:[#allocation2 + $0x36c] sm:$0xf]  ;;  %v6294_v53 = vor.u32 %v5255_v48, %v4426_v31  ;;  %v5010_v31 = vld [vmem:[%s5810_s7 + $0x380] sm:$0xf] }
 0x179   : > { %v2498_v22 = vpop.f32.mrf.mxu0 }
 0x17a   : > { %v2407_v30 = vadd.f32 %v2406_v24, %v2318_v35  ;;  %2925 = vmatpush.bf16.msra.mxu1 %v4575_v38  ;;  %v4434_v35 = vld [vmem:[#allocation2 + $0x370] sm:$0xf]  ;;  %v5256_v24 = vld [vmem:[#allocation2 + $0x390] sm:$0xf0]  ;;  %7376 = vst [vmem:[#allocation83_spill] sm:$0xff] %v6294_v53 }
 0x17b   : > { %v2587_v3 = vpop.f32.mrf.mxu1 }
 0x17c   : > { %v2496_v52 = vadd.f32 %v2495_v60, %v2407_v30  ;;  %2359 = vmatmul.bf16.gmra.mxu2 %v6274_v0  ;;  %2537 = vmatmul.bf16.gmra.mxu0 %v6276_v55  ;;  %v4428_v30 = vld [vmem:[#allocation2 + $0x38c] sm:$0xf0]  ;;  %v5252_v55 = vld [vmem:[#allocation2 + $0x374] sm:$0xf]  ;;  %v5261_v0 = vld [vmem:[#allocation2 + $0x3bc] sm:$0xf] }
 0x17d   : > { %2448 = vmatmul.bf16.gmra.mxu3 %v6278_v51 }
 0x17e   : > { %2626 = vmatmul.bf16.gmra.mxu1 %v6280_v33  ;;  %v6288_v56 = vadd.f32 %v2584_v20, %v2496_v52  ;;  %v4436_v33 = vld [vmem:[#allocation2 + $0x394] sm:$0xf0] }
 0x17f   : > { %v2320_v40 = vpop.f32.mrf.mxu2 }
 0x180   : > { %v2321_v13 = vadd.f32 %v2320_v40, %v6100_v63  ;;  %v2409_v43 = vpop.f32.mrf.mxu3  ;;  %v6298_v40 = vor.u32 %v5251_v5, %v4428_v30  ;;  %v5399_v5 = vld [vmem:[%s5810_s7 + $0x384] sm:$0xf0] }
 0x181   : > { %v2500_v39 = vpop.f32.mrf.mxu0 }
 0x182   : > { %v2410_v60 = vadd.f32 %v2409_v43, %v2321_v13  ;;  %7378 = vst [vmem:[#allocation85_spill] sm:$0xff] %v6298_v40  ;;  %v6300_v13 = vor.u32 %v5252_v55, %v4436_v33 }
 0x183   : > { %v2589_v23 = vpop.f32.mrf.mxu1 }
 0x184   : > { %v2499_v16 = vadd.f32 %v2498_v22, %v2410_v60  ;;  %v6296_v22 = vor.u32 %v5256_v24, %v4434_v35  ;;  %7379 = vst [vmem:[#allocation86_spill] sm:$0xff] %v6300_v13  ;;  %v5011_v35 = vor.u32 %v5399_v5, %v5010_v31  ;;  %v4472_v31 = vld [vmem:[#allocation2 + $0x3dc] sm:$0xf0] }
 0x186   : > { %v6291_v46 = vadd.f32 %v2587_v3, %v2499_v16  ;;  %7377 = vst [vmem:[#allocation84_spill] sm:$0xff] %v6296_v22  ;;  %v5383_v16 = vld [vmem:[%s5810_s7 + $0x304] sm:$0xf0]  ;;  %2748 = vmatpush.bf16.msra.mxu3 %v5011_v35 }
 0x187   : > { %v2322_v52 = vpop.f32.mrf.mxu2 }
 0x188   : > { %v2323_v63 = vadd.f32 %v2322_v52, %v6108_v45  ;;  %v2411_v20 = vpop.f32.mrf.mxu3  ;;  %v4946_v45 = vld [vmem:[%s5810_s7 + $0x300] sm:$0xf] }
 0x189   : > { %v2503_v38 = vpop.f32.mrf.mxu0  ;;  %v4947_v48 = vor.u32 %v5383_v16, %v4946_v45  ;;  %v5260_v45 = vld [vmem:[#allocation2 + $0x3b4] sm:$0xf]  ;;  %v4470_v16 = vld [vmem:[#allocation2 + $0x3b8] sm:$0xf] }
 0x18a   : > { %v2412_v43 = vadd.f32 %v2411_v20, %v2323_v63  ;;  %v4462_v20 = vld [vmem:[#allocation2 + $0x3b0] sm:$0xf] }
 0x18b   : > { %v2592_v3 = vpop.f32.mrf.mxu1  ;;  %2659 = vmatpush.bf16.msra.mxu2 %v4947_v48 }
 0x18c   : > { %v2501_v60 = vadd.f32 %v2500_v39, %v2412_v43  ;;  %2364 = vmatmul.bf16.gmra.mxu2 %v6294_v53  ;;  %2542 = vmatmul.bf16.gmra.mxu0 %v6296_v22  ;;  %v5074_v22 = vld [vmem:[%s5810_s7 + $0x400] sm:$0xf]  ;;  %v5415_v53 = vld [vmem:[%s5810_s7 + $0x404] sm:$0xf0] }
 0x18d   : > { %2453 = vmatmul.bf16.gmra.mxu3 %v6298_v40  ;;  %v5265_v40 = vld [vmem:[#allocation2 + $0x3d8] sm:$0xf0] }
 0x18e   : > { %2631 = vmatmul.bf16.gmra.mxu1 %v6300_v13  ;;  %v6310_v55 = vadd.f32 %v2589_v23, %v2501_v60  ;;  %v5264_v13 = vld [vmem:[#allocation2 + $0x3d0] sm:$0xf0]  ;;  %v5075_v23 = vor.u32 %v5415_v53, %v5074_v22  ;;  %v4464_v60 = vld [vmem:[#allocation2 + $0x3d4] sm:$0xf0]  ;;  %v6320_v35 = vor.u32 %v5265_v40, %v4470_v16  ;;  %v6324_v53 = vor.u32 %v5261_v0, %v4472_v31  ;;  %v5273_v31 = vld [vmem:[#allocation2 + $0x418] sm:$0xf0] }
 0x18f   : > { %v2325_v33 = vpop.f32.mrf.mxu2 }
 0x190   : > { %v2326_v39 = vadd.f32 %v2325_v33, %v6120_v15  ;;  %v2414_v24 = vpop.f32.mrf.mxu3  ;;  %2837 = vmatpush.bf16.msra.mxu0 %v5075_v23  ;;  %7381 = vst [vmem:[#allocation88_spill] sm:$0xff] %v6320_v35 }
 0x191   : > { %v2505_v30 = vpop.f32.mrf.mxu0  ;;  %7383 = vst [vmem:[#allocation90_spill] sm:$0xff] %v6324_v53 }
 0x192   : > { %v2415_v52 = vadd.f32 %v2414_v24, %v2326_v39  ;;  %v6322_v24 = vor.u32 %v5260_v45, %v4464_v60  ;;  %v4498_v60 = vld [vmem:[#allocation2 + $0x3f8] sm:$0xf] }
 0x193   : > { %v2594_v63 = vpop.f32.mrf.mxu1 }
 0x194   : > { %v2504_v43 = vadd.f32 %v2503_v38, %v2415_v52  ;;  %v6318_v38 = vor.u32 %v5264_v13, %v4462_v20  ;;  %7382 = vst [vmem:[#allocation89_spill] sm:$0xff] %v6322_v24 }
 0x196   : > { %v6315_v15 = vadd.f32 %v2592_v3, %v2504_v43  ;;  %7380 = vst [vmem:[#allocation87_spill] sm:$0xff] %v6318_v38  ;;  %v5286_v3 = vld [vmem:[%s5810_s7 + $0x4] sm:$0xf]  ;;  %v4564_v43 = vld [vmem:[%s5810_s7 + $0x8] sm:$0xf0] }
 0x197   : > { %v2327_v48 = vpop.f32.mrf.mxu2 }
 0x198   : > { %v2328_v5 = vadd.f32 %v2327_v48, %v6132_v37  ;;  %v2416_v33 = vpop.f32.mrf.mxu3  ;;  %v4567_v37 = vor.u32 %v5286_v3, %v4564_v43  ;;  %v5269_v48 = vld [vmem:[#allocation2 + $0x3fc] sm:$0xf]  ;;  %v6338_v43 = vor.u32 %v5273_v31, %v4498_v60  ;;  %v5332_v60 = vld [vmem:[%s5810_s7 + $0x174] sm:$0xf] }
 0x199   : > { %v2508_v39 = vpop.f32.mrf.mxu0 }
 0x19a   : > { %v2417_v22 = vadd.f32 %v2416_v33, %v2328_v5  ;;  %2926 = vmatpush.bf16.msra.mxu1 %v4567_v37  ;;  %v4506_v5 = vld [vmem:[#allocation2 + $0x400] sm:$0xf]  ;;  %v5274_v33 = vld [vmem:[#allocation2 + $0x420] sm:$0xf0]  ;;  %7384 = vst [vmem:[#allocation91_spill] sm:$0xff] %v6338_v43 }
 0x19b   : > { %v2597_v52 = vpop.f32.mrf.mxu1 }
 0x19c   : > { %v2506_v51 = vadd.f32 %v2505_v30, %v2417_v22  ;;  %2369 = vmatmul.bf16.gmra.mxu2 %v6318_v38  ;;  %2547 = vmatmul.bf16.gmra.mxu0 %v6320_v35  ;;  %v4500_v22 = vld [vmem:[#allocation2 + $0x41c] sm:$0xf0]  ;;  %v5270_v35 = vld [vmem:[#allocation2 + $0x404] sm:$0xf]  ;;  %v5279_v38 = vld [vmem:[#allocation2 + $0x44c] sm:$0xf] }
 0x19d   : > { %2458 = vmatmul.bf16.gmra.mxu3 %v6322_v24 }
 0x19e   : > { %2636 = vmatmul.bf16.gmra.mxu1 %v6324_v53  ;;  %v6332_v40 = vadd.f32 %v2594_v63, %v2506_v51  ;;  %v4508_v53 = vld [vmem:[#allocation2 + $0x424] sm:$0xf0] }
 0x19f   : > { %v2330_v13 = vpop.f32.mrf.mxu2 }
 0x1a0   : > { %v2331_v0 = vadd.f32 %v2330_v13, %v6148_v7  ;;  %v2419_v20 = vpop.f32.mrf.mxu3  ;;  %v6342_v13 = vor.u32 %v5269_v48, %v4500_v22  ;;  %v4748_v48 = vld [vmem:[%s5810_s7 + $0x178] sm:$0xf0] }
 0x1a1   : > { %v2510_v45 = vpop.f32.mrf.mxu0 }
 0x1a2   : > { %v2420_v30 = vadd.f32 %v2419_v20, %v2331_v0  ;;  %7386 = vst [vmem:[#allocation93_spill] sm:$0xff] %v6342_v13  ;;  %v6344_v0 = vor.u32 %v5270_v35, %v4508_v53 }
 0x1a3   : > { %v2599_v16 = vpop.f32.mrf.mxu1 }
 0x1a4   : > { %v2509_v23 = vadd.f32 %v2508_v39, %v2420_v30  ;;  %v6340_v39 = vor.u32 %v5274_v33, %v4506_v5  ;;  %7387 = vst [vmem:[#allocation94_spill] sm:$0xff] %v6344_v0  ;;  %v4751_v5 = vor.u32 %v5332_v60, %v4748_v48  ;;  %v4544_v60 = vld [vmem:[#allocation2 + $0x46c] sm:$0xf0] }
 0x1a6   : > { %v6335_v3 = vadd.f32 %v2597_v52, %v2509_v23  ;;  %7385 = vst [vmem:[#allocation92_spill] sm:$0xff] %v6340_v39  ;;  %v4684_v23 = vld [vmem:[%s5810_s7 + $0xf8] sm:$0xf0]  ;;  %3097 = vmatpush.bf16.msrb.mxu3 %v4751_v5 }
 0x1a7   : > { %v2332_v51 = vpop.f32.mrf.mxu2 }
 0x1a8   : > { %v2333_v7 = vadd.f32 %v2332_v51, %v6156_v8  ;;  %v2421_v63 = vpop.f32.mrf.mxu3  ;;  %v5316_v8 = vld [vmem:[%s5810_s7 + $0xf4] sm:$0xf] }
 0x1a9   : > { %v2513_v37 = vpop.f32.mrf.mxu0  ;;  %v4687_v31 = vor.u32 %v5316_v8, %v4684_v23  ;;  %v5278_v8 = vld [vmem:[#allocation2 + $0x444] sm:$0xf]  ;;  %v4542_v23 = vld [vmem:[#allocation2 + $0x448] sm:$0xf] }
 0x1aa   : > { %v2422_v20 = vadd.f32 %v2421_v63, %v2333_v7  ;;  %v4534_v63 = vld [vmem:[#allocation2 + $0x440] sm:$0xf] }
 0x1ab   : > { %v2602_v52 = vpop.f32.mrf.mxu1  ;;  %3008 = vmatpush.bf16.msrb.mxu2 %v4687_v31 }
 0x1ac   : > { %v2511_v30 = vadd.f32 %v2510_v45, %v2422_v20  ;;  %2374 = vmatmul.bf16.gmra.mxu2 %v6338_v43  ;;  %2552 = vmatmul.bf16.gmra.mxu0 %v6340_v39  ;;  %v5348_v39 = vld [vmem:[%s5810_s7 + $0x1f4] sm:$0xf]  ;;  %v4812_v43 = vld [vmem:[%s5810_s7 + $0x1f8] sm:$0xf0] }
 0x1ad   : > { %2463 = vmatmul.bf16.gmra.mxu3 %v6342_v13  ;;  %v5283_v13 = vld [vmem:[#allocation2 + $0x468] sm:$0xf0] }
 0x1ae   : > { %2641 = vmatmul.bf16.gmra.mxu1 %v6344_v0  ;;  %v6354_v35 = vadd.f32 %v2599_v16, %v2511_v30  ;;  %v5282_v0 = vld [vmem:[#allocation2 + $0x460] sm:$0xf0]  ;;  %v4815_v16 = vor.u32 %v5348_v39, %v4812_v43  ;;  %v4536_v30 = vld [vmem:[#allocation2 + $0x464] sm:$0xf0]  ;;  %v6364_v5 = vor.u32 %v5283_v13, %v4542_v23  ;;  %v6368_v43 = vor.u32 %v5279_v38, %v4544_v60  ;;  %v5149_v60 = vld [vmem:[#allocation2 + $0x38] sm:$0xf0] }
 0x1af   : > { %v2335_v53 = vpop.f32.mrf.mxu2 }
 0x1b0   : > { %v2336_v45 = vadd.f32 %v2335_v53, %v6168_v17  ;;  %v2424_v33 = vpop.f32.mrf.mxu3  ;;  %3186 = vmatpush.bf16.msrb.mxu0 %v4815_v16  ;;  %7388 = vst [vmem:[#allocation95_spill] sm:$0xff] %v6368_v43 }
 0x1b1   : > { %v2515_v22 = vpop.f32.mrf.mxu0 }
 0x1b2   : > { %v2425_v51 = vadd.f32 %v2424_v33, %v2336_v45  ;;  %v6366_v33 = vor.u32 %v5278_v8, %v4536_v30  ;;  %v4010_v30 = vld [vmem:[#allocation2 + $0x18] sm:$0xf] }
 0x1b3   : > { %v2604_v7 = vpop.f32.mrf.mxu1 }
 0x1b4   : > { %v2514_v20 = vadd.f32 %v2513_v37, %v2425_v51  ;;  %v6362_v37 = vor.u32 %v5282_v0, %v4534_v63 }
 0x1b6   : > { %v6359_v17 = vadd.f32 %v2602_v52, %v2514_v20  ;;  %v5364_v52 = vld [vmem:[%s5810_s7 + $0x274] sm:$0xf]  ;;  %v4876_v20 = vld [vmem:[%s5810_s7 + $0x278] sm:$0xf0] }
 0x1b7   : > { %v2337_v31 = vpop.f32.mrf.mxu2 }
 0x1b8   : > { %v2338_v48 = vadd.f32 %v2337_v31, %v6180_v44  ;;  %v2426_v53 = vpop.f32.mrf.mxu3  ;;  %v4879_v44 = vor.u32 %v5364_v52, %v4876_v20  ;;  %v4018_v31 = vld [vmem:[#allocation2 + $0x20] sm:$0xf]  ;;  %v6382_v52 = vor.u32 %v5149_v60, %v4010_v30  ;;  %v4740_v30 = vld [vmem:[%s5810_s7 + $0x168] sm:$0xf0] }
 0x1b9   : > { %v2518_v45 = vpop.f32.mrf.mxu0 }
 0x1ba   : > { %v2427_v39 = vadd.f32 %v2426_v53, %v2338_v48  ;;  %3275 = vmatpush.bf16.msrb.mxu1 %v4879_v44  ;;  %v5150_v48 = vld [vmem:[#allocation2 + $0x40] sm:$0xf0]  ;;  %v5145_v53 = vld [vmem:[#allocation2 + $0x1c] sm:$0xf]  ;;  %7389 = vst [vmem:[#allocation96_spill] sm:$0xff] %v6382_v52 }
 0x1bb   : > { %v2607_v51 = vpop.f32.mrf.mxu1  ;;  %v6384_v20 = vor.u32 %v5150_v48, %v4018_v31 }
 0x1bc   : > { %v2516_v24 = vadd.f32 %v2515_v22, %v2427_v39  ;;  %2379 = vmatmul.bf16.gmra.mxu2 %v6362_v37  ;;  %2557 = vmatmul.bf16.gmra.mxu0 %v6364_v5  ;;  %v4012_v39 = vld [vmem:[#allocation2 + $0x3c] sm:$0xf0] }
 0x1bd   : > { %2468 = vmatmul.bf16.gmra.mxu3 %v6366_v33  ;;  %7390 = vst [vmem:[#allocation97_spill] sm:$0xff] %v6384_v20  ;;  %v6386_v44 = vor.u32 %v5145_v53, %v4012_v39 }
 0x1be   : > { %2646 = vmatmul.bf16.gmra.mxu1 %v6368_v43  ;;  %v6376_v13 = vadd.f32 %v2604_v7, %v2516_v24 }
 0x1bf   : > { %v2340_v0 = vpop.f32.mrf.mxu2  ;;  %7391 = vst [vmem:[#allocation98_spill] sm:$0xff] %v6386_v44 }
 0x1c0   : > { %v2341_v38 = vadd.f32 %v2340_v0, %v6194_v42  ;;  %v2429_v63 = vpop.f32.mrf.mxu3 }
 0x1c1   : > { %v2520_v8 = vpop.f32.mrf.mxu0 }
 0x1c2   : > { %v2430_v22 = vadd.f32 %v2429_v63, %v2341_v38 }
 0x1c3   : > { %v2609_v23 = vpop.f32.mrf.mxu1 }
 0x1c4   : > { %v2519_v16 = vadd.f32 %v2518_v45, %v2430_v22  ;;  %v5330_v22 = vld [vmem:[%s5810_s7 + $0x164] sm:$0xf] }
 0x1c5   : > { %v4743_v48 = vor.u32 %v5330_v22, %v4740_v30 }
 0x1c6   : > { %v6379_v43 = vadd.f32 %v2607_v51, %v2519_v16  ;;  %v4676_v51 = vld [vmem:[%s5810_s7 + $0xe8] sm:$0xf0] }
 0x1c7   : > { %v2342_v24 = vpop.f32.mrf.mxu2  ;;  %3098 = vmatpush.bf16.msrb.mxu3 %v4743_v48 }
 0x1c8   : > { %v2343_v7 = vadd.f32 %v2342_v24, %v6204_v47  ;;  %v2431_v42 = vpop.f32.mrf.mxu3  ;;  %v5314_v47 = vld [vmem:[%s5810_s7 + $0xe4] sm:$0xf] }
 0x1c9   : > { %v2523_v45 = vpop.f32.mrf.mxu0  ;;  %v4679_v16 = vor.u32 %v5314_v47, %v4676_v51  ;;  %v5159_v47 = vld [vmem:[#allocation2 + $0x88] sm:$0xf0] }
 0x1ca   : > { %v2432_v0 = vadd.f32 %v2431_v42, %v2343_v7  ;;  %v4046_v42 = vld [vmem:[#allocation2 + $0x60] sm:$0xf] }
 0x1cb   : > { %v2612_v38 = vpop.f32.mrf.mxu1  ;;  %3009 = vmatpush.bf16.msrb.mxu2 %v4679_v16 }
 0x1cc   : > { %v2521_v63 = vadd.f32 %v2520_v8, %v2432_v0  ;;  %2660 = vmatmul.bf16.vlgmr.msra.gmra.mxu2 %v6382_v52  ;;  %2838 = vmatmul.bf16.vlgmr.msra.gmra.mxu0 %v6384_v20  ;;  %v5346_v0 = vld [vmem:[%s5810_s7 + $0x1e4] sm:$0xf]  ;;  %v4804_v20 = vld [vmem:[%s5810_s7 + $0x1e8] sm:$0xf0] }
 0x1cd   : > { %2749 = vmatmul.bf16.vlgmr.msra.gmra.mxu3 %v6386_v44  ;;  %v5158_v52 = vld [vmem:[#allocation2 + $0x80] sm:$0xf0]  ;;  %v4054_v44 = vld [vmem:[#allocation2 + $0x68] sm:$0xf]  ;;  %v4807_v51 = vor.u32 %v5346_v0, %v4804_v20 }
 0x1ce   : > { %2927 = vmatmul.bf16.vlgmr.msra.gmra.mxu1 %v5859_v4  ;;  %v6396_v60 = vadd.f32 %v2609_v23, %v2521_v63  ;;  %v5154_v23 = vld [vmem:[#allocation2 + $0x64] sm:$0xf]  ;;  %v4048_v63 = vld [vmem:[#allocation2 + $0x84] sm:$0xf0] }
 0x1cf   : > { %v2345_v31 = vpop.f32.mrf.mxu2  ;;  %3187 = vmatpush.bf16.msrb.mxu0 %v4807_v51 }
 0x1d0   : > { %v2346_v8 = vadd.f32 %v2345_v31, %v6034_v19  ;;  %v2434_v53 = vpop.f32.mrf.mxu3  ;;  %v6404_v31 = vor.u32 %v5158_v52, %v4046_v42 }
 0x1d1   : > { %v2525_v39 = vpop.f32.mrf.mxu0 }
 0x1d2   : > { %v2435_v24 = vadd.f32 %v2434_v53, %v2346_v8  ;;  %v6408_v8 = vor.u32 %v5154_v23, %v4048_v63  ;;  %v4082_v63 = vld [vmem:[#allocation2 + $0xa8] sm:$0xf] }
 0x1d3   : > { %v2614_v7 = vpop.f32.mrf.mxu1 }
 0x1d4   : > { %v2524_v4 = vadd.f32 %v2523_v45, %v2435_v24  ;;  %v6406_v45 = vor.u32 %v5159_v47, %v4054_v44 }
 0x1d6   : > { %v6401_v22 = vadd.f32 %v2612_v38, %v2524_v4  ;;  %7392 = vst [vmem:[#allocation99_spill] sm:$0xff] %v6406_v45  ;;  %v5362_v38 = vld [vmem:[%s5810_s7 + $0x264] sm:$0xf]  ;;  %v4868_v4 = vld [vmem:[%s5810_s7 + $0x268] sm:$0xf0] }
 0x1d7   : > { %v2347_v19 = vpop.f32.mrf.mxu2 }
 0x1d8   : > { %v2348_v16 = vadd.f32 %v2347_v19, %v6044_v11  ;;  %v2436_v30 = vpop.f32.mrf.mxu3  ;;  %v4871_v11 = vor.u32 %v5362_v38, %v4868_v4  ;;  %v5167_v19 = vld [vmem:[#allocation2 + $0xc8] sm:$0xf0] }
 0x1d9   : > { %v2528_v48 = vpop.f32.mrf.mxu0  ;;  %v6422_v38 = vor.u32 %v5167_v19, %v4082_v63  ;;  %v4732_v63 = vld [vmem:[%s5810_s7 + $0x158] sm:$0xf0] }
 0x1da   : > { %v2437_v53 = vadd.f32 %v2436_v30, %v2348_v16  ;;  %3276 = vmatpush.bf16.msrb.mxu1 %v4871_v11  ;;  %v4090_v16 = vld [vmem:[#allocation2 + $0xb0] sm:$0xf]  ;;  %v5168_v30 = vld [vmem:[#allocation2 + $0xd0] sm:$0xf0] }
 0x1db   : > { %v2617_v20 = vpop.f32.mrf.mxu1  ;;  %7393 = vst [vmem:[#allocation100_spill] sm:$0xff] %v6422_v38  ;;  %v6424_v4 = vor.u32 %v5168_v30, %v4090_v16 }
 0x1dc   : > { %v2526_v24 = vadd.f32 %v2525_v39, %v2437_v53  ;;  %2665 = vmatmul.bf16.gmra.mxu2 %v6404_v31  ;;  %2843 = vmatmul.bf16.gmra.mxu0 %v6406_v45  ;;  %v5163_v53 = vld [vmem:[#allocation2 + $0xac] sm:$0xf]  ;;  %v4084_v45 = vld [vmem:[#allocation2 + $0xcc] sm:$0xf0] }
 0x1dd   : > { %2754 = vmatmul.bf16.gmra.mxu3 %v6408_v8  ;;  %7394 = vst [vmem:[#allocation101_spill] sm:$0xff] %v6424_v4  ;;  %v6426_v11 = vor.u32 %v5163_v53, %v4084_v45 }
 0x1de   : > { %2932 = vmatmul.bf16.gmra.mxu1 %v5886_v41  ;;  %v6416_v52 = vadd.f32 %v2614_v7, %v2526_v24 }
 0x1df   : > { %v2350_v44 = vpop.f32.mrf.mxu2  ;;  %7395 = vst [vmem:[#allocation102_spill] sm:$0xff] %v6426_v11 }
 0x1e0   : > { %v2351_v42 = vadd.f32 %v2350_v44, %v6058_v32  ;;  %v2439_v0 = vpop.f32.mrf.mxu3 }
 0x1e1   : > { %v2530_v47 = vpop.f32.mrf.mxu0 }
 0x1e2   : > { %v2440_v39 = vadd.f32 %v2439_v0, %v2351_v42 }
 0x1e3   : > { %v2619_v51 = vpop.f32.mrf.mxu1 }
 0x1e4   : > { %v2529_v23 = vadd.f32 %v2528_v48, %v2440_v39  ;;  %v5328_v39 = vld [vmem:[%s5810_s7 + $0x154] sm:$0xf] }
 0x1e5   : > { %v4735_v16 = vor.u32 %v5328_v39, %v4732_v63 }
 0x1e6   : > { %v6419_v41 = vadd.f32 %v2617_v20, %v2529_v23  ;;  %v4668_v20 = vld [vmem:[%s5810_s7 + $0xd8] sm:$0xf0] }
 0x1e7   : > { %v2352_v7 = vpop.f32.mrf.mxu2  ;;  %3099 = vmatpush.bf16.msrb.mxu3 %v4735_v16 }
 0x1e8   : > { %v2353_v24 = vadd.f32 %v2352_v7, %v6066_v18  ;;  %v2441_v32 = vpop.f32.mrf.mxu3  ;;  %v5312_v18 = vld [vmem:[%s5810_s7 + $0xd4] sm:$0xf] }
 0x1e9   : > { %v2533_v48 = vpop.f32.mrf.mxu0  ;;  %v4671_v23 = vor.u32 %v5312_v18, %v4668_v20  ;;  %v5177_v18 = vld [vmem:[#allocation2 + $0x118] sm:$0xf0] }
 0x1ea   : > { %v2442_v44 = vadd.f32 %v2441_v32, %v2353_v24  ;;  %v4118_v32 = vld [vmem:[#allocation2 + $0xf0] sm:$0xf] }
 0x1eb   : > { %v2622_v42 = vpop.f32.mrf.mxu1  ;;  %3010 = vmatpush.bf16.msrb.mxu2 %v4671_v23 }
 0x1ec   : > { %v2531_v0 = vadd.f32 %v2530_v47, %v2442_v44  ;;  %2670 = vmatmul.bf16.gmra.mxu2 %v6422_v38  ;;  %2848 = vmatmul.bf16.gmra.mxu0 %v6424_v4  ;;  %v5344_v44 = vld [vmem:[%s5810_s7 + $0x1d4] sm:$0xf]  ;;  %v4796_v4 = vld [vmem:[%s5810_s7 + $0x1d8] sm:$0xf0] }
 0x1ed   : > { %2759 = vmatmul.bf16.gmra.mxu3 %v6426_v11  ;;  %v5176_v38 = vld [vmem:[#allocation2 + $0x110] sm:$0xf0]  ;;  %v4126_v11 = vld [vmem:[#allocation2 + $0xf8] sm:$0xf]  ;;  %v4799_v20 = vor.u32 %v5344_v44, %v4796_v4 }
 0x1ee   : > { %2937 = vmatmul.bf16.gmra.mxu1 %v5906_v1  ;;  %v6436_v45 = vadd.f32 %v2619_v51, %v2531_v0  ;;  %v5172_v51 = vld [vmem:[#allocation2 + $0xf4] sm:$0xf]  ;;  %v4120_v0 = vld [vmem:[#allocation2 + $0x114] sm:$0xf0] }
 0x1ef   : > { %v2355_v19 = vpop.f32.mrf.mxu2  ;;  %3188 = vmatpush.bf16.msrb.mxu0 %v4799_v20 }
 0x1f0   : > { %v2356_v47 = vadd.f32 %v2355_v19, %v6082_v12  ;;  %v2444_v30 = vpop.f32.mrf.mxu3  ;;  %v6444_v19 = vor.u32 %v5176_v38, %v4118_v32 }
 0x1f1   : > { %v2535_v53 = vpop.f32.mrf.mxu0 }
 0x1f2   : > { %v2445_v7 = vadd.f32 %v2444_v30, %v2356_v47  ;;  %v6448_v47 = vor.u32 %v5172_v51, %v4120_v0  ;;  %v4154_v0 = vld [vmem:[#allocation2 + $0x138] sm:$0xf] }
 0x1f3   : > { %v2624_v24 = vpop.f32.mrf.mxu1 }
 0x1f4   : > { %v2534_v1 = vadd.f32 %v2533_v48, %v2445_v7  ;;  %v6446_v48 = vor.u32 %v5177_v18, %v4126_v11 }
 0x1f6   : > { %v6441_v39 = vadd.f32 %v2622_v42, %v2534_v1  ;;  %7396 = vst [vmem:[#allocation103_spill] sm:$0xff] %v6446_v48  ;;  %v5360_v42 = vld [vmem:[%s5810_s7 + $0x254] sm:$0xf]  ;;  %v4860_v1 = vld [vmem:[%s5810_s7 + $0x258] sm:$0xf0] }
 0x1f7   : > { %v2357_v12 = vpop.f32.mrf.mxu2 }
 0x1f8   : > { %v2358_v23 = vadd.f32 %v2357_v12, %v6092_v21  ;;  %v2446_v63 = vpop.f32.mrf.mxu3  ;;  %v4863_v21 = vor.u32 %v5360_v42, %v4860_v1  ;;  %v5185_v12 = vld [vmem:[#allocation2 + $0x158] sm:$0xf0] }
 0x1f9   : > { %v2538_v16 = vpop.f32.mrf.mxu0  ;;  %v6462_v42 = vor.u32 %v5185_v12, %v4154_v0  ;;  %v4724_v0 = vld [vmem:[%s5810_s7 + $0x148] sm:$0xf0] }
 0x1fa   : > { %v2447_v30 = vadd.f32 %v2446_v63, %v2358_v23  ;;  %3277 = vmatpush.bf16.msrb.mxu1 %v4863_v21  ;;  %v4162_v23 = vld [vmem:[#allocation2 + $0x140] sm:$0xf]  ;;  %v5186_v63 = vld [vmem:[#allocation2 + $0x160] sm:$0xf0] }
 0x1fb   : > { %v2627_v4 = vpop.f32.mrf.mxu1  ;;  %7397 = vst [vmem:[#allocation104_spill] sm:$0xff] %v6462_v42  ;;  %v6464_v1 = vor.u32 %v5186_v63, %v4162_v23 }
 0x1fc   : > { %v2536_v7 = vadd.f32 %v2535_v53, %v2447_v30  ;;  %2675 = vmatmul.bf16.gmra.mxu2 %v6444_v19  ;;  %2853 = vmatmul.bf16.gmra.mxu0 %v6446_v48  ;;  %v5181_v30 = vld [vmem:[#allocation2 + $0x13c] sm:$0xf]  ;;  %v4156_v48 = vld [vmem:[#allocation2 + $0x15c] sm:$0xf0] }
 0x1fd   : > { %2764 = vmatmul.bf16.gmra.mxu3 %v6448_v47  ;;  %7398 = vst [vmem:[#allocation105_spill] sm:$0xff] %v6464_v1  ;;  %v6466_v21 = vor.u32 %v5181_v30, %v4156_v48 }
 0x1fe   : > { %2942 = vmatmul.bf16.gmra.mxu1 %v5926_v29  ;;  %v6456_v38 = vadd.f32 %v2624_v24, %v2536_v7 }
 0x1ff   : > { %v2360_v11 = vpop.f32.mrf.mxu2  ;;  %7399 = vst [vmem:[#allocation106_spill] sm:$0xff] %v6466_v21 }
 0x200   : > { %v2361_v32 = vadd.f32 %v2360_v11, %v6106_v62  ;;  %v2449_v44 = vpop.f32.mrf.mxu3 }
 0x201   : > { %v2540_v18 = vpop.f32.mrf.mxu0 }
 0x202   : > { %v2450_v53 = vadd.f32 %v2449_v44, %v2361_v32 }
 0x203   : > { %v2629_v20 = vpop.f32.mrf.mxu1 }
 0x204   : > { %v2539_v51 = vadd.f32 %v2538_v16, %v2450_v53  ;;  %v5326_v53 = vld [vmem:[%s5810_s7 + $0x144] sm:$0xf] }
 0x205   : > { %v4727_v23 = vor.u32 %v5326_v53, %v4724_v0 }
 0x206   : > { %v6459_v29 = vadd.f32 %v2627_v4, %v2539_v51  ;;  %v4660_v4 = vld [vmem:[%s5810_s7 + $0xc8] sm:$0xf0] }
 0x207   : > { %v2362_v24 = vpop.f32.mrf.mxu2  ;;  %3100 = vmatpush.bf16.msrb.mxu3 %v4727_v23 }
 0x208   : > { %v2363_v7 = vadd.f32 %v2362_v24, %v6114_v58  ;;  %v2451_v62 = vpop.f32.mrf.mxu3  ;;  %v5310_v58 = vld [vmem:[%s5810_s7 + $0xc4] sm:$0xf] }
 0x209   : > { %v2543_v16 = vpop.f32.mrf.mxu0  ;;  %v4663_v51 = vor.u32 %v5310_v58, %v4660_v4  ;;  %v5195_v58 = vld [vmem:[#allocation2 + $0x1a8] sm:$0xf0] }
 0x20a   : > { %v2452_v11 = vadd.f32 %v2451_v62, %v2363_v7  ;;  %v4190_v62 = vld [vmem:[#allocation2 + $0x180] sm:$0xf] }
 0x20b   : > { %v2632_v32 = vpop.f32.mrf.mxu1  ;;  %3011 = vmatpush.bf16.msrb.mxu2 %v4663_v51 }
 0x20c   : > { %v2541_v44 = vadd.f32 %v2540_v18, %v2452_v11  ;;  %2680 = vmatmul.bf16.gmra.mxu2 %v6462_v42  ;;  %2858 = vmatmul.bf16.gmra.mxu0 %v6464_v1  ;;  %v5342_v11 = vld [vmem:[%s5810_s7 + $0x1c4] sm:$0xf]  ;;  %v4788_v1 = vld [vmem:[%s5810_s7 + $0x1c8] sm:$0xf0] }
 0x20d   : > { %2769 = vmatmul.bf16.gmra.mxu3 %v6466_v21  ;;  %v5194_v42 = vld [vmem:[#allocation2 + $0x1a0] sm:$0xf0]  ;;  %v4198_v21 = vld [vmem:[#allocation2 + $0x188] sm:$0xf]  ;;  %v4791_v4 = vor.u32 %v5342_v11, %v4788_v1 }
 0x20e   : > { %2947 = vmatmul.bf16.gmra.mxu1 %v5946_v57  ;;  %v6476_v48 = vadd.f32 %v2629_v20, %v2541_v44  ;;  %v5190_v20 = vld [vmem:[#allocation2 + $0x184] sm:$0xf]  ;;  %v4192_v44 = vld [vmem:[#allocation2 + $0x1a4] sm:$0xf0] }
 0x20f   : > { %v2365_v12 = vpop.f32.mrf.mxu2  ;;  %3189 = vmatpush.bf16.msrb.mxu0 %v4791_v4 }
 0x210   : > { %v2366_v18 = vadd.f32 %v2365_v12, %v6130_v59  ;;  %v2454_v63 = vpop.f32.mrf.mxu3  ;;  %v6484_v12 = vor.u32 %v5194_v42, %v4190_v62 }
 0x211   : > { %v2545_v30 = vpop.f32.mrf.mxu0 }
 0x212   : > { %v2455_v24 = vadd.f32 %v2454_v63, %v2366_v18  ;;  %v6488_v18 = vor.u32 %v5190_v20, %v4192_v44  ;;  %v4226_v44 = vld [vmem:[#allocation2 + $0x1c8] sm:$0xf] }
 0x213   : > { %v2634_v7 = vpop.f32.mrf.mxu1 }
 0x214   : > { %v2544_v57 = vadd.f32 %v2543_v16, %v2455_v24  ;;  %v6486_v16 = vor.u32 %v5195_v58, %v4198_v21 }
 0x216   : > { %v6481_v53 = vadd.f32 %v2632_v32, %v2544_v57  ;;  %7400 = vst [vmem:[#allocation107_spill] sm:$0xff] %v6486_v16  ;;  %v5358_v32 = vld [vmem:[%s5810_s7 + $0x244] sm:$0xf]  ;;  %v4852_v57 = vld [vmem:[%s5810_s7 + $0x248] sm:$0xf0] }
 0x217   : > { %v2367_v59 = vpop.f32.mrf.mxu2 }
 0x218   : > { %v2368_v51 = vadd.f32 %v2367_v59, %v6140_v36  ;;  %v2456_v0 = vpop.f32.mrf.mxu3  ;;  %v4855_v36 = vor.u32 %v5358_v32, %v4852_v57  ;;  %v5203_v59 = vld [vmem:[#allocation2 + $0x1e8] sm:$0xf0] }
 0x219   : > { %v2548_v23 = vpop.f32.mrf.mxu0  ;;  %v6502_v32 = vor.u32 %v5203_v59, %v4226_v44  ;;  %v4716_v44 = vld [vmem:[%s5810_s7 + $0x138] sm:$0xf0] }
 0x21a   : > { %v2457_v63 = vadd.f32 %v2456_v0, %v2368_v51  ;;  %3278 = vmatpush.bf16.msrb.mxu1 %v4855_v36  ;;  %v4234_v51 = vld [vmem:[#allocation2 + $0x1d0] sm:$0xf]  ;;  %v5204_v0 = vld [vmem:[#allocation2 + $0x1f0] sm:$0xf0] }
 0x21b   : > { %v2637_v1 = vpop.f32.mrf.mxu1  ;;  %7401 = vst [vmem:[#allocation108_spill] sm:$0xff] %v6502_v32  ;;  %v6504_v57 = vor.u32 %v5204_v0, %v4234_v51 }
 0x21c   : > { %v2546_v24 = vadd.f32 %v2545_v30, %v2457_v63  ;;  %2685 = vmatmul.bf16.gmra.mxu2 %v6484_v12  ;;  %2863 = vmatmul.bf16.gmra.mxu0 %v6486_v16  ;;  %v5199_v63 = vld [vmem:[#allocation2 + $0x1cc] sm:$0xf]  ;;  %v4228_v16 = vld [vmem:[#allocation2 + $0x1ec] sm:$0xf0] }
 0x21d   : > { %2774 = vmatmul.bf16.gmra.mxu3 %v6488_v18  ;;  %7402 = vst [vmem:[#allocation109_spill] sm:$0xff] %v6504_v57  ;;  %v6506_v36 = vor.u32 %v5199_v63, %v4228_v16 }
 0x21e   : > { %2952 = vmatmul.bf16.gmra.mxu1 %v5966_v25  ;;  %v6496_v42 = vadd.f32 %v2634_v7, %v2546_v24 }
 0x21f   : > { %v2370_v21 = vpop.f32.mrf.mxu2  ;;  %7403 = vst [vmem:[#allocation110_spill] sm:$0xff] %v6506_v36 }
 0x220   : > { %v2371_v62 = vadd.f32 %v2370_v21, %v6154_v50  ;;  %v2459_v11 = vpop.f32.mrf.mxu3 }
 0x221   : > { %v2550_v58 = vpop.f32.mrf.mxu0 }
 0x222   : > { %v2460_v30 = vadd.f32 %v2459_v11, %v2371_v62 }
 0x223   : > { %v2639_v4 = vpop.f32.mrf.mxu1 }
 0x224   : > { %v2549_v20 = vadd.f32 %v2548_v23, %v2460_v30  ;;  %v5324_v30 = vld [vmem:[%s5810_s7 + $0x134] sm:$0xf] }
 0x225   : > { %v4719_v51 = vor.u32 %v5324_v30, %v4716_v44 }
 0x226   : > { %v6499_v25 = vadd.f32 %v2637_v1, %v2549_v20  ;;  %v4652_v1 = vld [vmem:[%s5810_s7 + $0xb8] sm:$0xf0] }
 0x227   : > { %v2372_v7 = vpop.f32.mrf.mxu2  ;;  %3101 = vmatpush.bf16.msrb.mxu3 %v4719_v51  ;;  %v5340_v51 = vld [vmem:[%s5810_s7 + $0x1b4] sm:$0xf] }
 0x228   : > { %v2373_v24 = vadd.f32 %v2372_v7, %v6162_v2  ;;  %v2461_v50 = vpop.f32.mrf.mxu3  ;;  %v5308_v2 = vld [vmem:[%s5810_s7 + $0xb4] sm:$0xf] }
 0x229   : > { %v2553_v23 = vpop.f32.mrf.mxu0  ;;  %v4655_v20 = vor.u32 %v5308_v2, %v4652_v1  ;;  %v5213_v2 = vld [vmem:[#allocation2 + $0x238] sm:$0xf0]  ;;  %v5208_v1 = vld [vmem:[#allocation2 + $0x214] sm:$0xf] }
 0x22a   : > { %v2462_v21 = vadd.f32 %v2461_v50, %v2373_v24  ;;  %v4262_v50 = vld [vmem:[#allocation2 + $0x210] sm:$0xf] }
 0x22b   : > { %v2642_v62 = vpop.f32.mrf.mxu1  ;;  %3012 = vmatpush.bf16.msrb.mxu2 %v4655_v20 }
 0x22c   : > { %v2551_v11 = vadd.f32 %v2550_v58, %v2462_v21  ;;  %2690 = vmatmul.bf16.gmra.mxu2 %v6502_v32  ;;  %2868 = vmatmul.bf16.gmra.mxu0 %v6504_v57  ;;  %v5212_v21 = vld [vmem:[#allocation2 + $0x230] sm:$0xf0]  ;;  %v4270_v57 = vld [vmem:[#allocation2 + $0x218] sm:$0xf] }
 0x22d   : > { %2779 = vmatmul.bf16.gmra.mxu3 %v6506_v36  ;;  %v6522_v20 = vor.u32 %v5212_v21, %v4262_v50  ;;  %v5356_v21 = vld [vmem:[%s5810_s7 + $0x234] sm:$0xf] }
 0x22e   : > { %2957 = vmatmul.bf16.gmra.mxu1 %v5986_v61  ;;  %v6516_v59 = vadd.f32 %v2639_v4, %v2551_v11  ;;  %v4264_v4 = vld [vmem:[#allocation2 + $0x234] sm:$0xf0] }
 0x22f   : > { %v2375_v16 = vpop.f32.mrf.mxu2 }
 0x230   : > { %v2376_v0 = vadd.f32 %v2375_v16, %v6178_v49  ;;  %v2464_v58 = vpop.f32.mrf.mxu3  ;;  %v6524_v16 = vor.u32 %v5213_v2, %v4270_v57  ;;  %v4844_v2 = vld [vmem:[%s5810_s7 + $0x238] sm:$0xf0] }
 0x231   : > { %v2555_v63 = vpop.f32.mrf.mxu0 }
 0x232   : > { %v2465_v7 = vadd.f32 %v2464_v58, %v2376_v0  ;;  %7404 = vst [vmem:[#allocation111_spill] sm:$0xff] %v6524_v16  ;;  %v4780_v0 = vld [vmem:[%s5810_s7 + $0x1b8] sm:$0xf0]  ;;  %v6528_v58 = vor.u32 %v5208_v1, %v4264_v4  ;;  %v4847_v4 = vor.u32 %v5356_v21, %v4844_v2 }
 0x233   : > { %v2644_v24 = vpop.f32.mrf.mxu1 }
 0x234   : > { %v2554_v61 = vadd.f32 %v2553_v23, %v2465_v7  ;;  %v4783_v7 = vor.u32 %v5340_v51, %v4780_v0  ;;  %3279 = vmatpush.bf16.msrb.mxu1 %v4847_v4  ;;  %v4306_v51 = vld [vmem:[#allocation2 + $0x260] sm:$0xf]  ;;  %v5222_v0 = vld [vmem:[#allocation2 + $0x280] sm:$0xf0] }
 0x236   : > { %v6519_v11 = vadd.f32 %v2642_v62, %v2554_v61  ;;  %3190 = vmatpush.bf16.msrb.mxu0 %v4783_v7  ;;  %v5217_v7 = vld [vmem:[#allocation2 + $0x25c] sm:$0xf] }
 0x237   : > { %v2377_v30 = vpop.f32.mrf.mxu2 }
 0x238   : > { %v2378_v49 = vadd.f32 %v2377_v30, %v6188_v26  ;;  %v2466_v44 = vpop.f32.mrf.mxu3 }
 0x239   : > { %v2558_v23 = vpop.f32.mrf.mxu0 }
 0x23a   : > { %v2467_v32 = vadd.f32 %v2466_v44, %v2378_v49  ;;  %v4298_v49 = vld [vmem:[#allocation2 + $0x258] sm:$0xf]  ;;  %v5221_v44 = vld [vmem:[#allocation2 + $0x278] sm:$0xf0] }
 0x23b   : > { %v2647_v36 = vpop.f32.mrf.mxu1 }
 0x23c   : > { %v2556_v62 = vadd.f32 %v2555_v63, %v2467_v32  ;;  %2695 = vmatmul.bf16.gmra.mxu2 %v6522_v20  ;;  %2873 = vmatmul.bf16.gmra.mxu0 %v6524_v16  ;;  %v6542_v16 = vor.u32 %v5221_v44, %v4298_v49  ;;  %v5306_v44 = vld [vmem:[%s5810_s7 + $0xa4] sm:$0xf] }
 0x23d   : > { %2784 = vmatmul.bf16.gmra.mxu3 %v6528_v58 }
 0x23e   : > { %2962 = vmatmul.bf16.gmra.mxu1 %v6004_v34  ;;  %v6534_v26 = vadd.f32 %v2644_v24, %v2556_v62  ;;  %v4300_v34 = vld [vmem:[#allocation2 + $0x27c] sm:$0xf0]  ;;  %7405 = vst [vmem:[#allocation112_spill] sm:$0xff] %v6542_v16 }
 0x23f   : > { %v2380_v57 = vpop.f32.mrf.mxu2 }
 0x240   : > { %v2381_v61 = vadd.f32 %v2380_v57, %v6202_v6  ;;  %v2469_v50 = vpop.f32.mrf.mxu3 }
 0x241   : > { %v2560_v1 = vpop.f32.mrf.mxu0 }
 0x242   : > { %v2470_v30 = vadd.f32 %v2469_v50, %v2381_v61  ;;  %v6544_v61 = vor.u32 %v5222_v0, %v4306_v51  ;;  %v6546_v50 = vor.u32 %v5217_v7, %v4300_v34  ;;  %v4644_v51 = vld [vmem:[%s5810_s7 + $0xa8] sm:$0xf0]  ;;  %v5322_v0 = vld [vmem:[%s5810_s7 + $0x124] sm:$0xf] }
 0x243   : > { %v2649_v32 = vpop.f32.mrf.mxu1  ;;  %v4708_v34 = vld [vmem:[%s5810_s7 + $0x128] sm:$0xf0] }
 0x244   : > { %v2559_v63 = vadd.f32 %v2558_v23, %v2470_v30  ;;  %7406 = vst [vmem:[#allocation113_spill] sm:$0xff] %v6544_v61 }
 0x245   : > { %7407 = vst [vmem:[#allocation114_spill] sm:$0xff] %v6546_v50 }
 0x246   : > { %v6539_v24 = vadd.f32 %v2647_v36, %v2559_v63 }
 0x247   : > { %v2382_v62 = vpop.f32.mrf.mxu2 }
 0x248   : > { %v2383_v6 = vadd.f32 %v2382_v62, %v6210_v54  ;;  %v2471_v57 = vpop.f32.mrf.mxu3  ;;  %v7408_v54 = vld [vmem:[#allocation11_spill] sm:$0xff] }
 0x249   : > { %v2839_v23 = vpop.f32.mrf.mxu0 }
 0x24a   : > { %v2472_v21 = vadd.f32 %v2471_v57, %v2383_v6  ;;  %v4711_v57 = vor.u32 %v5322_v0, %v4708_v34  ;;  %v4772_v0 = vld [vmem:[%s5810_s7 + $0x1a8] sm:$0xf0] }
 0x24b   : > { %v6548_v2 = vpop.f32.mrf.mxu1 }
 0x24c   : > { %v2561_v36 = vadd.f32 %v2560_v1, %v2472_v21  ;;  %2700 = vmatmul.bf16.gmra.mxu2 %v6542_v16  ;;  %2878 = vmatmul.bf16.gmra.mxu0 %v6544_v61  ;;  %v4647_v1 = vor.u32 %v5306_v44, %v4644_v51  ;;  %v4336_v61 = vld [vmem:[#allocation2 + $0x2c4] sm:$0xf0]  ;;  %v5338_v51 = vld [vmem:[%s5810_s7 + $0x1a4] sm:$0xf] }
 0x24d   : > { %2789 = vmatmul.bf16.gmra.mxu3 %v6546_v50 }
 0x24e   : > { %2967 = vmatmul.bf16.gmra.mxu1 %v7408_v54  ;;  %v6554_v4 = vadd.f32 %v2649_v32, %v2561_v36  ;;  %3013 = vmatpush.bf16.msrb.mxu2 %v4647_v1  ;;  %v4334_v32 = vld [vmem:[#allocation2 + $0x2a0] sm:$0xf]  ;;  %v5230_v36 = vld [vmem:[#allocation2 + $0x2c0] sm:$0xf0]  ;;  %v5231_v54 = vld [vmem:[#allocation2 + $0x2c8] sm:$0xf0] }
 0x24f   : > { %v2661_v30 = vpop.f32.mrf.mxu2  ;;  %3102 = vmatpush.bf16.msrb.mxu3 %v4711_v57  ;;  %v6568_v44 = vor.u32 %v5230_v36, %v4334_v32  ;;  %v5354_v36 = vld [vmem:[%s5810_s7 + $0x224] sm:$0xf] }
 0x250   : > { %v2662_v63 = vadd.f32 %v2661_v30, %v6227_v10  ;;  %v2750_v49 = vpop.f32.mrf.mxu3  ;;  %v4342_v10 = vld [vmem:[#allocation2 + $0x2a8] sm:$0xf]  ;;  %v5226_v30 = vld [vmem:[#allocation2 + $0x2a4] sm:$0xf] }
 0x251   : > { %v2841_v7 = vpop.f32.mrf.mxu0  ;;  %7409 = vst [vmem:[#allocation11_spill] sm:$0xff] %v6568_v44  ;;  %v6574_v34 = vor.u32 %v5226_v30, %v4336_v61 }
 0x252   : > { %v2751_v62 = vadd.f32 %v2750_v49, %v2662_v63 }
 0x253   : > { %v6562_v6 = vpop.f32.mrf.mxu1  ;;  %7411 = vst [vmem:[#allocation116_spill] sm:$0xff] %v6574_v34 }
 0x254   : > { %v2840_v21 = vadd.f32 %v2839_v23, %v2751_v62  ;;  %v6570_v23 = vor.u32 %v5231_v54, %v4342_v10  ;;  %v4775_v62 = vor.u32 %v5338_v51, %v4772_v0  ;;  %v4836_v10 = vld [vmem:[%s5810_s7 + $0x228] sm:$0xf0]  ;;  %v4370_v51 = vld [vmem:[#allocation2 + $0x2e8] sm:$0xf] }
 0x255   : > { %v4839_v30 = vor.u32 %v5354_v36, %v4836_v10  ;;  %v5239_v0 = vld [vmem:[#allocation2 + $0x308] sm:$0xf0] }
 0x256   : > { %3784 = vst [vmem:[%s6564_s19] sm:$0xff] %v2840_v21  ;;  %3191 = vmatpush.bf16.msrb.mxu0 %v4775_v62  ;;  %v4378_v62 = vld [vmem:[#allocation2 + $0x2f0] sm:$0xf] }
 0x257   : > { %v2663_v16 = vpop.f32.mrf.mxu2  ;;  %7410 = vst [vmem:[#allocation115_spill] sm:$0xff] %v6570_v23  ;;  %3280 = vmatpush.bf16.msrb.mxu1 %v4839_v30 }
 0x258   : > { %v2664_v63 = vadd.f32 %v2663_v16, %v6244_v28  ;;  %v2752_v49 = vpop.f32.mrf.mxu3  ;;  %v7412_v28 = vld [vmem:[#allocation14_spill] sm:$0xff] }
 0x259   : > { %v2844_v1 = vpop.f32.mrf.mxu0 }
 0x25a   : > { %v2753_v57 = vadd.f32 %v2752_v49, %v2664_v63 }
 0x25b   : > { %v6576_v50 = vpop.f32.mrf.mxu1 }
 0x25c   : > { %v2842_v21 = vadd.f32 %v2841_v7, %v2753_v57  ;;  %2705 = vmatmul.bf16.gmra.mxu2 %v6568_v44  ;;  %2883 = vmatmul.bf16.gmra.mxu0 %v6570_v23  ;;  %v5240_v57 = vld [vmem:[#allocation2 + $0x310] sm:$0xf0]  ;;  %v4372_v23 = vld [vmem:[#allocation2 + $0x30c] sm:$0xf0]  ;;  %v6590_v44 = vor.u32 %v5239_v0, %v4370_v51  ;;  %v4636_v0 = vld [vmem:[%s5810_s7 + $0x98] sm:$0xf0] }
 0x25d   : > { %2794 = vmatmul.bf16.gmra.mxu3 %v6574_v34  ;;  %v5304_v51 = vld [vmem:[%s5810_s7 + $0x94] sm:$0xf] }
 0x25e   : > { %2972 = vmatmul.bf16.gmra.mxu1 %v7412_v28  ;;  %3786 = vst [vmem:[%s6564_s19 + $0x10] sm:$0xff] %v2842_v21  ;;  %v5235_v28 = vld [vmem:[#allocation2 + $0x2ec] sm:$0xf] }
 0x25f   : > { %v2666_v16 = vpop.f32.mrf.mxu2  ;;  %7413 = vst [vmem:[#allocation14_spill] sm:$0xff] %v6590_v44 }
 0x260   : > { %v2667_v32 = vadd.f32 %v2666_v16, %v6247_v9  ;;  %v2755_v61 = vpop.f32.mrf.mxu3 }
 0x261   : > { %v2846_v54 = vpop.f32.mrf.mxu0 }
 0x262   : > { %v2756_v63 = vadd.f32 %v2755_v61, %v2667_v32  ;;  %v6592_v32 = vor.u32 %v5240_v57, %v4378_v62  ;;  %v4639_v57 = vor.u32 %v5304_v51, %v4636_v0 }
 0x263   : > { %v6586_v7 = vpop.f32.mrf.mxu1 }
 0x264   : > { %v2845_v49 = vadd.f32 %v2844_v1, %v2756_v63  ;;  %7414 = vst [vmem:[#allocation117_spill] sm:$0xff] %v6592_v32  ;;  %v6594_v1 = vor.u32 %v5235_v28, %v4372_v23  ;;  %v5320_v28 = vld [vmem:[%s5810_s7 + $0x114] sm:$0xf]  ;;  %3014 = vmatpush.bf16.msrb.mxu2 %v4639_v57 }
 0x265   : > { %v5336_v57 = vld [vmem:[%s5810_s7 + $0x194] sm:$0xf] }
 0x266   : > { %3788 = vst [vmem:[%s6564_s19 + $0x20] sm:$0xff] %v2845_v49 }
 0x267   : > { %v2668_v21 = vpop.f32.mrf.mxu2  ;;  %7415 = vst [vmem:[#allocation118_spill] sm:$0xff] %v6594_v1 }
 0x268   : > { %v2669_v9 = vadd.f32 %v2668_v21, %v6266_v27  ;;  %v2757_v16 = vpop.f32.mrf.mxu3  ;;  %v7416_v27 = vld [vmem:[#allocation17_spill] sm:$0xff] }
 0x269   : > { %v2849_v61 = vpop.f32.mrf.mxu0 }
 0x26a   : > { %v2758_v36 = vadd.f32 %v2757_v16, %v2669_v9 }
 0x26b   : > { %v6596_v10 = vpop.f32.mrf.mxu1 }
 0x26c   : > { %v2847_v30 = vadd.f32 %v2846_v54, %v2758_v36  ;;  %2710 = vmatmul.bf16.gmra.mxu2 %v6590_v44  ;;  %2888 = vmatmul.bf16.gmra.mxu0 %v6592_v32  ;;  %v4700_v54 = vld [vmem:[%s5810_s7 + $0x118] sm:$0xf0]  ;;  %v5244_v32 = vld [vmem:[#allocation2 + $0x334] sm:$0xf]  ;;  %v4408_v44 = vld [vmem:[#allocation2 + $0x354] sm:$0xf0] }
 0x26d   : > { %2799 = vmatmul.bf16.gmra.mxu3 %v6594_v1  ;;  %v4703_v16 = vor.u32 %v5320_v28, %v4700_v54  ;;  %v4764_v28 = vld [vmem:[%s5810_s7 + $0x198] sm:$0xf0]  ;;  %v6618_v54 = vor.u32 %v5244_v32, %v4408_v44  ;;  %v5352_v32 = vld [vmem:[%s5810_s7 + $0x214] sm:$0xf] }
 0x26e   : > { %2977 = vmatmul.bf16.gmra.mxu1 %v7416_v27  ;;  %3790 = vst [vmem:[%s6564_s19 + $0x30] sm:$0xff] %v2847_v30  ;;  %v4406_v27 = vld [vmem:[#allocation2 + $0x330] sm:$0xf]  ;;  %v5248_v30 = vld [vmem:[#allocation2 + $0x350] sm:$0xf0] }
 0x26f   : > { %v2671_v63 = vpop.f32.mrf.mxu2  ;;  %3103 = vmatpush.bf16.msrb.mxu3 %v4703_v16  ;;  %7419 = vst [vmem:[#allocation120_spill] sm:$0xff] %v6618_v54 }
 0x270   : > { %v2672_v49 = vadd.f32 %v2671_v63, %v6271_v14  ;;  %v2760_v23 = vpop.f32.mrf.mxu3  ;;  %v4414_v14 = vld [vmem:[#allocation2 + $0x338] sm:$0xf]  ;;  %v5249_v63 = vld [vmem:[#allocation2 + $0x358] sm:$0xf0] }
 0x271   : > { %v2851_v62 = vpop.f32.mrf.mxu0 }
 0x272   : > { %v2761_v21 = vadd.f32 %v2760_v23, %v2672_v49  ;;  %v6612_v49 = vor.u32 %v5248_v30, %v4406_v27  ;;  %v6614_v23 = vor.u32 %v5249_v63, %v4414_v14  ;;  %v4828_v30 = vld [vmem:[%s5810_s7 + $0x218] sm:$0xf0] }
 0x273   : > { %v6608_v9 = vpop.f32.mrf.mxu1  ;;  %v4831_v63 = vor.u32 %v5352_v32, %v4828_v30 }
 0x274   : > { %v2850_v36 = vadd.f32 %v2849_v61, %v2761_v21  ;;  %7417 = vst [vmem:[#allocation17_spill] sm:$0xff] %v6612_v49  ;;  %v4767_v21 = vor.u32 %v5336_v57, %v4764_v28  ;;  %v4442_v57 = vld [vmem:[#allocation2 + $0x378] sm:$0xf]  ;;  %v5257_v28 = vld [vmem:[#allocation2 + $0x398] sm:$0xf0] }
 0x275   : > { %7418 = vst [vmem:[#allocation119_spill] sm:$0xff] %v6614_v23  ;;  %3281 = vmatpush.bf16.msrb.mxu1 %v4831_v63 }
 0x276   : > { %3792 = vst [vmem:[%s6564_s19 + $0x40] sm:$0xff] %v2850_v36  ;;  %3192 = vmatpush.bf16.msrb.mxu0 %v4767_v21  ;;  %v4450_v21 = vld [vmem:[#allocation2 + $0x380] sm:$0xf] }
 0x277   : > { %v2673_v1 = vpop.f32.mrf.mxu2 }
 0x278   : > { %v2674_v51 = vadd.f32 %v2673_v1, %v6288_v56  ;;  %v2762_v0 = vpop.f32.mrf.mxu3  ;;  %v7420_v56 = vld [vmem:[#allocation20_spill] sm:$0xff] }
 0x279   : > { %v2854_v61 = vpop.f32.mrf.mxu0 }
 0x27a   : > { %v2763_v16 = vadd.f32 %v2762_v0, %v2674_v51 }
 0x27b   : > { %v6620_v34 = vpop.f32.mrf.mxu1 }
 0x27c   : > { %v2852_v36 = vadd.f32 %v2851_v62, %v2763_v16  ;;  %2715 = vmatmul.bf16.gmra.mxu2 %v6612_v49  ;;  %2893 = vmatmul.bf16.gmra.mxu0 %v6614_v23  ;;  %v5258_v16 = vld [vmem:[#allocation2 + $0x3a0] sm:$0xf0]  ;;  %v4444_v23 = vld [vmem:[#allocation2 + $0x39c] sm:$0xf0]  ;;  %v6634_v49 = vor.u32 %v5257_v28, %v4442_v57  ;;  %v4628_v28 = vld [vmem:[%s5810_s7 + $0x88] sm:$0xf0] }
 0x27d   : > { %2804 = vmatmul.bf16.gmra.mxu3 %v6618_v54  ;;  %v5302_v57 = vld [vmem:[%s5810_s7 + $0x84] sm:$0xf] }
 0x27e   : > { %2982 = vmatmul.bf16.gmra.mxu1 %v7420_v56  ;;  %3794 = vst [vmem:[%s6564_s19 + $0x50] sm:$0xff] %v2852_v36  ;;  %v5253_v56 = vld [vmem:[#allocation2 + $0x37c] sm:$0xf] }
 0x27f   : > { %v2676_v1 = vpop.f32.mrf.mxu2  ;;  %7421 = vst [vmem:[#allocation20_spill] sm:$0xff] %v6634_v49 }
 0x280   : > { %v2677_v27 = vadd.f32 %v2676_v1, %v6291_v46  ;;  %v2765_v44 = vpop.f32.mrf.mxu3 }
 0x281   : > { %v2856_v14 = vpop.f32.mrf.mxu0 }
 0x282   : > { %v2766_v51 = vadd.f32 %v2765_v44, %v2677_v27  ;;  %v6636_v27 = vor.u32 %v5258_v16, %v4450_v21  ;;  %v4631_v16 = vor.u32 %v5302_v57, %v4628_v28 }
 0x283   : > { %v6630_v62 = vpop.f32.mrf.mxu1 }
 0x284   : > { %v2855_v0 = vadd.f32 %v2854_v61, %v2766_v51  ;;  %7422 = vst [vmem:[#allocation121_spill] sm:$0xff] %v6636_v27  ;;  %v6638_v61 = vor.u32 %v5253_v56, %v4444_v23  ;;  %v5318_v56 = vld [vmem:[%s5810_s7 + $0x104] sm:$0xf]  ;;  %3015 = vmatpush.bf16.msrb.mxu2 %v4631_v16 }
 0x285   : > { %v5334_v16 = vld [vmem:[%s5810_s7 + $0x184] sm:$0xf] }
 0x286   : > { %3796 = vst [vmem:[%s6564_s19 + $0x60] sm:$0xff] %v2855_v0 }
 0x287   : > { %v2678_v36 = vpop.f32.mrf.mxu2  ;;  %7423 = vst [vmem:[#allocation122_spill] sm:$0xff] %v6638_v61 }
 0x288   : > { %v2679_v46 = vadd.f32 %v2678_v36, %v6310_v55  ;;  %v2767_v1 = vpop.f32.mrf.mxu3  ;;  %v7424_v55 = vld [vmem:[#allocation23_spill] sm:$0xff] }
 0x289   : > { %v2859_v44 = vpop.f32.mrf.mxu0 }
 0x28a   : > { %v2768_v32 = vadd.f32 %v2767_v1, %v2679_v46 }
 0x28b   : > { %v6640_v30 = vpop.f32.mrf.mxu1 }
 0x28c   : > { %v2857_v63 = vadd.f32 %v2856_v14, %v2768_v32  ;;  %2720 = vmatmul.bf16.gmra.mxu2 %v6634_v49  ;;  %2898 = vmatmul.bf16.gmra.mxu0 %v6636_v27  ;;  %v4692_v14 = vld [vmem:[%s5810_s7 + $0x108] sm:$0xf0]  ;;  %v5262_v27 = vld [vmem:[#allocation2 + $0x3c4] sm:$0xf]  ;;  %v4480_v49 = vld [vmem:[#allocation2 + $0x3e4] sm:$0xf0] }
 0x28d   : > { %2809 = vmatmul.bf16.gmra.mxu3 %v6638_v61  ;;  %v4695_v1 = vor.u32 %v5318_v56, %v4692_v14  ;;  %v4756_v56 = vld [vmem:[%s5810_s7 + $0x188] sm:$0xf0]  ;;  %v6662_v14 = vor.u32 %v5262_v27, %v4480_v49  ;;  %v5350_v27 = vld [vmem:[%s5810_s7 + $0x204] sm:$0xf] }
 0x28e   : > { %2987 = vmatmul.bf16.gmra.mxu1 %v7424_v55  ;;  %3798 = vst [vmem:[%s6564_s19 + $0x70] sm:$0xff] %v2857_v63  ;;  %v4478_v55 = vld [vmem:[#allocation2 + $0x3c0] sm:$0xf]  ;;  %v5266_v63 = vld [vmem:[#allocation2 + $0x3e0] sm:$0xf0] }
 0x28f   : > { %v2681_v51 = vpop.f32.mrf.mxu2  ;;  %3104 = vmatpush.bf16.msrb.mxu3 %v4695_v1  ;;  %7427 = vst [vmem:[#allocation124_spill] sm:$0xff] %v6662_v14 }
 0x290   : > { %v2682_v0 = vadd.f32 %v2681_v51, %v6315_v15  ;;  %v2770_v23 = vpop.f32.mrf.mxu3  ;;  %v4486_v15 = vld [vmem:[#allocation2 + $0x3c8] sm:$0xf]  ;;  %v5267_v51 = vld [vmem:[#allocation2 + $0x3e8] sm:$0xf0] }
 0x291   : > { %v2861_v21 = vpop.f32.mrf.mxu0 }
 0x292   : > { %v2771_v36 = vadd.f32 %v2770_v23, %v2682_v0  ;;  %v6656_v0 = vor.u32 %v5266_v63, %v4478_v55  ;;  %v6658_v23 = vor.u32 %v5267_v51, %v4486_v15  ;;  %v4820_v63 = vld [vmem:[%s5810_s7 + $0x208] sm:$0xf0] }
 0x293   : > { %v6652_v46 = vpop.f32.mrf.mxu1  ;;  %v4823_v51 = vor.u32 %v5350_v27, %v4820_v63 }
 0x294   : > { %v2860_v32 = vadd.f32 %v2859_v44, %v2771_v36  ;;  %7425 = vst [vmem:[#allocation23_spill] sm:$0xff] %v6656_v0  ;;  %v4759_v36 = vor.u32 %v5334_v16, %v4756_v56  ;;  %v4514_v16 = vld [vmem:[#allocation2 + $0x408] sm:$0xf]  ;;  %v5275_v56 = vld [vmem:[#allocation2 + $0x428] sm:$0xf0] }
 0x295   : > { %7426 = vst [vmem:[#allocation123_spill] sm:$0xff] %v6658_v23  ;;  %3282 = vmatpush.bf16.msrb.mxu1 %v4823_v51 }
 0x296   : > { %3800 = vst [vmem:[%s6564_s19 + $0x80] sm:$0xff] %v2860_v32  ;;  %3193 = vmatpush.bf16.msrb.mxu0 %v4759_v36  ;;  %v4522_v36 = vld [vmem:[#allocation2 + $0x410] sm:$0xf] }
 0x297   : > { %v2683_v61 = vpop.f32.mrf.mxu2 }
 0x298   : > { %v2684_v57 = vadd.f32 %v2683_v61, %v6332_v40  ;;  %v2772_v28 = vpop.f32.mrf.mxu3  ;;  %v7428_v40 = vld [vmem:[#allocation26_spill] sm:$0xff] }
 0x299   : > { %v2864_v44 = vpop.f32.mrf.mxu0 }
 0x29a   : > { %v2773_v1 = vadd.f32 %v2772_v28, %v2684_v57 }
 0x29b   : > { %v6664_v54 = vpop.f32.mrf.mxu1 }
 0x29c   : > { %v2862_v32 = vadd.f32 %v2861_v21, %v2773_v1  ;;  %2725 = vmatmul.bf16.gmra.mxu2 %v6656_v0  ;;  %2903 = vmatmul.bf16.gmra.mxu0 %v6658_v23  ;;  %v5276_v1 = vld [vmem:[#allocation2 + $0x430] sm:$0xf0]  ;;  %v4516_v23 = vld [vmem:[#allocation2 + $0x42c] sm:$0xf0]  ;;  %v6678_v0 = vor.u32 %v5275_v56, %v4514_v16  ;;  %v4940_v56 = vld [vmem:[%s5810_s7 + $0x2f8] sm:$0xf0] }
 0x29d   : > { %2814 = vmatmul.bf16.gmra.mxu3 %v6662_v14  ;;  %v5380_v16 = vld [vmem:[%s5810_s7 + $0x2f4] sm:$0xf] }
 0x29e   : > { %2992 = vmatmul.bf16.gmra.mxu1 %v7428_v40  ;;  %3802 = vst [vmem:[%s6564_s19 + $0x90] sm:$0xff] %v2862_v32  ;;  %v5271_v40 = vld [vmem:[#allocation2 + $0x40c] sm:$0xf] }
 0x29f   : > { %v2686_v61 = vpop.f32.mrf.mxu2  ;;  %7429 = vst [vmem:[#allocation26_spill] sm:$0xff] %v6678_v0 }
 0x2a0   : > { %v2687_v55 = vadd.f32 %v2686_v61, %v6335_v3  ;;  %v2775_v49 = vpop.f32.mrf.mxu3 }
 0x2a1   : > { %v2866_v15 = vpop.f32.mrf.mxu0 }
 0x2a2   : > { %v2776_v57 = vadd.f32 %v2775_v49, %v2687_v55  ;;  %v6680_v55 = vor.u32 %v5276_v1, %v4522_v36  ;;  %v4943_v1 = vor.u32 %v5380_v16, %v4940_v56 }
 0x2a3   : > { %v6674_v21 = vpop.f32.mrf.mxu1 }
 0x2a4   : > { %v2865_v28 = vadd.f32 %v2864_v44, %v2776_v57  ;;  %7430 = vst [vmem:[#allocation125_spill] sm:$0xff] %v6680_v55  ;;  %v6682_v44 = vor.u32 %v5271_v40, %v4516_v23  ;;  %v5396_v40 = vld [vmem:[%s5810_s7 + $0x374] sm:$0xf]  ;;  %3364 = vmatpush.bf16.msra.mxu2 %v4943_v1 }
 0x2a5   : > { %v5412_v1 = vld [vmem:[%s5810_s7 + $0x3f4] sm:$0xf] }
 0x2a6   : > { %3804 = vst [vmem:[%s6564_s19 + $0xa0] sm:$0xff] %v2865_v28 }
 0x2a7   : > { %v2688_v32 = vpop.f32.mrf.mxu2  ;;  %7431 = vst [vmem:[#allocation126_spill] sm:$0xff] %v6682_v44 }
 0x2a8   : > { %v2689_v3 = vadd.f32 %v2688_v32, %v6354_v35  ;;  %v2777_v61 = vpop.f32.mrf.mxu3  ;;  %v7432_v35 = vld [vmem:[#allocation29_spill] sm:$0xff] }
 0x2a9   : > { %v2869_v49 = vpop.f32.mrf.mxu0 }
 0x2aa   : > { %v2778_v27 = vadd.f32 %v2777_v61, %v2689_v3 }
 0x2ab   : > { %v6684_v63 = vpop.f32.mrf.mxu1 }
 0x2ac   : > { %v2867_v51 = vadd.f32 %v2866_v15, %v2778_v27  ;;  %2730 = vmatmul.bf16.gmra.mxu2 %v6678_v0  ;;  %2908 = vmatmul.bf16.gmra.mxu0 %v6680_v55  ;;  %v5004_v15 = vld [vmem:[%s5810_s7 + $0x378] sm:$0xf0]  ;;  %v5280_v55 = vld [vmem:[#allocation2 + $0x454] sm:$0xf]  ;;  %v4552_v0 = vld [vmem:[#allocation2 + $0x474] sm:$0xf0] }
 0x2ad   : > { %2819 = vmatmul.bf16.gmra.mxu3 %v6682_v44  ;;  %v5007_v61 = vor.u32 %v5396_v40, %v5004_v15  ;;  %v5068_v40 = vld [vmem:[%s5810_s7 + $0x3f8] sm:$0xf0]  ;;  %v6706_v15 = vor.u32 %v5280_v55, %v4552_v0 }
 0x2ae   : > { %2997 = vmatmul.bf16.gmra.mxu1 %v7432_v35  ;;  %3806 = vst [vmem:[%s6564_s19 + $0xb0] sm:$0xff] %v2867_v51  ;;  %v4550_v35 = vld [vmem:[#allocation2 + $0x450] sm:$0xf]  ;;  %v5284_v51 = vld [vmem:[#allocation2 + $0x470] sm:$0xf0] }
 0x2af   : > { %v2691_v57 = vpop.f32.mrf.mxu2  ;;  %3453 = vmatpush.bf16.msra.mxu3 %v5007_v61 }
 0x2b0   : > { %v2692_v28 = vadd.f32 %v2691_v57, %v6359_v17  ;;  %v2780_v23 = vpop.f32.mrf.mxu3  ;;  %v4558_v17 = vld [vmem:[#allocation2 + $0x458] sm:$0xf]  ;;  %v5285_v57 = vld [vmem:[#allocation2 + $0x478] sm:$0xf0] }
 0x2b1   : > { %v2871_v36 = vpop.f32.mrf.mxu0 }
 0x2b2   : > { %v2781_v32 = vadd.f32 %v2780_v23, %v2692_v28  ;;  %v6700_v28 = vor.u32 %v5284_v51, %v4550_v35  ;;  %v6702_v23 = vor.u32 %v5285_v57, %v4558_v17  ;;  %v5428_v35 = vld [vmem:[%s5810_s7 + $0x474] sm:$0xf]  ;;  %v5132_v51 = vld [vmem:[%s5810_s7 + $0x478] sm:$0xf0] }
 0x2b3   : > { %v6696_v3 = vpop.f32.mrf.mxu1  ;;  %v5135_v57 = vor.u32 %v5428_v35, %v5132_v51 }
 0x2b4   : > { %v2870_v27 = vadd.f32 %v2869_v49, %v2781_v32  ;;  %7433 = vst [vmem:[#allocation29_spill] sm:$0xff] %v6700_v28  ;;  %v5071_v32 = vor.u32 %v5412_v1, %v5068_v40 }
 0x2b5   : > { %7434 = vst [vmem:[#allocation127_spill] sm:$0xff] %v6702_v23  ;;  %3631 = vmatpush.bf16.msra.mxu1 %v5135_v57  ;;  %v5378_v57 = vld [vmem:[%s5810_s7 + $0x2e4] sm:$0xf] }
 0x2b6   : > { %3808 = vst [vmem:[%s6564_s19 + $0xc0] sm:$0xff] %v2870_v27  ;;  %3542 = vmatpush.bf16.msra.mxu0 %v5071_v32 }
 0x2b7   : > { %v2693_v44 = vpop.f32.mrf.mxu2 }
 0x2b8   : > { %v2694_v16 = vadd.f32 %v2693_v44, %v6376_v13  ;;  %v2782_v56 = vpop.f32.mrf.mxu3  ;;  %v7435_v13 = vld [vmem:[#allocation32_spill] sm:$0xff] }
 0x2b9   : > { %v2874_v49 = vpop.f32.mrf.mxu0 }
 0x2ba   : > { %v2783_v61 = vadd.f32 %v2782_v56, %v2694_v16 }
 0x2bb   : > { %v6708_v14 = vpop.f32.mrf.mxu1 }
 0x2bc   : > { %v2872_v27 = vadd.f32 %v2871_v36, %v2783_v61  ;;  %2735 = vmatmul.bf16.gmra.mxu2 %v6700_v28  ;;  %2913 = vmatmul.bf16.gmra.mxu0 %v6702_v23 }
 0x2bd   : > { %2824 = vmatmul.bf16.gmra.mxu3 %v6706_v15 }
 0x2be   : > { %3002 = vmatmul.bf16.gmra.mxu1 %v7435_v13  ;;  %3810 = vst [vmem:[%s6564_s19 + $0xd0] sm:$0xff] %v2872_v27 }
 0x2bf   : > { %v2696_v44 = vpop.f32.mrf.mxu2 }
 0x2c0   : > { %v2697_v0 = vadd.f32 %v2696_v44, %v6379_v43  ;;  %v2785_v55 = vpop.f32.mrf.mxu3  ;;  %v7436_v44 = vld [vmem:[#allocation13_spill] sm:$0xff] }
 0x2c1   : > { %v2876_v17 = vpop.f32.mrf.mxu0 }
 0x2c2   : > { %v2786_v16 = vadd.f32 %v2785_v55, %v2697_v0  ;;  %v7437_v0 = vld [vmem:[#allocation37_spill] sm:$0xff]  ;;  %v7438_v55 = vld [vmem:[#allocation35_spill] sm:$0xff] }
 0x2c3   : > { %v6718_v36 = vpop.f32.mrf.mxu1 }
 0x2c4   : > { %v2875_v56 = vadd.f32 %v2874_v49, %v2786_v16  ;;  %v7439_v49 = vld [vmem:[#allocation36_spill] sm:$0xff] }
 0x2c5   : > { %v4932_v16 = vld [vmem:[%s5810_s7 + $0x2e8] sm:$0xf0] }
 0x2c6   : > { %3812 = vst [vmem:[%s6564_s19 + $0xe0] sm:$0xff] %v2875_v56 }
 0x2c7   : > { %v2698_v1 = vpop.f32.mrf.mxu2 }
 0x2c8   : > { %v2699_v40 = vadd.f32 %v2698_v1, %v6396_v60  ;;  %v2787_v32 = vpop.f32.mrf.mxu3  ;;  %v5394_v1 = vld [vmem:[%s5810_s7 + $0x364] sm:$0xf] }
 0x2c9   : > { %v2879_v61 = vpop.f32.mrf.mxu0 }
 0x2ca   : > { %v2788_v43 = vadd.f32 %v2787_v32, %v2699_v40  ;;  %v4996_v40 = vld [vmem:[%s5810_s7 + $0x368] sm:$0xf0] }
 0x2cb   : > { %v6722_v27 = vpop.f32.mrf.mxu1 }
 0x2cc   : > { %v2877_v13 = vadd.f32 %v2876_v17, %v2788_v43  ;;  %3016 = vmatmul.bf16.vlgmr.msrb.gmra.mxu2 %v7436_v44  ;;  %3194 = vmatmul.bf16.vlgmr.msrb.gmra.mxu0 %v7437_v0  ;;  %v4935_v17 = vor.u32 %v5378_v57, %v4932_v16  ;;  %v4999_v44 = vor.u32 %v5394_v1, %v4996_v40  ;;  %v7442_v1 = vld [vmem:[#allocation39_spill] sm:$0xff] }
 0x2cd   : > { %3105 = vmatmul.bf16.vlgmr.msrb.gmra.mxu3 %v7438_v55 }
 0x2ce   : > { %3283 = vmatmul.bf16.vlgmr.msrb.gmra.mxu1 %v7439_v49  ;;  %3814 = vst [vmem:[%s6564_s19 + $0xf0] sm:$0xff] %v2877_v13  ;;  %3365 = vmatpush.bf16.msra.mxu2 %v4935_v17  ;;  %v5410_v49 = vld [vmem:[%s5810_s7 + $0x3e4] sm:$0xf]  ;;  %v7440_v17 = vld [vmem:[#allocation16_spill] sm:$0xff] }
 0x2cf   : > { %v2701_v35 = vpop.f32.mrf.mxu2  ;;  %3454 = vmatpush.bf16.msra.mxu3 %v4999_v44 }
 0x2d0   : > { %v2702_v60 = vadd.f32 %v2701_v35, %v6401_v22  ;;  %v2790_v51 = vpop.f32.mrf.mxu3  ;;  %v5060_v35 = vld [vmem:[%s5810_s7 + $0x3e8] sm:$0xf0] }
 0x2d1   : > { %v2881_v56 = vpop.f32.mrf.mxu0  ;;  %v5063_v16 = vor.u32 %v5410_v49, %v5060_v35 }
 0x2d2   : > { %v2791_v32 = vadd.f32 %v2790_v51, %v2702_v60 }
 0x2d3   : > { %v6734_v43 = vpop.f32.mrf.mxu1  ;;  %3543 = vmatpush.bf16.msra.mxu0 %v5063_v16 }
 0x2d4   : > { %v2880_v0 = vadd.f32 %v2879_v61, %v2791_v32  ;;  %v7441_v61 = vld [vmem:[#allocation41_spill] sm:$0xff] }
 0x2d6   : > { %3816 = vst [vmem:[%s6564_s19 + $0x100] sm:$0xff] %v2880_v0  ;;  %v5426_v0 = vld [vmem:[%s5810_s7 + $0x464] sm:$0xf] }
 0x2d7   : > { %v2703_v13 = vpop.f32.mrf.mxu2 }
 0x2d8   : > { %v2704_v22 = vadd.f32 %v2703_v13, %v6416_v52  ;;  %v2792_v55 = vpop.f32.mrf.mxu3  ;;  %v7443_v52 = vld [vmem:[#allocation40_spill] sm:$0xff] }
 0x2d9   : > { %v2884_v57 = vpop.f32.mrf.mxu0  ;;  %v5124_v13 = vld [vmem:[%s5810_s7 + $0x468] sm:$0xf0] }
 0x2da   : > { %v2793_v23 = vadd.f32 %v2792_v55, %v2704_v22  ;;  %v5127_v55 = vor.u32 %v5426_v0, %v5124_v13  ;;  %v5376_v13 = vld [vmem:[%s5810_s7 + $0x2d4] sm:$0xf] }
 0x2db   : > { %v6740_v60 = vpop.f32.mrf.mxu1 }
 0x2dc   : > { %v2882_v51 = vadd.f32 %v2881_v56, %v2793_v23  ;;  %3021 = vmatmul.bf16.gmra.mxu2 %v7440_v17  ;;  %3199 = vmatmul.bf16.gmra.mxu0 %v7441_v61 }
 0x2dd   : > { %3110 = vmatmul.bf16.gmra.mxu3 %v7442_v1  ;;  %3632 = vmatpush.bf16.msra.mxu1 %v5127_v55  ;;  %v4924_v55 = vld [vmem:[%s5810_s7 + $0x2d8] sm:$0xf0] }
 0x2de   : > { %3288 = vmatmul.bf16.gmra.mxu1 %v7443_v52  ;;  %3818 = vst [vmem:[%s6564_s19 + $0x110] sm:$0xff] %v2882_v51  ;;  %v7444_v52 = vld [vmem:[#allocation19_spill] sm:$0xff] }
 0x2df   : > { %v2706_v40 = vpop.f32.mrf.mxu2 }
 0x2e0   : > { %v2707_v32 = vadd.f32 %v2706_v40, %v6419_v41  ;;  %v2795_v44 = vpop.f32.mrf.mxu3  ;;  %v7445_v40 = vld [vmem:[#allocation45_spill] sm:$0xff] }
 0x2e1   : > { %v2886_v22 = vpop.f32.mrf.mxu0 }
 0x2e2   : > { %v2796_v49 = vadd.f32 %v2795_v44, %v2707_v32  ;;  %v7446_v32 = vld [vmem:[#allocation43_spill] sm:$0xff] }
 0x2e3   : > { %v6750_v23 = vpop.f32.mrf.mxu1 }
 0x2e4   : > { %v2885_v56 = vadd.f32 %v2884_v57, %v2796_v49  ;;  %v7447_v57 = vld [vmem:[#allocation44_spill] sm:$0xff] }
 0x2e6   : > { %3820 = vst [vmem:[%s6564_s19 + $0x120] sm:$0xff] %v2885_v56  ;;  %v5392_v56 = vld [vmem:[%s5810_s7 + $0x354] sm:$0xf] }
 0x2e7   : > { %v2708_v35 = vpop.f32.mrf.mxu2 }
 0x2e8   : > { %v2709_v16 = vadd.f32 %v2708_v35, %v6436_v45  ;;  %v2797_v51 = vpop.f32.mrf.mxu3  ;;  %v4988_v35 = vld [vmem:[%s5810_s7 + $0x358] sm:$0xf0] }
 0x2e9   : > { %v2889_v17 = vpop.f32.mrf.mxu0 }
 0x2ea   : > { %v2798_v41 = vadd.f32 %v2797_v51, %v2709_v16 }
 0x2eb   : > { %v6754_v61 = vpop.f32.mrf.mxu1 }
 0x2ec   : > { %v2887_v1 = vadd.f32 %v2886_v22, %v2798_v41  ;;  %3026 = vmatmul.bf16.gmra.mxu2 %v7444_v52  ;;  %3204 = vmatmul.bf16.gmra.mxu0 %v7445_v40  ;;  %v4927_v22 = vor.u32 %v5376_v13, %v4924_v55  ;;  %v4991_v41 = vor.u32 %v5392_v56, %v4988_v35  ;;  %v7450_v56 = vld [vmem:[#allocation47_spill] sm:$0xff] }
 0x2ed   : > { %3115 = vmatmul.bf16.gmra.mxu3 %v7446_v32  ;;  %v5408_v32 = vld [vmem:[%s5810_s7 + $0x3d4] sm:$0xf] }
 0x2ee   : > { %3293 = vmatmul.bf16.gmra.mxu1 %v7447_v57  ;;  %3822 = vst [vmem:[%s6564_s19 + $0x130] sm:$0xff] %v2887_v1  ;;  %3366 = vmatpush.bf16.msra.mxu2 %v4927_v22  ;;  %v5052_v57 = vld [vmem:[%s5810_s7 + $0x3d8] sm:$0xf0] }
 0x2ef   : > { %v2711_v44 = vpop.f32.mrf.mxu2  ;;  %3455 = vmatpush.bf16.msra.mxu3 %v4991_v41  ;;  %v5055_v13 = vor.u32 %v5408_v32, %v5052_v57  ;;  %v7448_v22 = vld [vmem:[#allocation22_spill] sm:$0xff] }
 0x2f0   : > { %v2712_v45 = vadd.f32 %v2711_v44, %v6441_v39  ;;  %v2800_v0 = vpop.f32.mrf.mxu3 }
 0x2f1   : > { %v2891_v49 = vpop.f32.mrf.mxu0  ;;  %3544 = vmatpush.bf16.msra.mxu0 %v5055_v13 }
 0x2f2   : > { %v2801_v16 = vadd.f32 %v2800_v0, %v2712_v45 }
 0x2f3   : > { %v6766_v51 = vpop.f32.mrf.mxu1 }
 0x2f4   : > { %v2890_v52 = vadd.f32 %v2889_v17, %v2801_v16  ;;  %v7449_v17 = vld [vmem:[#allocation49_spill] sm:$0xff] }
 0x2f6   : > { %3824 = vst [vmem:[%s6564_s19 + $0x140] sm:$0xff] %v2890_v52  ;;  %v5424_v52 = vld [vmem:[%s5810_s7 + $0x454] sm:$0xf] }
 0x2f7   : > { %v2713_v1 = vpop.f32.mrf.mxu2 }
 0x2f8   : > { %v2714_v39 = vadd.f32 %v2713_v1, %v6456_v38  ;;  %v2802_v40 = vpop.f32.mrf.mxu3  ;;  %v7451_v38 = vld [vmem:[#allocation48_spill] sm:$0xff]  ;;  %v5116_v1 = vld [vmem:[%s5810_s7 + $0x458] sm:$0xf0] }
 0x2f9   : > { %v2894_v44 = vpop.f32.mrf.mxu0 }
 0x2fa   : > { %v2803_v55 = vadd.f32 %v2802_v40, %v2714_v39  ;;  %v5119_v40 = vor.u32 %v5424_v52, %v5116_v1  ;;  %v5374_v1 = vld [vmem:[%s5810_s7 + $0x2c4] sm:$0xf] }
 0x2fb   : > { %v6772_v45 = vpop.f32.mrf.mxu1 }
 0x2fc   : > { %v2892_v0 = vadd.f32 %v2891_v49, %v2803_v55  ;;  %3031 = vmatmul.bf16.gmra.mxu2 %v7448_v22  ;;  %3209 = vmatmul.bf16.gmra.mxu0 %v7449_v17 }
 0x2fd   : > { %3120 = vmatmul.bf16.gmra.mxu3 %v7450_v56  ;;  %3633 = vmatpush.bf16.msra.mxu1 %v5119_v40  ;;  %v4916_v40 = vld [vmem:[%s5810_s7 + $0x2c8] sm:$0xf0] }
 0x2fe   : > { %3298 = vmatmul.bf16.gmra.mxu1 %v7451_v38  ;;  %3826 = vst [vmem:[%s6564_s19 + $0x150] sm:$0xff] %v2892_v0  ;;  %v7452_v38 = vld [vmem:[#allocation25_spill] sm:$0xff] }
 0x2ff   : > { %v2716_v35 = vpop.f32.mrf.mxu2 }
 0x300   : > { %v2717_v16 = vadd.f32 %v2716_v35, %v6459_v29  ;;  %v2805_v41 = vpop.f32.mrf.mxu3  ;;  %v7453_v35 = vld [vmem:[#allocation53_spill] sm:$0xff] }
 0x301   : > { %v2896_v39 = vpop.f32.mrf.mxu0 }
 0x302   : > { %v2806_v32 = vadd.f32 %v2805_v41, %v2717_v16  ;;  %v7454_v16 = vld [vmem:[#allocation51_spill] sm:$0xff] }
 0x303   : > { %v6782_v49 = vpop.f32.mrf.mxu1 }
 0x304   : > { %v2895_v57 = vadd.f32 %v2894_v44, %v2806_v32  ;;  %v7455_v44 = vld [vmem:[#allocation52_spill] sm:$0xff] }
 0x306   : > { %3828 = vst [vmem:[%s6564_s19 + $0x160] sm:$0xff] %v2895_v57  ;;  %v5390_v57 = vld [vmem:[%s5810_s7 + $0x344] sm:$0xf] }
 0x307   : > { %v2718_v13 = vpop.f32.mrf.mxu2 }
 0x308   : > { %v2719_v55 = vadd.f32 %v2718_v13, %v6476_v48  ;;  %v2807_v0 = vpop.f32.mrf.mxu3  ;;  %v4980_v13 = vld [vmem:[%s5810_s7 + $0x348] sm:$0xf0] }
 0x309   : > { %v2899_v22 = vpop.f32.mrf.mxu0 }
 0x30a   : > { %v2808_v29 = vadd.f32 %v2807_v0, %v2719_v55 }
 0x30b   : > { %v6786_v17 = vpop.f32.mrf.mxu1 }
 0x30c   : > { %v2897_v56 = vadd.f32 %v2896_v39, %v2808_v29  ;;  %3036 = vmatmul.bf16.gmra.mxu2 %v7452_v38  ;;  %3214 = vmatmul.bf16.gmra.mxu0 %v7453_v35  ;;  %v4919_v39 = vor.u32 %v5374_v1, %v4916_v40  ;;  %v4983_v29 = vor.u32 %v5390_v57, %v4980_v13  ;;  %v7458_v57 = vld [vmem:[#allocation55_spill] sm:$0xff] }
 0x30d   : > { %3125 = vmatmul.bf16.gmra.mxu3 %v7454_v16  ;;  %v5406_v16 = vld [vmem:[%s5810_s7 + $0x3c4] sm:$0xf] }
 0x30e   : > { %3303 = vmatmul.bf16.gmra.mxu1 %v7455_v44  ;;  %3830 = vst [vmem:[%s6564_s19 + $0x170] sm:$0xff] %v2897_v56  ;;  %3367 = vmatpush.bf16.msra.mxu2 %v4919_v39  ;;  %v5044_v44 = vld [vmem:[%s5810_s7 + $0x3c8] sm:$0xf0] }
 0x30f   : > { %v2721_v41 = vpop.f32.mrf.mxu2  ;;  %3456 = vmatpush.bf16.msra.mxu3 %v4983_v29  ;;  %v5047_v1 = vor.u32 %v5406_v16, %v5044_v44  ;;  %v7456_v39 = vld [vmem:[#allocation28_spill] sm:$0xff] }
 0x310   : > { %v2722_v48 = vadd.f32 %v2721_v41, %v6481_v53  ;;  %v2810_v52 = vpop.f32.mrf.mxu3 }
 0x311   : > { %v2901_v32 = vpop.f32.mrf.mxu0  ;;  %3545 = vmatpush.bf16.msra.mxu0 %v5047_v1 }
 0x312   : > { %v2811_v55 = vadd.f32 %v2810_v52, %v2722_v48 }
 0x313   : > { %v6798_v0 = vpop.f32.mrf.mxu1 }
 0x314   : > { %v2900_v38 = vadd.f32 %v2899_v22, %v2811_v55  ;;  %v7457_v22 = vld [vmem:[#allocation57_spill] sm:$0xff] }
 0x316   : > { %3832 = vst [vmem:[%s6564_s19 + $0x180] sm:$0xff] %v2900_v38  ;;  %v5422_v38 = vld [vmem:[%s5810_s7 + $0x444] sm:$0xf] }
 0x317   : > { %v2723_v56 = vpop.f32.mrf.mxu2 }
 0x318   : > { %v2724_v53 = vadd.f32 %v2723_v56, %v6496_v42  ;;  %v2812_v35 = vpop.f32.mrf.mxu3  ;;  %v7459_v42 = vld [vmem:[#allocation56_spill] sm:$0xff] }
 0x319   : > { %v2904_v41 = vpop.f32.mrf.mxu0  ;;  %v5108_v56 = vld [vmem:[%s5810_s7 + $0x448] sm:$0xf0] }
 0x31a   : > { %v2813_v40 = vadd.f32 %v2812_v35, %v2724_v53  ;;  %v5111_v35 = vor.u32 %v5422_v38, %v5108_v56  ;;  %v5372_v56 = vld [vmem:[%s5810_s7 + $0x2b4] sm:$0xf] }
 0x31b   : > { %v6804_v48 = vpop.f32.mrf.mxu1 }
 0x31c   : > { %v2902_v52 = vadd.f32 %v2901_v32, %v2813_v40  ;;  %3041 = vmatmul.bf16.gmra.mxu2 %v7456_v39  ;;  %3219 = vmatmul.bf16.gmra.mxu0 %v7457_v22 }
 0x31d   : > { %3130 = vmatmul.bf16.gmra.mxu3 %v7458_v57  ;;  %3634 = vmatpush.bf16.msra.mxu1 %v5111_v35  ;;  %v4908_v35 = vld [vmem:[%s5810_s7 + $0x2b8] sm:$0xf0] }
 0x31e   : > { %3308 = vmatmul.bf16.gmra.mxu1 %v7459_v42  ;;  %3834 = vst [vmem:[%s6564_s19 + $0x190] sm:$0xff] %v2902_v52  ;;  %v7460_v42 = vld [vmem:[#allocation31_spill] sm:$0xff] }
 0x31f   : > { %v2726_v13 = vpop.f32.mrf.mxu2 }
 0x320   : > { %v2727_v55 = vadd.f32 %v2726_v13, %v6499_v25  ;;  %v2815_v29 = vpop.f32.mrf.mxu3  ;;  %v7461_v13 = vld [vmem:[#allocation61_spill] sm:$0xff] }
 0x321   : > { %v2906_v53 = vpop.f32.mrf.mxu0 }
 0x322   : > { %v2816_v16 = vadd.f32 %v2815_v29, %v2727_v55  ;;  %v7462_v55 = vld [vmem:[#allocation59_spill] sm:$0xff] }
 0x323   : > { %v6814_v32 = vpop.f32.mrf.mxu1 }
 0x324   : > { %v2905_v44 = vadd.f32 %v2904_v41, %v2816_v16  ;;  %v7463_v41 = vld [vmem:[#allocation60_spill] sm:$0xff] }
 0x326   : > { %3836 = vst [vmem:[%s6564_s19 + $0x1a0] sm:$0xff] %v2905_v44  ;;  %v5388_v44 = vld [vmem:[%s5810_s7 + $0x334] sm:$0xf] }
 0x327   : > { %v2728_v1 = vpop.f32.mrf.mxu2 }
 0x328   : > { %v2729_v40 = vadd.f32 %v2728_v1, %v6516_v59  ;;  %v2817_v52 = vpop.f32.mrf.mxu3  ;;  %v4972_v1 = vld [vmem:[%s5810_s7 + $0x338] sm:$0xf0] }
 0x329   : > { %v2909_v39 = vpop.f32.mrf.mxu0 }
 0x32a   : > { %v2818_v25 = vadd.f32 %v2817_v52, %v2729_v40 }
 0x32b   : > { %v6818_v22 = vpop.f32.mrf.mxu1 }
 0x32c   : > { %v2907_v57 = vadd.f32 %v2906_v53, %v2818_v25  ;;  %3046 = vmatmul.bf16.gmra.mxu2 %v7460_v42  ;;  %3224 = vmatmul.bf16.gmra.mxu0 %v7461_v13  ;;  %v4911_v53 = vor.u32 %v5372_v56, %v4908_v35  ;;  %v4975_v25 = vor.u32 %v5388_v44, %v4972_v1  ;;  %v5036_v13 = vld [vmem:[%s5810_s7 + $0x3b8] sm:$0xf0]  ;;  %v5420_v44 = vld [vmem:[%s5810_s7 + $0x434] sm:$0xf] }
 0x32d   : > { %3135 = vmatmul.bf16.gmra.mxu3 %v7462_v55  ;;  %v5100_v1 = vld [vmem:[%s5810_s7 + $0x438] sm:$0xf0] }
 0x32e   : > { %3313 = vmatmul.bf16.gmra.mxu1 %v7463_v41  ;;  %3838 = vst [vmem:[%s6564_s19 + $0x1b0] sm:$0xff] %v2907_v57  ;;  %3368 = vmatpush.bf16.msra.mxu2 %v4911_v53  ;;  %v5404_v57 = vld [vmem:[%s5810_s7 + $0x3b4] sm:$0xf]  ;;  %v7464_v53 = vld [vmem:[#allocation34_spill] sm:$0xff] }
 0x32f   : > { %v2731_v29 = vpop.f32.mrf.mxu2  ;;  %3457 = vmatpush.bf16.msra.mxu3 %v4975_v25  ;;  %v7467_v25 = vld [vmem:[#allocation64_spill] sm:$0xff] }
 0x330   : > { %v2732_v59 = vadd.f32 %v2731_v29, %v6519_v11  ;;  %v2820_v38 = vpop.f32.mrf.mxu3  ;;  %v5039_v11 = vor.u32 %v5404_v57, %v5036_v13 }
 0x331   : > { %v2911_v16 = vpop.f32.mrf.mxu0 }
 0x332   : > { %v2821_v40 = vadd.f32 %v2820_v38, %v2732_v59  ;;  %3546 = vmatpush.bf16.msra.mxu0 %v5039_v11 }
 0x333   : > { %v6830_v52 = vpop.f32.mrf.mxu1 }
 0x334   : > { %v2910_v42 = vadd.f32 %v2909_v39, %v2821_v40  ;;  %v7465_v39 = vld [vmem:[#allocation65_spill] sm:$0xff]  ;;  %v7466_v40 = vld [vmem:[#allocation63_spill] sm:$0xff] }
 0x336   : > { %3840 = vst [vmem:[%s6564_s19 + $0x1c0] sm:$0xff] %v2910_v42  ;;  %v5103_v42 = vor.u32 %v5420_v44, %v5100_v1  ;;  %v7468_v1 = vld [vmem:[#allocation12_spill] sm:$0xff] }
 0x337   : > { %v2733_v55 = vpop.f32.mrf.mxu2 }
 0x338   : > { %v2734_v41 = vadd.f32 %v2733_v55, %v6534_v26  ;;  %v2822_v29 = vpop.f32.mrf.mxu3  ;;  %3635 = vmatpush.bf16.msra.mxu1 %v5103_v42  ;;  %v7471_v42 = vld [vmem:[#allocation68_spill] sm:$0xff] }
 0x339   : > { %v2914_v56 = vpop.f32.mrf.mxu0 }
 0x33a   : > { %v2823_v59 = vadd.f32 %v2822_v29, %v2734_v41 }
 0x33b   : > { %v6836_v38 = vpop.f32.mrf.mxu1 }
 0x33c   : > { %v2912_v35 = vadd.f32 %v2911_v16, %v2823_v59  ;;  %3051 = vmatmul.bf16.gmra.mxu2 %v7464_v53  ;;  %3229 = vmatmul.bf16.gmra.mxu0 %v7465_v39 }
 0x33d   : > { %3140 = vmatmul.bf16.gmra.mxu3 %v7466_v40  ;;  %v7469_v40 = vld [vmem:[#allocation69_spill] sm:$0xff] }
 0x33e   : > { %3318 = vmatmul.bf16.gmra.mxu1 %v7467_v25  ;;  %3842 = vst [vmem:[%s6564_s19 + $0x1d0] sm:$0xff] %v2912_v35  ;;  %v7470_v25 = vld [vmem:[#allocation67_spill] sm:$0xff] }
 0x33f   : > { %v2736_v57 = vpop.f32.mrf.mxu2 }
 0x340   : > { %v2737_v26 = vadd.f32 %v2736_v57, %v6539_v24  ;;  %v2825_v13 = vpop.f32.mrf.mxu3  ;;  %v4900_v57 = vld [vmem:[%s5810_s7 + $0x2a8] sm:$0xf0] }
 0x341   : > { %v2916_v11 = vpop.f32.mrf.mxu0 }
 0x342   : > { %v2826_v16 = vadd.f32 %v2825_v13, %v2737_v26  ;;  %v5386_v26 = vld [vmem:[%s5810_s7 + $0x324] sm:$0xf]  ;;  %v4964_v13 = vld [vmem:[%s5810_s7 + $0x328] sm:$0xf0] }
 0x343   : > { %v6846_v55 = vpop.f32.mrf.mxu1 }
 0x344   : > { %v2915_v41 = vadd.f32 %v2914_v56, %v2826_v16  ;;  %v5370_v56 = vld [vmem:[%s5810_s7 + $0x2a4] sm:$0xf] }
 0x346   : > { %3844 = vst [vmem:[%s6564_s19 + $0x1e0] sm:$0xff] %v2915_v41  ;;  %v4967_v41 = vor.u32 %v5386_v26, %v4964_v13 }
 0x347   : > { %v2738_v29 = vpop.f32.mrf.mxu2 }
 0x348   : > { %v2739_v59 = vadd.f32 %v2738_v29, %v6554_v4  ;;  %v2827_v53 = vpop.f32.mrf.mxu3  ;;  %v4903_v4 = vor.u32 %v5370_v56, %v4900_v57  ;;  %3458 = vmatpush.bf16.msra.mxu3 %v4967_v41  ;;  %v7473_v41 = vld [vmem:[#allocation73_spill] sm:$0xff] }
 0x349   : > { %v3195_v39 = vpop.f32.mrf.mxu0 }
 0x34a   : > { %v2828_v35 = vadd.f32 %v2827_v53, %v2739_v59  ;;  %3369 = vmatpush.bf16.msra.mxu2 %v4903_v4 }
 0x34b   : > { %v3284_v44 = vpop.f32.mrf.mxu1 }
 0x34c   : > { %v2917_v24 = vadd.f32 %v2916_v11, %v2828_v35  ;;  %3056 = vmatmul.bf16.gmra.mxu2 %v7468_v1  ;;  %3234 = vmatmul.bf16.gmra.mxu0 %v7469_v40  ;;  %v5402_v40 = vld [vmem:[%s5810_s7 + $0x3a4] sm:$0xf] }
 0x34d   : > { %3145 = vmatmul.bf16.gmra.mxu3 %v7470_v25  ;;  %v5028_v25 = vld [vmem:[%s5810_s7 + $0x3a8] sm:$0xf0] }
 0x34e   : > { %3323 = vmatmul.bf16.gmra.mxu1 %v7471_v42  ;;  %3846 = vst [vmem:[%s6564_s19 + $0x1f0] sm:$0xff] %v2917_v24  ;;  %v5031_v42 = vor.u32 %v5402_v40, %v5028_v25 }
 0x34f   : > { %v3017_v16 = vpop.f32.mrf.mxu2 }
 0x350   : > { %v3018_v11 = vadd.f32 %v3017_v16, %v6548_v2  ;;  %v3106_v29 = vpop.f32.mrf.mxu3  ;;  %3547 = vmatpush.bf16.msra.mxu0 %v5031_v42  ;;  %v7472_v16 = vld [vmem:[#allocation15_spill] sm:$0xff] }
 0x351   : > { %v3197_v59 = vpop.f32.mrf.mxu0 }
 0x352   : > { %v3107_v53 = vadd.f32 %v3106_v29, %v3018_v11  ;;  %v5092_v11 = vld [vmem:[%s5810_s7 + $0x428] sm:$0xf0]  ;;  %v7474_v29 = vld [vmem:[#allocation71_spill] sm:$0xff] }
 0x353   : > { %v3286_v35 = vpop.f32.mrf.mxu1 }
 0x354   : > { %v3196_v1 = vadd.f32 %v3195_v39, %v3107_v53  ;;  %v5418_v39 = vld [vmem:[%s5810_s7 + $0x424] sm:$0xf]  ;;  %v7475_v53 = vld [vmem:[#allocation72_spill] sm:$0xff] }
 0x356   : > { %v6862_v28 = vadd.f32 %v3284_v44, %v3196_v1  ;;  %v5095_v44 = vor.u32 %v5418_v39, %v5092_v11 }
 0x357   : > { %v3019_v56 = vpop.f32.mrf.mxu2 }
 0x358   : > { %v3020_v24 = vadd.f32 %v3019_v56, %v6562_v6  ;;  %v3108_v57 = vpop.f32.mrf.mxu3  ;;  %3636 = vmatpush.bf16.msra.mxu1 %v5095_v44  ;;  %v7479_v44 = vld [vmem:[#allocation76_spill] sm:$0xff] }
 0x359   : > { %v3200_v2 = vpop.f32.mrf.mxu0 }
 0x35a   : > { %v3109_v26 = vadd.f32 %v3108_v57, %v3020_v24 }
 0x35b   : > { %v3289_v4 = vpop.f32.mrf.mxu1 }
 0x35c   : > { %v3198_v13 = vadd.f32 %v3197_v59, %v3109_v26  ;;  %3061 = vmatmul.bf16.gmra.mxu2 %v7472_v16  ;;  %3239 = vmatmul.bf16.gmra.mxu0 %v7473_v41 }
 0x35d   : > { %3150 = vmatmul.bf16.gmra.mxu3 %v7474_v29  ;;  %v7477_v29 = vld [vmem:[#allocation77_spill] sm:$0xff] }
 0x35e   : > { %3328 = vmatmul.bf16.gmra.mxu1 %v7475_v53  ;;  %v6871_v1 = vadd.f32 %v3286_v35, %v3198_v13  ;;  %v7478_v53 = vld [vmem:[#allocation75_spill] sm:$0xff] }
 0x35f   : > { %v3022_v40 = vpop.f32.mrf.mxu2 }
 0x360   : > { %v3023_v6 = vadd.f32 %v3022_v40, %v6576_v50  ;;  %v3111_v25 = vpop.f32.mrf.mxu3  ;;  %v7476_v50 = vld [vmem:[#allocation18_spill] sm:$0xff]  ;;  %v5384_v40 = vld [vmem:[%s5810_s7 + $0x314] sm:$0xf] }
 0x361   : > { %v3202_v42 = vpop.f32.mrf.mxu0 }
 0x362   : > { %v3112_v59 = vadd.f32 %v3111_v25, %v3023_v6 }
 0x363   : > { %v3291_v56 = vpop.f32.mrf.mxu1 }
 0x364   : > { %v3201_v24 = vadd.f32 %v3200_v2, %v3112_v59  ;;  %v5368_v2 = vld [vmem:[%s5810_s7 + $0x294] sm:$0xf] }
 0x366   : > { %v6874_v57 = vadd.f32 %v3289_v4, %v3201_v24  ;;  %v4892_v4 = vld [vmem:[%s5810_s7 + $0x298] sm:$0xf0] }
 0x367   : > { %v3024_v26 = vpop.f32.mrf.mxu2  ;;  %v4895_v6 = vor.u32 %v5368_v2, %v4892_v4 }
 0x368   : > { %v3025_v16 = vadd.f32 %v3024_v26, %v6586_v7  ;;  %v3113_v35 = vpop.f32.mrf.mxu3  ;;  %v4956_v7 = vld [vmem:[%s5810_s7 + $0x318] sm:$0xf0] }
 0x369   : > { %v3205_v13 = vpop.f32.mrf.mxu0  ;;  %v4959_v24 = vor.u32 %v5384_v40, %v4956_v7  ;;  %3370 = vmatpush.bf16.msra.mxu2 %v4895_v6 }
 0x36a   : > { %v3114_v41 = vadd.f32 %v3113_v35, %v3025_v16 }
 0x36b   : > { %v3294_v39 = vpop.f32.mrf.mxu1  ;;  %3459 = vmatpush.bf16.msra.mxu3 %v4959_v24  ;;  %v7481_v24 = vld [vmem:[#allocation81_spill] sm:$0xff] }
 0x36c   : > { %v3203_v11 = vadd.f32 %v3202_v42, %v3114_v41  ;;  %3066 = vmatmul.bf16.gmra.mxu2 %v7476_v50  ;;  %3244 = vmatmul.bf16.gmra.mxu0 %v7477_v29  ;;  %v5400_v29 = vld [vmem:[%s5810_s7 + $0x394] sm:$0xf] }
 0x36d   : > { %3155 = vmatmul.bf16.gmra.mxu3 %v7478_v53  ;;  %v5020_v53 = vld [vmem:[%s5810_s7 + $0x398] sm:$0xf0] }
 0x36e   : > { %3333 = vmatmul.bf16.gmra.mxu1 %v7479_v44  ;;  %v6885_v25 = vadd.f32 %v3291_v56, %v3203_v11  ;;  %v5023_v44 = vor.u32 %v5400_v29, %v5020_v53 }
 0x36f   : > { %v3027_v59 = vpop.f32.mrf.mxu2 }
 0x370   : > { %v3028_v42 = vadd.f32 %v3027_v59, %v6596_v10  ;;  %v3116_v26 = vpop.f32.mrf.mxu3  ;;  %3548 = vmatpush.bf16.msra.mxu0 %v5023_v44  ;;  %v7480_v59 = vld [vmem:[#allocation21_spill] sm:$0xff] }
 0x371   : > { %v3207_v16 = vpop.f32.mrf.mxu0 }
 0x372   : > { %v3117_v35 = vadd.f32 %v3116_v26, %v3028_v42  ;;  %v5084_v42 = vld [vmem:[%s5810_s7 + $0x418] sm:$0xf0]  ;;  %v7482_v26 = vld [vmem:[#allocation79_spill] sm:$0xff] }
 0x373   : > { %v3296_v41 = vpop.f32.mrf.mxu1 }
 0x374   : > { %v3206_v50 = vadd.f32 %v3205_v13, %v3117_v35  ;;  %v5416_v13 = vld [vmem:[%s5810_s7 + $0x414] sm:$0xf]  ;;  %v7483_v35 = vld [vmem:[#allocation80_spill] sm:$0xff] }
 0x376   : > { %v6890_v2 = vadd.f32 %v3294_v39, %v3206_v50  ;;  %v5087_v39 = vor.u32 %v5416_v13, %v5084_v42 }
 0x377   : > { %v3029_v56 = vpop.f32.mrf.mxu2 }
 0x378   : > { %v3030_v11 = vadd.f32 %v3029_v56, %v6608_v9  ;;  %v3118_v4 = vpop.f32.mrf.mxu3  ;;  %3637 = vmatpush.bf16.msra.mxu1 %v5087_v39  ;;  %v7487_v39 = vld [vmem:[#allocation84_spill] sm:$0xff] }
 0x379   : > { %v3210_v10 = vpop.f32.mrf.mxu0 }
 0x37a   : > { %v3119_v40 = vadd.f32 %v3118_v4, %v3030_v11 }
 0x37b   : > { %v3299_v6 = vpop.f32.mrf.mxu1 }
 0x37c   : > { %v3208_v7 = vadd.f32 %v3207_v16, %v3119_v40  ;;  %3071 = vmatmul.bf16.gmra.mxu2 %v7480_v59  ;;  %3249 = vmatmul.bf16.gmra.mxu0 %v7481_v24 }
 0x37d   : > { %3160 = vmatmul.bf16.gmra.mxu3 %v7482_v26  ;;  %v7485_v26 = vld [vmem:[#allocation85_spill] sm:$0xff] }
 0x37e   : > { %3338 = vmatmul.bf16.gmra.mxu1 %v7483_v35  ;;  %v6899_v50 = vadd.f32 %v3296_v41, %v3208_v7  ;;  %v7486_v35 = vld [vmem:[#allocation83_spill] sm:$0xff] }
 0x37f   : > { %v3032_v29 = vpop.f32.mrf.mxu2 }
 0x380   : > { %v3033_v9 = vadd.f32 %v3032_v29, %v6620_v34  ;;  %v3121_v53 = vpop.f32.mrf.mxu3  ;;  %v7484_v34 = vld [vmem:[#allocation24_spill] sm:$0xff]  ;;  %v5382_v29 = vld [vmem:[%s5810_s7 + $0x304] sm:$0xf] }
 0x381   : > { %v3212_v44 = vpop.f32.mrf.mxu0 }
 0x382   : > { %v3122_v16 = vadd.f32 %v3121_v53, %v3033_v9 }
 0x383   : > { %v3301_v56 = vpop.f32.mrf.mxu1 }
 0x384   : > { %v3211_v11 = vadd.f32 %v3210_v10, %v3122_v16  ;;  %v5366_v10 = vld [vmem:[%s5810_s7 + $0x284] sm:$0xf] }
 0x386   : > { %v6902_v4 = vadd.f32 %v3299_v6, %v3211_v11  ;;  %v4884_v6 = vld [vmem:[%s5810_s7 + $0x288] sm:$0xf0] }
 0x387   : > { %v3034_v40 = vpop.f32.mrf.mxu2  ;;  %v4887_v9 = vor.u32 %v5366_v10, %v4884_v6 }
 0x388   : > { %v3035_v59 = vadd.f32 %v3034_v40, %v6630_v62  ;;  %v3123_v41 = vpop.f32.mrf.mxu3  ;;  %v4948_v62 = vld [vmem:[%s5810_s7 + $0x308] sm:$0xf0] }
 0x389   : > { %v3215_v7 = vpop.f32.mrf.mxu0  ;;  %v4951_v11 = vor.u32 %v5382_v29, %v4948_v62  ;;  %3371 = vmatpush.bf16.msra.mxu2 %v4887_v9 }
 0x38a   : > { %v3124_v24 = vadd.f32 %v3123_v41, %v3035_v59 }
 0x38b   : > { %v3304_v13 = vpop.f32.mrf.mxu1  ;;  %3460 = vmatpush.bf16.msra.mxu3 %v4951_v11  ;;  %v7489_v11 = vld [vmem:[#allocation89_spill] sm:$0xff] }
 0x38c   : > { %v3213_v42 = vadd.f32 %v3212_v44, %v3124_v24  ;;  %3076 = vmatmul.bf16.gmra.mxu2 %v7484_v34  ;;  %3254 = vmatmul.bf16.gmra.mxu0 %v7485_v26  ;;  %v5398_v26 = vld [vmem:[%s5810_s7 + $0x384] sm:$0xf] }
 0x38d   : > { %3165 = vmatmul.bf16.gmra.mxu3 %v7486_v35  ;;  %v5012_v35 = vld [vmem:[%s5810_s7 + $0x388] sm:$0xf0] }
 0x38e   : > { %3343 = vmatmul.bf16.gmra.mxu1 %v7487_v39  ;;  %v6913_v53 = vadd.f32 %v3301_v56, %v3213_v42  ;;  %v5015_v39 = vor.u32 %v5398_v26, %v5012_v35 }
 0x38f   : > { %v3037_v16 = vpop.f32.mrf.mxu2 }
 0x390   : > { %v3038_v44 = vadd.f32 %v3037_v16, %v6640_v30  ;;  %v3126_v40 = vpop.f32.mrf.mxu3  ;;  %3549 = vmatpush.bf16.msra.mxu0 %v5015_v39  ;;  %v7488_v16 = vld [vmem:[#allocation27_spill] sm:$0xff] }
 0x391   : > { %v3217_v59 = vpop.f32.mrf.mxu0 }
 0x392   : > { %v3127_v41 = vadd.f32 %v3126_v40, %v3038_v44  ;;  %v5076_v44 = vld [vmem:[%s5810_s7 + $0x408] sm:$0xf0]  ;;  %v7490_v40 = vld [vmem:[#allocation87_spill] sm:$0xff] }
 0x393   : > { %v3306_v24 = vpop.f32.mrf.mxu1 }
 0x394   : > { %v3216_v34 = vadd.f32 %v3215_v7, %v3127_v41  ;;  %v5414_v7 = vld [vmem:[%s5810_s7 + $0x404] sm:$0xf]  ;;  %v7491_v41 = vld [vmem:[#allocation88_spill] sm:$0xff] }
 0x396   : > { %v6918_v10 = vadd.f32 %v3304_v13, %v3216_v34  ;;  %v5079_v13 = vor.u32 %v5414_v7, %v5076_v44  ;;  %v7493_v44 = vld [vmem:[#allocation93_spill] sm:$0xff] }
 0x397   : > { %v3039_v56 = vpop.f32.mrf.mxu2 }
 0x398   : > { %v3040_v42 = vadd.f32 %v3039_v56, %v6652_v46  ;;  %v3128_v6 = vpop.f32.mrf.mxu3  ;;  %3638 = vmatpush.bf16.msra.mxu1 %v5079_v13  ;;  %v7495_v13 = vld [vmem:[#allocation92_spill] sm:$0xff] }
 0x399   : > { %v3220_v30 = vpop.f32.mrf.mxu0 }
 0x39a   : > { %v3129_v29 = vadd.f32 %v3128_v6, %v3040_v42 }
 0x39b   : > { %v3309_v9 = vpop.f32.mrf.mxu1 }
 0x39c   : > { %v3218_v62 = vadd.f32 %v3217_v59, %v3129_v29  ;;  %3081 = vmatmul.bf16.gmra.mxu2 %v7488_v16  ;;  %3259 = vmatmul.bf16.gmra.mxu0 %v7489_v11 }
 0x39d   : > { %3170 = vmatmul.bf16.gmra.mxu3 %v7490_v40 }
 0x39e   : > { %3348 = vmatmul.bf16.gmra.mxu1 %v7491_v41  ;;  %v6927_v34 = vadd.f32 %v3306_v24, %v3218_v62  ;;  %v7492_v62 = vld [vmem:[#allocation30_spill] sm:$0xff] }
 0x39f   : > { %v3042_v26 = vpop.f32.mrf.mxu2 }
 0x3a0   : > { %v3043_v46 = vadd.f32 %v3042_v26, %v6664_v54  ;;  %v3131_v35 = vpop.f32.mrf.mxu3  ;;  %v7494_v54 = vld [vmem:[#allocation91_spill] sm:$0xff] }
 0x3a1   : > { %v3222_v39 = vpop.f32.mrf.mxu0 }
 0x3a2   : > { %v3132_v59 = vadd.f32 %v3131_v35, %v3043_v46 }
 0x3a3   : > { %v3311_v56 = vpop.f32.mrf.mxu1 }
 0x3a4   : > { %v3221_v42 = vadd.f32 %v3220_v30, %v3132_v59 }
 0x3a6   : > { %v6930_v6 = vadd.f32 %v3309_v9, %v3221_v42 }
 0x3a7   : > { %v3044_v29 = vpop.f32.mrf.mxu2 }
 0x3a8   : > { %v3045_v16 = vadd.f32 %v3044_v29, %v6674_v21  ;;  %v3133_v11 = vpop.f32.mrf.mxu3 }
 0x3a9   : > { %v3225_v40 = vpop.f32.mrf.mxu0 }
 0x3aa   : > { %v3134_v41 = vadd.f32 %v3133_v11, %v3045_v16 }
 0x3ab   : > { %v3314_v7 = vpop.f32.mrf.mxu1 }
 0x3ac   : > { %v3223_v24 = vadd.f32 %v3222_v39, %v3134_v41  ;;  %3086 = vmatmul.bf16.gmra.mxu2 %v7492_v62  ;;  %3264 = vmatmul.bf16.gmra.mxu0 %v7493_v44 }
 0x3ad   : > { %3175 = vmatmul.bf16.gmra.mxu3 %v7494_v54 }
 0x3ae   : > { %3353 = vmatmul.bf16.gmra.mxu1 %v7495_v13  ;;  %v6937_v26 = vadd.f32 %v3311_v56, %v3223_v24  ;;  %v7496_v56 = vld [vmem:[#allocation33_spill] sm:$0xff] }
 0x3af   : > { %v3047_v30 = vpop.f32.mrf.mxu2 }
 0x3b0   : > { %v3048_v9 = vadd.f32 %v3047_v30, %v6684_v63  ;;  %v3136_v46 = vpop.f32.mrf.mxu3 }
 0x3b1   : > { %v3227_v21 = vpop.f32.mrf.mxu0 }
 0x3b2   : > { %v3137_v35 = vadd.f32 %v3136_v46, %v3048_v9 }
 0x3b3   : > { %v3316_v59 = vpop.f32.mrf.mxu1 }
 0x3b4   : > { %v3226_v42 = vadd.f32 %v3225_v40, %v3137_v35 }
 0x3b6   : > { %v6940_v29 = vadd.f32 %v3314_v7, %v3226_v42 }
 0x3b7   : > { %v3049_v39 = vpop.f32.mrf.mxu2 }
 0x3b8   : > { %v3050_v16 = vadd.f32 %v3049_v39, %v6696_v3  ;;  %v3138_v11 = vpop.f32.mrf.mxu3 }
 0x3b9   : > { %v3230_v41 = vpop.f32.mrf.mxu0 }
 0x3ba   : > { %v3139_v62 = vadd.f32 %v3138_v11, %v3050_v16  ;;  %v7498_v16 = vld [vmem:[#allocation98_spill] sm:$0xff]  ;;  %v7500_v11 = vld [vmem:[#allocation97_spill] sm:$0xff] }
 0x3bb   : > { %v3319_v44 = vpop.f32.mrf.mxu1 }
 0x3bc   : > { %v3228_v54 = vadd.f32 %v3227_v21, %v3139_v62  ;;  %3091 = vmatmul.bf16.gmra.mxu2 %v7496_v56  ;;  %3269 = vmatmul.bf16.gmra.mxu0 %v6366_v33 }
 0x3bd   : > { %3180 = vmatmul.bf16.gmra.mxu3 %v6362_v37 }
 0x3be   : > { %3358 = vmatmul.bf16.gmra.mxu1 %v6364_v5  ;;  %v6947_v63 = vadd.f32 %v3316_v59, %v3228_v54  ;;  %v7497_v59 = vld [vmem:[#allocation38_spill] sm:$0xff] }
 0x3bf   : > { %v3052_v40 = vpop.f32.mrf.mxu2 }
 0x3c0   : > { %v3053_v7 = vadd.f32 %v3052_v40, %v6708_v14  ;;  %v3141_v24 = vpop.f32.mrf.mxu3  ;;  %v7499_v14 = vld [vmem:[#allocation96_spill] sm:$0xff] }
 0x3c1   : > { %v3232_v3 = vpop.f32.mrf.mxu0 }
 0x3c2   : > { %v3142_v13 = vadd.f32 %v3141_v24, %v3053_v7 }
 0x3c3   : > { %v3321_v30 = vpop.f32.mrf.mxu1 }
 0x3c4   : > { %v3231_v9 = vadd.f32 %v3230_v41, %v3142_v13 }
 0x3c6   : > { %v6950_v46 = vadd.f32 %v3319_v44, %v3231_v9 }
 0x3c7   : > { %v3054_v21 = vpop.f32.mrf.mxu2 }
 0x3c8   : > { %v3055_v35 = vadd.f32 %v3054_v21, %v6718_v36  ;;  %v3143_v33 = vpop.f32.mrf.mxu3 }
 0x3c9   : > { %v3235_v42 = vpop.f32.mrf.mxu0 }
 0x3ca   : > { %v3144_v37 = vadd.f32 %v3143_v33, %v3055_v35 }
 0x3cb   : > { %v3324_v39 = vpop.f32.mrf.mxu1 }
 0x3cc   : > { %v3233_v5 = vadd.f32 %v3232_v3, %v3144_v37  ;;  %3372 = vmatmul.bf16.vlgmr.msra.gmra.mxu2 %v7497_v59  ;;  %3550 = vmatmul.bf16.vlgmr.msra.gmra.mxu0 %v7498_v16 }
 0x3cd   : > { %3461 = vmatmul.bf16.vlgmr.msra.gmra.mxu3 %v7499_v14 }
 0x3ce   : > { %3639 = vmatmul.bf16.vlgmr.msra.gmra.mxu1 %v7500_v11  ;;  %v6957_v62 = vadd.f32 %v3321_v30, %v3233_v5  ;;  %v7501_v30 = vld [vmem:[#allocation42_spill] sm:$0xff] }
 0x3cf   : > { %v3057_v41 = vpop.f32.mrf.mxu2 }
 0x3d0   : > { %v3058_v44 = vadd.f32 %v3057_v41, %v6722_v27  ;;  %v3146_v54 = vpop.f32.mrf.mxu3  ;;  %v7502_v27 = vld [vmem:[#allocation99_spill] sm:$0xff] }
 0x3d1   : > { %v3237_v36 = vpop.f32.mrf.mxu0 }
 0x3d2   : > { %v3147_v56 = vadd.f32 %v3146_v54, %v3058_v44 }
 0x3d3   : > { %v3326_v40 = vpop.f32.mrf.mxu1 }
 0x3d4   : > { %v3236_v7 = vadd.f32 %v3235_v42, %v3147_v56 }
 0x3d6   : > { %v6960_v24 = vadd.f32 %v3324_v39, %v3236_v7 }
 0x3d7   : > { %v3059_v3 = vpop.f32.mrf.mxu2 }
 0x3d8   : > { %v3060_v13 = vadd.f32 %v3059_v3, %v6734_v43  ;;  %v3148_v9 = vpop.f32.mrf.mxu3  ;;  %v7504_v3 = vld [vmem:[#allocation102_spill] sm:$0xff] }
 0x3d9   : > { %v3240_v21 = vpop.f32.mrf.mxu0 }
 0x3da   : > { %v3149_v35 = vadd.f32 %v3148_v9, %v3060_v13  ;;  %v7506_v13 = vld [vmem:[#allocation101_spill] sm:$0xff] }
 0x3db   : > { %v3329_v33 = vpop.f32.mrf.mxu1 }
 0x3dc   : > { %v3238_v37 = vadd.f32 %v3237_v36, %v3149_v35  ;;  %3377 = vmatmul.bf16.gmra.mxu2 %v7501_v30  ;;  %3555 = vmatmul.bf16.gmra.mxu0 %v6408_v8 }
 0x3dd   : > { %3466 = vmatmul.bf16.gmra.mxu3 %v6404_v31 }
 0x3de   : > { %3644 = vmatmul.bf16.gmra.mxu1 %v7502_v27  ;;  %v6967_v5 = vadd.f32 %v3326_v40, %v3238_v37  ;;  %v7503_v40 = vld [vmem:[#allocation46_spill] sm:$0xff] }
 0x3df   : > { %v3062_v42 = vpop.f32.mrf.mxu2 }
 0x3e0   : > { %v3063_v39 = vadd.f32 %v3062_v42, %v6740_v60  ;;  %v3151_v59 = vpop.f32.mrf.mxu3  ;;  %v7505_v60 = vld [vmem:[#allocation100_spill] sm:$0xff] }
 0x3e1   : > { %v3242_v43 = vpop.f32.mrf.mxu0 }
 0x3e2   : > { %v3152_v16 = vadd.f32 %v3151_v59, %v3063_v39 }
 0x3e3   : > { %v3331_v14 = vpop.f32.mrf.mxu1 }
 0x3e4   : > { %v3241_v11 = vadd.f32 %v3240_v21, %v3152_v16 }
 0x3e6   : > { %v6970_v41 = vadd.f32 %v3329_v33, %v3241_v11 }
 0x3e7   : > { %v3064_v44 = vpop.f32.mrf.mxu2 }
 0x3e8   : > { %v3065_v54 = vadd.f32 %v3064_v44, %v6750_v23  ;;  %v3153_v8 = vpop.f32.mrf.mxu3 }
 0x3e9   : > { %v3245_v36 = vpop.f32.mrf.mxu0 }
 0x3ea   : > { %v3154_v31 = vadd.f32 %v3153_v8, %v3065_v54 }
 0x3eb   : > { %v3334_v56 = vpop.f32.mrf.mxu1 }
 0x3ec   : > { %v3243_v7 = vadd.f32 %v3242_v43, %v3154_v31  ;;  %3382 = vmatmul.bf16.gmra.mxu2 %v7503_v40  ;;  %3560 = vmatmul.bf16.gmra.mxu0 %v7504_v3 }
 0x3ed   : > { %3471 = vmatmul.bf16.gmra.mxu3 %v7505_v60 }
 0x3ee   : > { %3649 = vmatmul.bf16.gmra.mxu1 %v7506_v13  ;;  %v6977_v9 = vadd.f32 %v3331_v14, %v3243_v7  ;;  %v7507_v14 = vld [vmem:[#allocation50_spill] sm:$0xff] }
 0x3ef   : > { %v3067_v21 = vpop.f32.mrf.mxu2 }
 0x3f0   : > { %v3068_v35 = vadd.f32 %v3067_v21, %v6754_v61  ;;  %v3156_v33 = vpop.f32.mrf.mxu3  ;;  %v7508_v61 = vld [vmem:[#allocation103_spill] sm:$0xff] }
 0x3f1   : > { %v3247_v23 = vpop.f32.mrf.mxu0 }
 0x3f2   : > { %v3157_v37 = vadd.f32 %v3156_v33, %v3068_v35 }
 0x3f3   : > { %v3336_v30 = vpop.f32.mrf.mxu1 }
 0x3f4   : > { %v3246_v27 = vadd.f32 %v3245_v36, %v3157_v37  ;;  %v7509_v37 = vld [vmem:[#allocation54_spill] sm:$0xff] }
 0x3f6   : > { %v6980_v42 = vadd.f32 %v3334_v56, %v3246_v27  ;;  %v7512_v27 = vld [vmem:[#allocation105_spill] sm:$0xff] }
 0x3f7   : > { %v3069_v39 = vpop.f32.mrf.mxu2 }
 0x3f8   : > { %v3070_v59 = vadd.f32 %v3069_v39, %v6766_v51  ;;  %v3158_v43 = vpop.f32.mrf.mxu3 }
 0x3f9   : > { %v3250_v16 = vpop.f32.mrf.mxu0 }
 0x3fa   : > { %v3159_v11 = vadd.f32 %v3158_v43, %v3070_v59 }
 0x3fb   : > { %v3339_v44 = vpop.f32.mrf.mxu1 }
 0x3fc   : > { %v3248_v54 = vadd.f32 %v3247_v23, %v3159_v11  ;;  %3387 = vmatmul.bf16.gmra.mxu2 %v7507_v14  ;;  %3565 = vmatmul.bf16.gmra.mxu0 %v6448_v47 }
 0x3fd   : > { %3476 = vmatmul.bf16.gmra.mxu3 %v6444_v19 }
 0x3fe   : > { %3654 = vmatmul.bf16.gmra.mxu1 %v7508_v61  ;;  %v6987_v8 = vadd.f32 %v3336_v30, %v3248_v54  ;;  %v7510_v30 = vld [vmem:[#allocation106_spill] sm:$0xff] }
 0x3ff   : > { %v3072_v36 = vpop.f32.mrf.mxu2 }
 0x400   : > { %v3073_v31 = vadd.f32 %v3072_v36, %v6772_v45  ;;  %v3161_v56 = vpop.f32.mrf.mxu3  ;;  %v7511_v45 = vld [vmem:[#allocation104_spill] sm:$0xff] }
 0x401   : > { %v3252_v51 = vpop.f32.mrf.mxu0 }
 0x402   : > { %v3162_v7 = vadd.f32 %v3161_v56, %v3073_v31 }
 0x403   : > { %v3341_v40 = vpop.f32.mrf.mxu1 }
 0x404   : > { %v3251_v3 = vadd.f32 %v3250_v16, %v3162_v7 }
 0x406   : > { %v6990_v60 = vadd.f32 %v3339_v44, %v3251_v3 }
 0x407   : > { %v3074_v13 = vpop.f32.mrf.mxu2 }
 0x408   : > { %v3075_v21 = vadd.f32 %v3074_v13, %v6782_v49  ;;  %v3163_v47 = vpop.f32.mrf.mxu3 }
 0x409   : > { %v3255_v35 = vpop.f32.mrf.mxu0 }
 0x40a   : > { %v3164_v19 = vadd.f32 %v3163_v47, %v3075_v21 }
 0x40b   : > { %v3344_v33 = vpop.f32.mrf.mxu1 }
 0x40c   : > { %v3253_v23 = vadd.f32 %v3252_v51, %v3164_v19  ;;  %3392 = vmatmul.bf16.gmra.mxu2 %v7509_v37  ;;  %3570 = vmatmul.bf16.gmra.mxu0 %v7510_v30 }
 0x40d   : > { %3481 = vmatmul.bf16.gmra.mxu3 %v7511_v45 }
 0x40e   : > { %3659 = vmatmul.bf16.gmra.mxu1 %v7512_v27  ;;  %v6997_v39 = vadd.f32 %v3341_v40, %v3253_v23  ;;  %v7513_v40 = vld [vmem:[#allocation58_spill] sm:$0xff] }
 0x40f   : > { %v3077_v59 = vpop.f32.mrf.mxu2 }
 0x410   : > { %v3078_v43 = vadd.f32 %v3077_v59, %v6786_v17  ;;  %v3166_v16 = vpop.f32.mrf.mxu3  ;;  %v7514_v17 = vld [vmem:[#allocation107_spill] sm:$0xff] }
 0x411   : > { %v3257_v49 = vpop.f32.mrf.mxu0 }
 0x412   : > { %v3167_v11 = vadd.f32 %v3166_v16, %v3078_v43  ;;  %v7515_v16 = vld [vmem:[#allocation62_spill] sm:$0xff] }
 0x413   : > { %v3346_v44 = vpop.f32.mrf.mxu1 }
 0x414   : > { %v3256_v54 = vadd.f32 %v3255_v35, %v3167_v11  ;;  %v7518_v11 = vld [vmem:[#allocation109_spill] sm:$0xff] }
 0x416   : > { %v7000_v14 = vadd.f32 %v3344_v33, %v3256_v54 }
 0x417   : > { %v3079_v61 = vpop.f32.mrf.mxu2 }
 0x418   : > { %v3080_v36 = vadd.f32 %v3079_v61, %v6798_v0  ;;  %v3168_v31 = vpop.f32.mrf.mxu3 }
 0x419   : > { %v3260_v56 = vpop.f32.mrf.mxu0 }
 0x41a   : > { %v3169_v51 = vadd.f32 %v3168_v31, %v3080_v36 }
 0x41b   : > { %v3349_v7 = vpop.f32.mrf.mxu1 }
 0x41c   : > { %v3258_v3 = vadd.f32 %v3257_v49, %v3169_v51  ;;  %3397 = vmatmul.bf16.gmra.mxu2 %v7513_v40  ;;  %3575 = vmatmul.bf16.gmra.mxu0 %v6488_v18  ;;  %v7516_v49 = vld [vmem:[#allocation110_spill] sm:$0xff] }
 0x41d   : > { %3486 = vmatmul.bf16.gmra.mxu3 %v6484_v12 }
 0x41e   : > { %3664 = vmatmul.bf16.gmra.mxu1 %v7514_v17  ;;  %v7007_v13 = vadd.f32 %v3346_v44, %v3258_v3 }
 0x41f   : > { %v3082_v21 = vpop.f32.mrf.mxu2 }
 0x420   : > { %v3083_v47 = vadd.f32 %v3082_v21, %v6804_v48  ;;  %v3171_v35 = vpop.f32.mrf.mxu3  ;;  %v7517_v48 = vld [vmem:[#allocation108_spill] sm:$0xff] }
 0x421   : > { %v3262_v0 = vpop.f32.mrf.mxu0 }
 0x422   : > { %v3172_v19 = vadd.f32 %v3171_v35, %v3083_v47 }
 0x423   : > { %v3351_v33 = vpop.f32.mrf.mxu1 }
 0x424   : > { %v3261_v23 = vadd.f32 %v3260_v56, %v3172_v19  ;;  %v7519_v19 = vld [vmem:[#allocation66_spill] sm:$0xff] }
 0x426   : > { %v7010_v37 = vadd.f32 %v3349_v7, %v3261_v23 }
 0x427   : > { %v3084_v30 = vpop.f32.mrf.mxu2 }
 0x428   : > { %v3085_v45 = vadd.f32 %v3084_v30, %v6814_v32  ;;  %v3173_v18 = vpop.f32.mrf.mxu3 }
 0x429   : > { %v3265_v27 = vpop.f32.mrf.mxu0 }
 0x42a   : > { %v3174_v12 = vadd.f32 %v3173_v18, %v3085_v45 }
 0x42b   : > { %v3354_v59 = vpop.f32.mrf.mxu1 }
 0x42c   : > { %v3263_v43 = vadd.f32 %v3262_v0, %v3174_v12  ;;  %3402 = vmatmul.bf16.gmra.mxu2 %v7515_v16  ;;  %3580 = vmatmul.bf16.gmra.mxu0 %v7516_v49 }
 0x42d   : > { %3491 = vmatmul.bf16.gmra.mxu3 %v7517_v48 }
 0x42e   : > { %3669 = vmatmul.bf16.gmra.mxu1 %v7518_v11  ;;  %v7017_v44 = vadd.f32 %v3351_v33, %v3263_v43 }
 0x42f   : > { %v3087_v54 = vpop.f32.mrf.mxu2 }
 0x430   : > { %v3088_v61 = vadd.f32 %v3087_v54, %v6818_v22  ;;  %v3176_v36 = vpop.f32.mrf.mxu3  ;;  %v7520_v22 = vld [vmem:[#allocation111_spill] sm:$0xff]  ;;  %v7521_v54 = vld [vmem:[#allocation70_spill] sm:$0xff] }
 0x431   : > { %v3267_v32 = vpop.f32.mrf.mxu0 }
 0x432   : > { %v3177_v31 = vadd.f32 %v3176_v36, %v3088_v61  ;;  %v7522_v61 = vld [vmem:[#allocation114_spill] sm:$0xff]  ;;  %v7524_v36 = vld [vmem:[#allocation113_spill] sm:$0xff] }
 0x433   : > { %v3356_v56 = vpop.f32.mrf.mxu1 }
 0x434   : > { %v3266_v51 = vadd.f32 %v3265_v27, %v3177_v31 }
 0x436   : > { %v7020_v7 = vadd.f32 %v3354_v59, %v3266_v51 }
 0x437   : > { %v3089_v3 = vpop.f32.mrf.mxu2 }
 0x438   : > { %v3090_v40 = vadd.f32 %v3089_v3, %v6830_v52  ;;  %v3178_v17 = vpop.f32.mrf.mxu3 }
 0x439   : > { %v3270_v21 = vpop.f32.mrf.mxu0 }
 0x43a   : > { %v3179_v47 = vadd.f32 %v3178_v17, %v3090_v40 }
 0x43b   : > { %v3359_v35 = vpop.f32.mrf.mxu1 }
 0x43c   : > { %v3268_v0 = vadd.f32 %v3267_v32, %v3179_v47  ;;  %3407 = vmatmul.bf16.gmra.mxu2 %v7519_v19  ;;  %3585 = vmatmul.bf16.gmra.mxu0 %v6528_v58 }
 0x43d   : > { %3496 = vmatmul.bf16.gmra.mxu3 %v6522_v20 }
 0x43e   : > { %3674 = vmatmul.bf16.gmra.mxu1 %v7520_v22  ;;  %v7027_v33 = vadd.f32 %v3356_v56, %v3268_v0 }
 0x43f   : > { %v3092_v23 = vpop.f32.mrf.mxu2 }
 0x440   : > { %v3093_v30 = vadd.f32 %v3092_v23, %v6836_v38  ;;  %v3181_v45 = vpop.f32.mrf.mxu3  ;;  %v7523_v38 = vld [vmem:[#allocation112_spill] sm:$0xff] }
 0x441   : > { %v3272_v52 = vpop.f32.mrf.mxu0 }
 0x442   : > { %v3182_v18 = vadd.f32 %v3181_v45, %v3093_v30  ;;  %v7525_v45 = vld [vmem:[#allocation74_spill] sm:$0xff] }
 0x443   : > { %v3361_v27 = vpop.f32.mrf.mxu1 }
 0x444   : > { %v3271_v12 = vadd.f32 %v3270_v21, %v3182_v18  ;;  %v7528_v18 = vld [vmem:[#allocation115_spill] sm:$0xff] }
 0x446   : > { %v7030_v59 = vadd.f32 %v3359_v35, %v3271_v12 }
 0x447   : > { %v3094_v43 = vpop.f32.mrf.mxu2 }
 0x448   : > { %v3095_v16 = vadd.f32 %v3094_v43, %v6846_v55  ;;  %v3183_v58 = vpop.f32.mrf.mxu3 }
 0x449   : > { %v3551_v49 = vpop.f32.mrf.mxu0 }
 0x44a   : > { %v3184_v20 = vadd.f32 %v3183_v58, %v3095_v16 }
 0x44b   : > { %v3640_v48 = vpop.f32.mrf.mxu1 }
 0x44c   : > { %v3273_v11 = vadd.f32 %v3272_v52, %v3184_v20  ;;  %3412 = vmatmul.bf16.gmra.mxu2 %v7521_v54  ;;  %3590 = vmatmul.bf16.gmra.mxu0 %v7522_v61  ;;  %v7526_v52 = vld [vmem:[#allocation116_spill] sm:$0xff] }
 0x44d   : > { %3501 = vmatmul.bf16.gmra.mxu3 %v7523_v38 }
 0x44e   : > { %3679 = vmatmul.bf16.gmra.mxu1 %v7524_v36  ;;  %v7037_v32 = vadd.f32 %v3361_v27, %v3273_v11 }
 0x44f   : > { %v3373_v31 = vpop.f32.mrf.mxu2 }
 0x450   : > { %v3374_v56 = vadd.f32 %v3373_v31, %v6862_v28  ;;  %v3462_v55 = vpop.f32.mrf.mxu3  ;;  %v7527_v28 = vld [vmem:[#allocation11_spill] sm:$0xff] }
 0x451   : > { %v3553_v51 = vpop.f32.mrf.mxu0 }
 0x452   : > { %v3463_v3 = vadd.f32 %v3462_v55, %v3374_v56  ;;  %v7529_v55 = vld [vmem:[#allocation78_spill] sm:$0xff] }
 0x453   : > { %v3642_v40 = vpop.f32.mrf.mxu1 }
 0x454   : > { %v3552_v17 = vadd.f32 %v3551_v49, %v3463_v3  ;;  %v7532_v3 = vld [vmem:[#allocation117_spill] sm:$0xff] }
 0x456   : > { %v3641_v21 = vadd.f32 %v3640_v48, %v3552_v17 }
 0x457   : > { %v3375_v47 = vpop.f32.mrf.mxu2 }
 0x458   : > { %v3376_v35 = vadd.f32 %v3375_v47, %v6871_v1  ;;  %v3464_v0 = vpop.f32.mrf.mxu3  ;;  %3785 = vst [vmem:[%s6564_s19 + $0x8] sm:$0xff] %v3641_v21 }
 0x459   : > { %v3556_v19 = vpop.f32.mrf.mxu0 }
 0x45a   : > { %v3465_v22 = vadd.f32 %v3464_v0, %v3376_v35 }
 0x45b   : > { %v3645_v23 = vpop.f32.mrf.mxu1 }
 0x45c   : > { %v3554_v30 = vadd.f32 %v3553_v51, %v3465_v22  ;;  %3417 = vmatmul.bf16.gmra.mxu2 %v7525_v45  ;;  %3595 = vmatmul.bf16.gmra.mxu0 %v7526_v52  ;;  %v7531_v51 = vld [vmem:[#allocation14_spill] sm:$0xff] }
 0x45d   : > { %3506 = vmatmul.bf16.gmra.mxu3 %v7527_v28 }
 0x45e   : > { %3684 = vmatmul.bf16.gmra.mxu1 %v7528_v18  ;;  %v3643_v27 = vadd.f32 %v3642_v40, %v3554_v30 }
 0x45f   : > { %v3378_v12 = vpop.f32.mrf.mxu2 }
 0x460   : > { %v3379_v1 = vadd.f32 %v3378_v12, %v6874_v57  ;;  %v3467_v43 = vpop.f32.mrf.mxu3  ;;  %3787 = vst [vmem:[%s6564_s19 + $0x18] sm:$0xff] %v3643_v27  ;;  %v7530_v57 = vld [vmem:[#allocation118_spill] sm:$0xff] }
 0x461   : > { %v3558_v16 = vpop.f32.mrf.mxu0  ;;  %v7533_v12 = vld [vmem:[#allocation82_spill] sm:$0xff] }
 0x462   : > { %v3468_v58 = vadd.f32 %v3467_v43, %v3379_v1  ;;  %v7535_v1 = vld [vmem:[#allocation17_spill] sm:$0xff]  ;;  %v7536_v43 = vld [vmem:[#allocation119_spill] sm:$0xff] }
 0x463   : > { %v3647_v49 = vpop.f32.mrf.mxu1 }
 0x464   : > { %v3557_v20 = vadd.f32 %v3556_v19, %v3468_v58 }
 0x466   : > { %v3646_v48 = vadd.f32 %v3645_v23, %v3557_v20 }
 0x467   : > { %v3380_v11 = vpop.f32.mrf.mxu2 }
 0x468   : > { %v3381_v54 = vadd.f32 %v3380_v11, %v6885_v25  ;;  %v3469_v61 = vpop.f32.mrf.mxu3  ;;  %3789 = vst [vmem:[%s6564_s19 + $0x28] sm:$0xff] %v3646_v48 }
 0x469   : > { %v3561_v38 = vpop.f32.mrf.mxu0 }
 0x46a   : > { %v3470_v36 = vadd.f32 %v3469_v61, %v3381_v54 }
 0x46b   : > { %v3650_v31 = vpop.f32.mrf.mxu1 }
 0x46c   : > { %v3559_v56 = vadd.f32 %v3558_v16, %v3470_v36  ;;  %3422 = vmatmul.bf16.gmra.mxu2 %v7529_v55  ;;  %3600 = vmatmul.bf16.gmra.mxu0 %v7530_v57 }
 0x46d   : > { %3511 = vmatmul.bf16.gmra.mxu3 %v7531_v51 }
 0x46e   : > { %3689 = vmatmul.bf16.gmra.mxu1 %v7532_v3  ;;  %v3648_v40 = vadd.f32 %v3647_v49, %v3559_v56  ;;  %v7537_v3 = vld [vmem:[#allocation86_spill] sm:$0xff] }
 0x46f   : > { %v3383_v17 = vpop.f32.mrf.mxu2 }
 0x470   : > { %v3384_v25 = vadd.f32 %v3383_v17, %v6890_v2  ;;  %v3472_v21 = vpop.f32.mrf.mxu3  ;;  %3791 = vst [vmem:[%s6564_s19 + $0x38] sm:$0xff] %v3648_v40  ;;  %v7534_v2 = vld [vmem:[#allocation120_spill] sm:$0xff]  ;;  %v7540_v17 = vld [vmem:[#allocation121_spill] sm:$0xff] }
 0x471   : > { %v3563_v47 = vpop.f32.mrf.mxu0  ;;  %v7539_v40 = vld [vmem:[#allocation20_spill] sm:$0xff] }
 0x472   : > { %v3473_v35 = vadd.f32 %v3472_v21, %v3384_v25 }
 0x473   : > { %v3652_v0 = vpop.f32.mrf.mxu1 }
 0x474   : > { %v3562_v19 = vadd.f32 %v3561_v38, %v3473_v35 }
 0x476   : > { %v3651_v22 = vadd.f32 %v3650_v31, %v3562_v19 }
 0x477   : > { %v3385_v23 = vpop.f32.mrf.mxu2 }
 0x478   : > { %v3386_v30 = vadd.f32 %v3385_v23, %v6899_v50  ;;  %v3474_v45 = vpop.f32.mrf.mxu3  ;;  %3793 = vst [vmem:[%s6564_s19 + $0x48] sm:$0xff] %v3651_v22 }
 0x479   : > { %v3566_v52 = vpop.f32.mrf.mxu0 }
 0x47a   : > { %v3475_v28 = vadd.f32 %v3474_v45, %v3386_v30 }
 0x47b   : > { %v3655_v18 = vpop.f32.mrf.mxu1 }
 0x47c   : > { %v3564_v27 = vadd.f32 %v3563_v47, %v3475_v28  ;;  %3427 = vmatmul.bf16.gmra.mxu2 %v7533_v12  ;;  %3605 = vmatmul.bf16.gmra.mxu0 %v7534_v2  ;;  %v7541_v2 = vld [vmem:[#allocation90_spill] sm:$0xff] }
 0x47d   : > { %3516 = vmatmul.bf16.gmra.mxu3 %v7535_v1  ;;  %v7543_v1 = vld [vmem:[#allocation23_spill] sm:$0xff] }
 0x47e   : > { %3694 = vmatmul.bf16.gmra.mxu1 %v7536_v43  ;;  %v3653_v16 = vadd.f32 %v3652_v0, %v3564_v27  ;;  %v7544_v43 = vld [vmem:[#allocation123_spill] sm:$0xff] }
 0x47f   : > { %v3388_v58 = vpop.f32.mrf.mxu2 }
 0x480   : > { %v3389_v50 = vadd.f32 %v3388_v58, %v6902_v4  ;;  %v3477_v49 = vpop.f32.mrf.mxu3  ;;  %3795 = vst [vmem:[%s6564_s19 + $0x58] sm:$0xff] %v3653_v16  ;;  %v7538_v4 = vld [vmem:[#allocation122_spill] sm:$0xff] }
 0x481   : > { %v3568_v20 = vpop.f32.mrf.mxu0 }
 0x482   : > { %v3478_v48 = vadd.f32 %v3477_v49, %v3389_v50 }
 0x483   : > { %v3657_v11 = vpop.f32.mrf.mxu1 }
 0x484   : > { %v3567_v54 = vadd.f32 %v3566_v52, %v3478_v48 }
 0x486   : > { %v3656_v61 = vadd.f32 %v3655_v18, %v3567_v54 }
 0x487   : > { %v3390_v38 = vpop.f32.mrf.mxu2 }
 0x488   : > { %v3391_v36 = vadd.f32 %v3390_v38, %v6913_v53  ;;  %v3479_v31 = vpop.f32.mrf.mxu3  ;;  %3797 = vst [vmem:[%s6564_s19 + $0x68] sm:$0xff] %v3656_v61 }
 0x489   : > { %v3571_v56 = vpop.f32.mrf.mxu0 }
 0x48a   : > { %v3480_v55 = vadd.f32 %v3479_v31, %v3391_v36 }
 0x48b   : > { %v3660_v57 = vpop.f32.mrf.mxu1 }
 0x48c   : > { %v3569_v51 = vadd.f32 %v3568_v20, %v3480_v55  ;;  %3432 = vmatmul.bf16.gmra.mxu2 %v7537_v3  ;;  %3610 = vmatmul.bf16.gmra.mxu0 %v7538_v4  ;;  %v7547_v3 = vld [vmem:[#allocation26_spill] sm:$0xff]  ;;  %v7548_v4 = vld [vmem:[#allocation125_spill] sm:$0xff] }
 0x48d   : > { %3521 = vmatmul.bf16.gmra.mxu3 %v7539_v40 }
 0x48e   : > { %3699 = vmatmul.bf16.gmra.mxu1 %v7540_v17  ;;  %v3658_v25 = vadd.f32 %v3657_v11, %v3569_v51  ;;  %v7545_v51 = vld [vmem:[#allocation94_spill] sm:$0xff] }
 0x48f   : > { %v3393_v21 = vpop.f32.mrf.mxu2 }
 0x490   : > { %v3394_v53 = vadd.f32 %v3393_v21, %v6918_v10  ;;  %v3482_v47 = vpop.f32.mrf.mxu3  ;;  %3799 = vst [vmem:[%s6564_s19 + $0x78] sm:$0xff] %v3658_v25  ;;  %v7542_v10 = vld [vmem:[#allocation124_spill] sm:$0xff] }
 0x491   : > { %v3573_v35 = vpop.f32.mrf.mxu0 }
 0x492   : > { %v3483_v0 = vadd.f32 %v3482_v47, %v3394_v53 }
 0x493   : > { %v3662_v19 = vpop.f32.mrf.mxu1 }
 0x494   : > { %v3572_v22 = vadd.f32 %v3571_v56, %v3483_v0 }
 0x496   : > { %v3661_v23 = vadd.f32 %v3660_v57, %v3572_v22 }
 0x497   : > { %v3395_v30 = vpop.f32.mrf.mxu2 }
 0x498   : > { %v3396_v45 = vadd.f32 %v3395_v30, %v6927_v34  ;;  %v3484_v52 = vpop.f32.mrf.mxu3  ;;  %3801 = vst [vmem:[%s6564_s19 + $0x88] sm:$0xff] %v3661_v23 }
 0x499   : > { %v3576_v28 = vpop.f32.mrf.mxu0 }
 0x49a   : > { %v3485_v18 = vadd.f32 %v3484_v52, %v3396_v45 }
 0x49b   : > { %v3665_v27 = vpop.f32.mrf.mxu1 }
 0x49c   : > { %v3574_v12 = vadd.f32 %v3573_v35, %v3485_v18  ;;  %3437 = vmatmul.bf16.gmra.mxu2 %v7541_v2  ;;  %3615 = vmatmul.bf16.gmra.mxu0 %v7542_v10  ;;  %v7549_v18 = vld [vmem:[#allocation95_spill] sm:$0xff] }
 0x49d   : > { %3526 = vmatmul.bf16.gmra.mxu3 %v7543_v1 }
 0x49e   : > { %3704 = vmatmul.bf16.gmra.mxu1 %v7544_v43  ;;  %v3663_v16 = vadd.f32 %v3662_v19, %v3574_v12 }
 0x49f   : > { %v3398_v58 = vpop.f32.mrf.mxu2 }
 0x4a0   : > { %v3399_v34 = vadd.f32 %v3398_v58, %v6930_v6  ;;  %v3487_v50 = vpop.f32.mrf.mxu3  ;;  %3803 = vst [vmem:[%s6564_s19 + $0x98] sm:$0xff] %v3663_v16  ;;  %v7546_v6 = vld [vmem:[#allocation126_spill] sm:$0xff] }
 0x4a1   : > { %v3578_v49 = vpop.f32.mrf.mxu0 }
 0x4a2   : > { %v3488_v20 = vadd.f32 %v3487_v50, %v3399_v34 }
 0x4a3   : > { %v3667_v48 = vpop.f32.mrf.mxu1 }
 0x4a4   : > { %v3577_v11 = vadd.f32 %v3576_v28, %v3488_v20 }
 0x4a6   : > { %v3666_v54 = vadd.f32 %v3665_v27, %v3577_v11  ;;  %v7551_v27 = vld [vmem:[#allocation127_spill] sm:$0xff] }
 0x4a7   : > { %v3400_v61 = vpop.f32.mrf.mxu2 }
 0x4a8   : > { %v3401_v38 = vadd.f32 %v3400_v61, %v6937_v26  ;;  %v3489_v36 = vpop.f32.mrf.mxu3  ;;  %3805 = vst [vmem:[%s6564_s19 + $0xa8] sm:$0xff] %v3666_v54 }
 0x4a9   : > { %v3581_v31 = vpop.f32.mrf.mxu0 }
 0x4aa   : > { %v3490_v56 = vadd.f32 %v3489_v36, %v3401_v38 }
 0x4ab   : > { %v3670_v55 = vpop.f32.mrf.mxu1 }
 0x4ac   : > { %v3579_v57 = vadd.f32 %v3578_v49, %v3490_v56  ;;  %3442 = vmatmul.bf16.gmra.mxu2 %v7545_v51  ;;  %3620 = vmatmul.bf16.gmra.mxu0 %v7546_v6 }
 0x4ad   : > { %3531 = vmatmul.bf16.gmra.mxu3 %v7547_v3 }
 0x4ae   : > { %3709 = vmatmul.bf16.gmra.mxu1 %v7548_v4  ;;  %v3668_v40 = vadd.f32 %v3667_v48, %v3579_v57 }
 0x4af   : > { %v3403_v17 = vpop.f32.mrf.mxu2 }
 0x4b0   : > { %v3404_v26 = vadd.f32 %v3403_v17, %v6940_v29  ;;  %v3492_v25 = vpop.f32.mrf.mxu3  ;;  %3807 = vst [vmem:[%s6564_s19 + $0xb8] sm:$0xff] %v3668_v40  ;;  %v7550_v29 = vld [vmem:[#allocation29_spill] sm:$0xff] }
 0x4b1   : > { %v3583_v21 = vpop.f32.mrf.mxu0 }
 0x4b2   : > { %v3493_v53 = vadd.f32 %v3492_v25, %v3404_v26 }
 0x4b3   : > { %v3672_v47 = vpop.f32.mrf.mxu1 }
 0x4b4   : > { %v3582_v35 = vadd.f32 %v3581_v31, %v3493_v53 }
 0x4b6   : > { %v3671_v0 = vadd.f32 %v3670_v55, %v3582_v35 }
 0x4b7   : > { %v3405_v19 = vpop.f32.mrf.mxu2 }
 0x4b8   : > { %v3406_v22 = vadd.f32 %v3405_v19, %v6947_v63  ;;  %v3494_v23 = vpop.f32.mrf.mxu3  ;;  %3809 = vst [vmem:[%s6564_s19 + $0xc8] sm:$0xff] %v3671_v0 }
 0x4b9   : > { %v3586_v30 = vpop.f32.mrf.mxu0 }
 0x4ba   : > { %v3495_v45 = vadd.f32 %v3494_v23, %v3406_v22 }
 0x4bb   : > { %v3675_v52 = vpop.f32.mrf.mxu1 }
 0x4bc   : > { %v3584_v28 = vadd.f32 %v3583_v21, %v3495_v45  ;;  %3447 = vmatmul.bf16.gmra.mxu2 %v7549_v18  ;;  %3625 = vmatmul.bf16.gmra.mxu0 %v6706_v15 }
 0x4bd   : > { %3536 = vmatmul.bf16.gmra.mxu3 %v7550_v29 }
 0x4be   : > { %3714 = vmatmul.bf16.gmra.mxu1 %v7551_v27  ;;  %v3673_v12 = vadd.f32 %v3672_v47, %v3584_v28 }
 0x4bf   : > { %v3408_v2 = vpop.f32.mrf.mxu2 }
 0x4c0   : > { %v3409_v63 = vadd.f32 %v3408_v2, %v6950_v46  ;;  %v3497_v10 = vpop.f32.mrf.mxu3  ;;  %3811 = vst [vmem:[%s6564_s19 + $0xd8] sm:$0xff] %v3673_v12 }
 0x4c1   : > { %v3588_v1 = vpop.f32.mrf.mxu0 }
 0x4c2   : > { %v3498_v43 = vadd.f32 %v3497_v10, %v3409_v63 }
 0x4c3   : > { %v3677_v16 = vpop.f32.mrf.mxu1 }
 0x4c4   : > { %v3587_v58 = vadd.f32 %v3586_v30, %v3498_v43 }
 0x4c6   : > { %v3676_v34 = vadd.f32 %v3675_v52, %v3587_v58 }
 0x4c7   : > { %v3410_v50 = vpop.f32.mrf.mxu2 }
 0x4c8   : > { %v3411_v15 = vadd.f32 %v3410_v50, %v6957_v62  ;;  %v3499_v49 = vpop.f32.mrf.mxu3  ;;  %3813 = vst [vmem:[%s6564_s19 + $0xe8] sm:$0xff] %v3676_v34 }
 0x4c9   : > { %v3591_v20 = vpop.f32.mrf.mxu0 }
 0x4ca   : > { %v3500_v48 = vadd.f32 %v3499_v49, %v3411_v15 }
 0x4cb   : > { %v3680_v11 = vpop.f32.mrf.mxu1 }
 0x4cc   : > { %v3589_v54 = vadd.f32 %v3588_v1, %v3500_v48 }
 0x4ce   : > { %v3678_v61 = vadd.f32 %v3677_v16, %v3589_v54 }
 0x4cf   : > { %v3413_v46 = vpop.f32.mrf.mxu2 }
 0x4d0   : > { %v3414_v38 = vadd.f32 %v3413_v46, %v6960_v24  ;;  %v3502_v36 = vpop.f32.mrf.mxu3  ;;  %3815 = vst [vmem:[%s6564_s19 + $0xf8] sm:$0xff] %v3678_v61 }
 0x4d1   : > { %v3593_v31 = vpop.f32.mrf.mxu0 }
 0x4d2   : > { %v3503_v56 = vadd.f32 %v3502_v36, %v3414_v38 }
 0x4d3   : > { %v3682_v55 = vpop.f32.mrf.mxu1 }
 0x4d4   : > { %v3592_v57 = vadd.f32 %v3591_v20, %v3503_v56 }
 0x4d6   : > { %v3681_v51 = vadd.f32 %v3680_v11, %v3592_v57 }
 0x4d7   : > { %v3415_v62 = vpop.f32.mrf.mxu2 }
 0x4d8   : > { %v3416_v6 = vadd.f32 %v3415_v62, %v6967_v5  ;;  %v3504_v3 = vpop.f32.mrf.mxu3  ;;  %3817 = vst [vmem:[%s6564_s19 + $0x108] sm:$0xff] %v3681_v51 }
 0x4d9   : > { %v3596_v4 = vpop.f32.mrf.mxu0 }
 0x4da   : > { %v3505_v40 = vadd.f32 %v3504_v3, %v3416_v6 }
 0x4db   : > { %v3685_v17 = vpop.f32.mrf.mxu1 }
 0x4dc   : > { %v3594_v26 = vadd.f32 %v3593_v31, %v3505_v40 }
 0x4de   : > { %v3683_v25 = vadd.f32 %v3682_v55, %v3594_v26 }
 0x4df   : > { %v3418_v24 = vpop.f32.mrf.mxu2 }
 0x4e0   : > { %v3419_v21 = vadd.f32 %v3418_v24, %v6970_v41  ;;  %v3507_v53 = vpop.f32.mrf.mxu3  ;;  %3819 = vst [vmem:[%s6564_s19 + $0x118] sm:$0xff] %v3683_v25 }
 0x4e1   : > { %v3598_v47 = vpop.f32.mrf.mxu0 }
 0x4e2   : > { %v3508_v35 = vadd.f32 %v3507_v53, %v3419_v21 }
 0x4e3   : > { %v3687_v0 = vpop.f32.mrf.mxu1 }
 0x4e4   : > { %v3597_v19 = vadd.f32 %v3596_v4, %v3508_v35 }
 0x4e6   : > { %v3686_v22 = vadd.f32 %v3685_v17, %v3597_v19 }
 0x4e7   : > { %v3420_v5 = vpop.f32.mrf.mxu2 }
 0x4e8   : > { %v3421_v23 = vadd.f32 %v3420_v5, %v6977_v9  ;;  %v3509_v30 = vpop.f32.mrf.mxu3  ;;  %3821 = vst [vmem:[%s6564_s19 + $0x128] sm:$0xff] %v3686_v22 }
 0x4e9   : > { %v3601_v45 = vpop.f32.mrf.mxu0 }
 0x4ea   : > { %v3510_v52 = vadd.f32 %v3509_v30, %v3421_v23 }
 0x4eb   : > { %v3690_v28 = vpop.f32.mrf.mxu1 }
 0x4ec   : > { %v3599_v18 = vadd.f32 %v3598_v47, %v3510_v52 }
 0x4ee   : > { %v3688_v29 = vadd.f32 %v3687_v0, %v3599_v18 }
 0x4ef   : > { %v3423_v41 = vpop.f32.mrf.mxu2 }
 0x4f0   : > { %v3424_v27 = vadd.f32 %v3423_v41, %v6980_v42  ;;  %v3512_v12 = vpop.f32.mrf.mxu3  ;;  %3823 = vst [vmem:[%s6564_s19 + $0x138] sm:$0xff] %v3688_v29 }
 0x4f1   : > { %v3603_v2 = vpop.f32.mrf.mxu0 }
 0x4f2   : > { %v3513_v63 = vadd.f32 %v3512_v12, %v3424_v27 }
 0x4f3   : > { %v3692_v10 = vpop.f32.mrf.mxu1 }
 0x4f4   : > { %v3602_v1 = vadd.f32 %v3601_v45, %v3513_v63 }
 0x4f6   : > { %v3691_v43 = vadd.f32 %v3690_v28, %v3602_v1 }
 0x4f7   : > { %v3425_v9 = vpop.f32.mrf.mxu2 }
 0x4f8   : > { %v3426_v16 = vadd.f32 %v3425_v9, %v6987_v8  ;;  %v3514_v58 = vpop.f32.mrf.mxu3  ;;  %3825 = vst [vmem:[%s6564_s19 + $0x148] sm:$0xff] %v3691_v43 }
 0x4f9   : > { %v3606_v34 = vpop.f32.mrf.mxu0 }
 0x4fa   : > { %v3515_v50 = vadd.f32 %v3514_v58, %v3426_v16 }
 0x4fb   : > { %v3695_v15 = vpop.f32.mrf.mxu1 }
 0x4fc   : > { %v3604_v49 = vadd.f32 %v3603_v2, %v3515_v50 }
 0x4fe   : > { %v3693_v20 = vadd.f32 %v3692_v10, %v3604_v49 }
 0x4ff   : > { %v3428_v42 = vpop.f32.mrf.mxu2 }
 0x500   : > { %v3429_v48 = vadd.f32 %v3428_v42, %v6990_v60  ;;  %v3517_v11 = vpop.f32.mrf.mxu3  ;;  %3827 = vst [vmem:[%s6564_s19 + $0x158] sm:$0xff] %v3693_v20 }
 0x501   : > { %v3608_v54 = vpop.f32.mrf.mxu0 }
 0x502   : > { %v3518_v61 = vadd.f32 %v3517_v11, %v3429_v48 }
 0x503   : > { %v3697_v46 = vpop.f32.mrf.mxu1 }
 0x504   : > { %v3607_v38 = vadd.f32 %v3606_v34, %v3518_v61 }
 0x506   : > { %v3696_v36 = vadd.f32 %v3695_v15, %v3607_v38 }
 0x507   : > { %v3430_v8 = vpop.f32.mrf.mxu2 }
 0x508   : > { %v3431_v31 = vadd.f32 %v3430_v8, %v6997_v39  ;;  %v3519_v56 = vpop.f32.mrf.mxu3  ;;  %3829 = vst [vmem:[%s6564_s19 + $0x168] sm:$0xff] %v3696_v36 }
 0x509   : > { %v3611_v55 = vpop.f32.mrf.mxu0 }
 0x50a   : > { %v3520_v57 = vadd.f32 %v3519_v56, %v3431_v31 }
 0x50b   : > { %v3700_v51 = vpop.f32.mrf.mxu1 }
 0x50c   : > { %v3609_v62 = vadd.f32 %v3608_v54, %v3520_v57 }
 0x50e   : > { %v3698_v6 = vadd.f32 %v3697_v46, %v3609_v62 }
 0x50f   : > { %v3433_v60 = vpop.f32.mrf.mxu2 }
 0x510   : > { %v3434_v3 = vadd.f32 %v3433_v60, %v7000_v14  ;;  %v3522_v4 = vpop.f32.mrf.mxu3  ;;  %3831 = vst [vmem:[%s6564_s19 + $0x178] sm:$0xff] %v3698_v6 }
 0x511   : > { %v3613_v40 = vpop.f32.mrf.mxu0 }
 0x512   : > { %v3523_v17 = vadd.f32 %v3522_v4, %v3434_v3 }
 0x513   : > { %v3702_v26 = vpop.f32.mrf.mxu1 }
 0x514   : > { %v3612_v25 = vadd.f32 %v3611_v55, %v3523_v17 }
 0x516   : > { %v3701_v24 = vadd.f32 %v3700_v51, %v3612_v25 }
 0x517   : > { %v3435_v39 = vpop.f32.mrf.mxu2 }
 0x518   : > { %v3436_v21 = vadd.f32 %v3435_v39, %v7007_v13  ;;  %v3524_v53 = vpop.f32.mrf.mxu3  ;;  %3833 = vst [vmem:[%s6564_s19 + $0x188] sm:$0xff] %v3701_v24 }
 0x519   : > { %v3616_v47 = vpop.f32.mrf.mxu0 }
 0x51a   : > { %v3525_v35 = vadd.f32 %v3524_v53, %v3436_v21 }
 0x51b   : > { %v3705_v0 = vpop.f32.mrf.mxu1 }
 0x51c   : > { %v3614_v19 = vadd.f32 %v3613_v40, %v3525_v35 }
 0x51e   : > { %v3703_v22 = vadd.f32 %v3702_v26, %v3614_v19 }
 0x51f   : > { %v3438_v14 = vpop.f32.mrf.mxu2 }
 0x520   : > { %v3439_v5 = vadd.f32 %v3438_v14, %v7010_v37  ;;  %v3527_v23 = vpop.f32.mrf.mxu3  ;;  %3835 = vst [vmem:[%s6564_s19 + $0x198] sm:$0xff] %v3703_v22 }
 0x521   : > { %v3618_v45 = vpop.f32.mrf.mxu0 }
 0x522   : > { %v3528_v30 = vadd.f32 %v3527_v23, %v3439_v5 }
 0x523   : > { %v3707_v28 = vpop.f32.mrf.mxu1 }
 0x524   : > { %v3617_v52 = vadd.f32 %v3616_v47, %v3528_v30 }
 0x526   : > { %v3706_v18 = vadd.f32 %v3705_v0, %v3617_v52 }
 0x527   : > { %v3440_v13 = vpop.f32.mrf.mxu2 }
 0x528   : > { %v3441_v29 = vadd.f32 %v3440_v13, %v7017_v44  ;;  %v3529_v41 = vpop.f32.mrf.mxu3  ;;  %3837 = vst [vmem:[%s6564_s19 + $0x1a8] sm:$0xff] %v3706_v18 }
 0x529   : > { %v3621_v2 = vpop.f32.mrf.mxu0 }
 0x52a   : > { %v3530_v27 = vadd.f32 %v3529_v41, %v3441_v29 }
 0x52b   : > { %v3710_v10 = vpop.f32.mrf.mxu1 }
 0x52c   : > { %v3619_v12 = vadd.f32 %v3618_v45, %v3530_v27 }
 0x52e   : > { %v3708_v63 = vadd.f32 %v3707_v28, %v3619_v12 }
 0x52f   : > { %v3443_v37 = vpop.f32.mrf.mxu2 }
 0x530   : > { %v3444_v1 = vadd.f32 %v3443_v37, %v7020_v7  ;;  %v3532_v43 = vpop.f32.mrf.mxu3  ;;  %3839 = vst [vmem:[%s6564_s19 + $0x1b8] sm:$0xff] %v3708_v63 }
 0x531   : > { %v3623_v34 = vpop.f32.mrf.mxu0 }
 0x532   : > { %v3533_v9 = vadd.f32 %v3532_v43, %v3444_v1 }
 0x533   : > { %v3712_v49 = vpop.f32.mrf.mxu1 }
 0x534   : > { %v3622_v16 = vadd.f32 %v3621_v2, %v3533_v9 }
 0x536   : > { %v3711_v58 = vadd.f32 %v3710_v10, %v3622_v16 }
 0x537   : > { %v3445_v50 = vpop.f32.mrf.mxu2 }
 0x538   : > { %v3446_v44 = vadd.f32 %v3445_v50, %v7027_v33  ;;  %v3534_v15 = vpop.f32.mrf.mxu3  ;;  %3841 = vst [vmem:[%s6564_s19 + $0x1c8] sm:$0xff] %v3711_v58 }
 0x539   : > { %v3626_v61 = vpop.f32.mrf.mxu0 }
 0x53a   : > { %v3535_v20 = vadd.f32 %v3534_v15, %v3446_v44 }
 0x53b   : > { %v3715_v38 = vpop.f32.mrf.mxu1 }
 0x53c   : > { %v3624_v42 = vadd.f32 %v3623_v34, %v3535_v20 }
 0x53e   : > { %v3713_v48 = vadd.f32 %v3712_v49, %v3624_v42 }
 0x53f   : > { %v3448_v11 = vpop.f32.mrf.mxu2 }
 0x540   : > { %v3449_v7 = vadd.f32 %v3448_v11, %v7030_v59  ;;  %v3537_v54 = vpop.f32.mrf.mxu3  ;;  %3843 = vst [vmem:[%s6564_s19 + $0x1d8] sm:$0xff] %v3713_v48 }
 0x541   : > { %v3628_v55 = vpop.f32.mrf.mxu0 }
 0x542   : > { %v3538_v46 = vadd.f32 %v3537_v54, %v3449_v7 }
 0x543   : > { %v3717_v51 = vpop.f32.mrf.mxu1 }
 0x544   : > { %v3627_v36 = vadd.f32 %v3626_v61, %v3538_v46 }
 0x546   : > { %v3716_v8 = vadd.f32 %v3715_v38, %v3627_v36 }
 0x547   : > { %v3450_v33 = vpop.f32.mrf.mxu2 }
 0x548   : > { %v3451_v31 = vadd.f32 %v3450_v33, %v7037_v32  ;;  %v3539_v56 = vpop.f32.mrf.mxu3  ;;  %3845 = vst [vmem:[%s6564_s19 + $0x1e8] sm:$0xff] %v3716_v8 }
 0x54a   : > { %v3540_v59 = vadd.f32 %v3539_v56, %v3451_v31 }
 0x54c   : > { %v3629_v57 = vadd.f32 %v3628_v55, %v3540_v59 }
 0x54e   : > { %v3718_v62 = vadd.f32 %v3717_v51, %v3629_v57 }
 0x550   : > { %3847 = vst [vmem:[%s6564_s19 + $0x1f8] sm:$0xff] %v3718_v62 }
 0x551   : > { %5618 = shalt.err (!%p5615_p0)
}
 0x552   : > { %s5685_s30 = smov 256   ;;  %s5686_s6 = smov 512  }
 0x553   : > { %s5687_s7 = smov 16  }
 0x554   : > { %5455 = dma.vmem_to_hbm [thread:$0]  (%p5782_p5), %s3865_s22, 8192, %s3867_s23, %s3849_s12, %s5685_s30, %s5686_s6, %s5687_s7  }
 0x555 PF: > { %s3881_s17 = sand.u32 1, %s5657_s9   ;;  %p5466_p3 = pnand %p3978_p11, %p5752_p6 }
 0x556   : > { %s3882_s19 = scalar_lea.sflag [#allocation4], %s3881_s17 }
 0x557   : > { %p5467_p7 = pneg %p5466_p3 }
 0x559   : > { %5652 = dma.done.wait (%p5467_p7), %s3882_s19, 8192  }
 0x55a   : > { %5654 = vsyncadd (%p5467_p7), %s3882_s19, 4294959104  ;;  %s19_s14 = sadd.s32 1, %s5677_s14   ;;  %s7552_s9 = smov %s5661_s10 }
 0x55b   : > { %p16_p9 = scmp.ge.s32.totalorder %s19_s14, 4   ;;  %s7553_s10 = smov %s5665_s11 }
 0x55c   : > { %s7554_s11 = smov %s5791_s8  ;;  %s7555_s12 = smov %s5673_s13 }
 0x55d   : > { %s7556_s13 = smov %s7558_s29  ;;  %18 = sbr.rel (!%p16_p9) target bundleno = 7 (0x7), region = 83 }
 0x562   :  { %3888 = vsyncpa [#allocation3], 1 }
 0x563   :  { %3890 = vsyncpa [#allocation3 + $0x1], 1 }
 0x564   :  { %3891 = vsyncpa [#allocation6], 1 }
 0x565   :  { %3893 = vsyncpa [#allocation6 + $0x1], 1 }
 0x566   :  { %3894 = vsyncpa [#allocation4], 1 }
 0x567   :  { %3896 = vsyncpa [#allocation4 + $0x1], 1 }

</bundles_post_ra>
